<compile_context>
chip_gen: v7x
topology: tpu7x:2x2x1
jax: 0.10.0
libtpu: 0.0.40
codegen_flags: <defaults>
</compile_context>

<pallas_src>
import jax
import jax.numpy as jnp
from jax.experimental import pallas as pl
from jax.experimental.pallas import tpu as pltpu

HIDDEN = 1024
PATCH = 1
OUT_CH = 64
EPS = 1e-6


def _last_layer_kernel(x_ref, w_ref, b_ref, o_ref):
    # x_ref: (TS, H) f32/bf16 | w_ref: (H, OUT_CH) bf16 | b_ref: (1, OUT_CH) f32
    x = x_ref[...].astype(jnp.float32)
    inv_h = 1.0 / HIDDEN
    # One-pass LayerNorm statistics (f32, variance clamped >= 0). Slightly less
    # stable than the centered form for huge means, but saves a full VPU pass.
    mean = jnp.sum(x, axis=-1, keepdims=True) * inv_h
    mean_sq = jnp.sum(x * x, axis=-1, keepdims=True) * inv_h
    var = jnp.maximum(mean_sq - mean * mean, 0.0)        # biased variance (PyTorch LN)
    xn = (x - mean) * jax.lax.rsqrt(var + EPS)
    acc = jnp.dot(xn.astype(jnp.bfloat16), w_ref[...],
                  preferred_element_type=jnp.float32)    # MXU, f32 accumulate
    o_ref[...] = (acc + b_ref[...]).astype(o_ref.dtype)


def last_layer(x, vec, w_ada, b_ada, w_lin, b_lin, *, ts=1024, out_dtype=None):
    """x: (B, S, H) f32 or bf16; vec: (B, H).  Returns (B, S, OUT_CH)."""
    B, S, H = x.shape
    assert H == HIDDEN
    if out_dtype is None:
        out_dtype = x.dtype

    # ---- adaLN branch hoisted out of the kernel (tiny matmul; M = B) ----
    vec32 = vec.astype(jnp.float32)
    v = vec32 * jax.nn.sigmoid(vec32)
    mod = jnp.dot(v, w_ada.astype(jnp.float32),
                  preferred_element_type=jnp.float32) + b_ada.astype(jnp.float32)  # (B, 2H)
    shift, scale = mod[:, :H], mod[:, H:]

    # ---- fold modulation into the (H, 64) weight / (64,) bias, per batch ----
    w_lin32 = w_lin.astype(jnp.float32)
    w_mod = (w_lin32[None, :, :] * (1.0 + scale)[:, :, None]).astype(jnp.bfloat16)  # (B, H, 64)
    b_mod = (b_lin.astype(jnp.float32)[None, :]
             + jnp.dot(shift, w_lin32, preferred_element_type=jnp.float32))         # (B, 64)
    b_mod = b_mod[:, None, :]                                                        # (B, 1, 64)

    # ---- sequence tile size (no padding copy; ragged tail -> Pallas edge block) ----
    if B == 1:
        # Keep >= 4 sequence blocks so both v7x TensorCores (and the pipeline)
        # stay busy when the batch axis offers no parallelism.
        ts = min(ts, max(8, ((pl.cdiv(S, 4) + 7) // 8) * 8))
    if ts >= S:
        ts = S                               # single full-extent block (always legal)
    else:
        ts = max(8, (ts // 8) * 8)           # multiple of 8 sublanes
    n_s = pl.cdiv(S, ts)

    x_bytes = jnp.dtype(x.dtype).itemsize
    o_bytes = jnp.dtype(out_dtype).itemsize
    cost = pl.CostEstimate(
        flops=2 * B * S * H * OUT_CH + 6 * B * S * H,
        transcendentals=B * S,
        bytes_accessed=B * S * H * x_bytes + B * S * OUT_CH * o_bytes + B * H * OUT_CH * 2,
    )

    return pl.pallas_call(
        _last_layer_kernel,
        out_shape=jax.ShapeDtypeStruct((B, S, OUT_CH), out_dtype),
        grid_spec=pltpu.PrefetchScalarGridSpec(
            num_scalar_prefetch=0,
            grid=(B, n_s),
            in_specs=[
                pl.BlockSpec((pl.Squeezed(), ts, H), lambda b, s: (b, s, 0)),      # x tile
                pl.BlockSpec((pl.Squeezed(), H, OUT_CH), lambda b, s: (b, 0, 0)),  # folded weight
                pl.BlockSpec((pl.Squeezed(), 1, OUT_CH), lambda b, s: (b, 0, 0)),  # folded bias
            ],
            out_specs=pl.BlockSpec((pl.Squeezed(), ts, OUT_CH), lambda b, s: (b, s, 0)),
        ),
        compiler_params=pltpu.CompilerParams(
            dimension_semantics=("parallel", "parallel"),
            vmem_limit_bytes=48 * 1024 * 1024,   # legal on v7x (64 MiB physical)
        ),
        cost_estimate=cost,
    )(x, w_mod, b_mod)


def _reference(x, vec, w_ada, b_ada, w_lin, b_lin):
    v = vec * jax.nn.sigmoid(vec)
    mod = v @ w_ada + b_ada
    shift, scale = mod[:, :HIDDEN], mod[:, HIDDEN:]
    mean = jnp.mean(x, axis=-1, keepdims=True)
    var = jnp.mean((x - mean) ** 2, axis=-1, keepdims=True)
    xn = (x - mean) / jnp.sqrt(var + EPS)
    y = (1.0 + scale[:, None, :]) * xn + shift[:, None, :]
    return y @ w_lin + b_lin


if __name__ == "__main__":
    key = jax.random.PRNGKey(0)
    k_x, k_v, k_wa, k_ba, k_wl, k_bl = jax.random.split(key, 6)

    B, S, H = 2, 256, HIDDEN

    x = jax.random.normal(k_x, (B, S, H), dtype=jnp.float32)
    vec = jax.random.normal(k_v, (B, H), dtype=jnp.float32)

    # Deterministic synthetic parameters (shapes from the module's __init__),
    # stored pre-transposed as (in_features, out_features) for y = x @ W + b.
    w_ada = jax.random.normal(k_wa, (H, 2 * H), dtype=jnp.float32) * (1.0 / H ** 0.5)
    b_ada = jax.random.normal(k_ba, (2 * H,), dtype=jnp.float32) * 0.02
    w_lin = jax.random.normal(k_wl, (H, PATCH * PATCH * OUT_CH), dtype=jnp.float32) * (1.0 / H ** 0.5)
    b_lin = jax.random.normal(k_bl, (PATCH * PATCH * OUT_CH,), dtype=jnp.float32) * 0.02

    out = jax.block_until_ready(last_layer(x, vec, w_ada, b_ada, w_lin, b_lin))
    ref = jax.block_until_ready(_reference(x, vec, w_ada, b_ada, w_lin, b_lin))

    assert out.shape == (B, S, OUT_CH), out.shape
    # bf16 matmul operands (f32 accumulation) -> loosened tolerance vs f32 ref.
    err = float(jnp.max(jnp.abs(out - ref)))
    assert jnp.allclose(out, ref, atol=5e-2, rtol=5e-2), err
    print("KERNEL_OK")
</pallas_src>

<mosaic_0001>
module attributes {stable_mosaic.version = 11 : i64} {
  func.func @_last_layer_kernel(%arg0: i32, %arg1: i32, %arg2: memref<1x256x1024xf32, #tpu.memory_space<vmem>>, %arg3: memref<1x1024x64xbf16, #tpu.memory_space<vmem>>, %arg4: memref<1x1x64xf32, #tpu.memory_space<vmem>>, %arg5: memref<1x256x64xf32, #tpu.memory_space<vmem>>) attributes {dimension_semantics = [#tpu.dimension_semantics<parallel>, #tpu.dimension_semantics<parallel>], iteration_bounds = array<i64: 2, 1>, scalar_prefetch = 0 : i64, scratch_operands = 0 : i64, tpu.core_type = #tpu.core_type<tc>, window_params = [{transform_indices = @transform_0, window_bounds = array<i64: 1, 256, 1024>}, {transform_indices = @transform_1, window_bounds = array<i64: 1, 1024, 64>}, {transform_indices = @transform_2, window_bounds = array<i64: 1, 1, 64>}, {transform_indices = @transform_3, window_bounds = array<i64: 1, 256, 64>}]} {
    %c0 = arith.constant 0 : index
    %c0_0 = arith.constant 0 : index
    %c0_1 = arith.constant 0 : index
    %0 = vector.load %arg2[%c0, %c0_0, %c0_1] : memref<1x256x1024xf32, #tpu.memory_space<vmem>>, vector<1x256x1024xf32>
    %1 = vector.shape_cast %0 : vector<1x256x1024xf32> to vector<256x1024xf32>
    %cst = arith.constant dense<0.000000e+00> : vector<256xf32>
    %2 = vector.multi_reduction <add>, %1, %cst [1] : vector<256x1024xf32> to vector<256xf32>
    %3 = vector.shape_cast %2 : vector<256xf32> to vector<256x1xf32>
    %cst_2 = arith.constant 9.765625E-4 : f32
    %4 = vector.broadcast %cst_2 : f32 to vector<256x1xf32>
    %5 = arith.mulf %3, %4 : vector<256x1xf32>
    %6 = arith.mulf %1, %1 : vector<256x1024xf32>
    %cst_3 = arith.constant dense<0.000000e+00> : vector<256xf32>
    %7 = vector.multi_reduction <add>, %6, %cst_3 [1] : vector<256x1024xf32> to vector<256xf32>
    %8 = vector.shape_cast %7 : vector<256xf32> to vector<256x1xf32>
    %cst_4 = arith.constant 9.765625E-4 : f32
    %9 = vector.broadcast %cst_4 : f32 to vector<256x1xf32>
    %10 = arith.mulf %8, %9 : vector<256x1xf32>
    %11 = arith.mulf %5, %5 : vector<256x1xf32>
    %12 = arith.subf %10, %11 : vector<256x1xf32>
    %cst_5 = arith.constant 0.000000e+00 : f32
    %13 = vector.broadcast %cst_5 : f32 to vector<256x1xf32>
    %14 = arith.maximumf %12, %13 : vector<256x1xf32>
    %15 = vector.broadcast %5 : vector<256x1xf32> to vector<256x1024xf32>
    %16 = arith.subf %1, %15 : vector<256x1024xf32>
    %cst_6 = arith.constant 9.99999997E-7 : f32
    %17 = vector.broadcast %cst_6 : f32 to vector<256x1xf32>
    %18 = arith.addf %14, %17 : vector<256x1xf32>
    %19 = math.rsqrt %18 : vector<256x1xf32>
    %20 = vector.broadcast %19 : vector<256x1xf32> to vector<256x1024xf32>
    %21 = arith.mulf %16, %20 : vector<256x1024xf32>
    %22 = arith.truncf %21 : vector<256x1024xf32> to vector<256x1024xbf16>
    %c0_7 = arith.constant 0 : index
    %c0_8 = arith.constant 0 : index
    %c0_9 = arith.constant 0 : index
    %23 = vector.load %arg3[%c0_7, %c0_8, %c0_9] : memref<1x1024x64xbf16, #tpu.memory_space<vmem>>, vector<1x1024x64xbf16>
    %24 = vector.shape_cast %23 : vector<1x1024x64xbf16> to vector<1024x64xbf16>
    %cst_10 = arith.constant dense<0.000000e+00> : vector<256x64xf32>
    %25 = tpu.matmul %22, %24, %cst_10 {dimension_numbers = #tpu.dot_dimension_numbers<[1], [0], [0], [1], [0, 0, 1, 1], [], []>} : vector<256x1024xbf16>, vector<1024x64xbf16>, vector<256x64xf32> -> vector<256x64xf32>
    %c0_11 = arith.constant 0 : index
    %c0_12 = arith.constant 0 : index
    %c0_13 = arith.constant 0 : index
    %26 = vector.load %arg4[%c0_11, %c0_12, %c0_13] : memref<1x1x64xf32, #tpu.memory_space<vmem>>, vector<1x1x64xf32>
    %27 = vector.shape_cast %26 : vector<1x1x64xf32> to vector<1x64xf32>
    %28 = vector.broadcast %27 : vector<1x64xf32> to vector<256x64xf32>
    %29 = arith.addf %25, %28 : vector<256x64xf32>
    %c0_14 = arith.constant 0 : index
    %c0_15 = arith.constant 0 : index
    %c0_16 = arith.constant 0 : index
    %30 = vector.load %arg5[%c0_14, %c0_15, %c0_16] : memref<1x256x64xf32, #tpu.memory_space<vmem>>, vector<1x256x64xf32>
    %31 = vector.shape_cast %30 : vector<1x256x64xf32> to vector<256x64xf32>
    %32 = vector.shape_cast %29 : vector<256x64xf32> to vector<1x256x64xf32>
    tpu.vector_store %arg5[%c0_14, %c0_15, %c0_16], %32 {strides = array<i32>} : memref<1x256x64xf32, #tpu.memory_space<vmem>>, vector<1x256x64xf32>,
    return
  }
  func.func @transform_0(%arg0: i32, %arg1: i32) -> (i32, i32, i32) {
    %c0_i32 = arith.constant 0 : i32
    %c0_i32_0 = arith.constant 0 : i32
    return %arg0, %arg1, %c0_i32 : i32, i32, i32
  }
  func.func @transform_1(%arg0: i32, %arg1: i32) -> (i32, i32, i32) {
    %c0_i32 = arith.constant 0 : i32
    %c0_i32_0 = arith.constant 0 : i32
    %c0_i32_1 = arith.constant 0 : i32
    return %arg0, %c0_i32, %c0_i32_0 : i32, i32, i32
  }
  func.func @transform_2(%arg0: i32, %arg1: i32) -> (i32, i32, i32) {
    %c0_i32 = arith.constant 0 : i32
    %c0_i32_0 = arith.constant 0 : i32
    %c0_i32_1 = arith.constant 0 : i32
    return %arg0, %c0_i32, %c0_i32_0 : i32, i32, i32
  }
  func.func @transform_3(%arg0: i32, %arg1: i32) -> (i32, i32, i32) {
    %c0_i32 = arith.constant 0 : i32
    %c0_i32_0 = arith.constant 0 : i32
    return %arg0, %arg1, %c0_i32 : i32, i32, i32
  }
}

</mosaic_0001>

<bundles_post_ra>
// kernel: tpu_custom_call.1
= control target key start
LH: loop header
LB: loop body
LE: loop exit
PB: predicated region body
PF: predicated region fallthrough
CT: control target
= control target key end

     0   :  { %8 = vsyncpa [#allocation3], 0  ;;  %s6811_s0 = inlined_call_operand.hbm [shape: f32[2,256,1024], index: 0, kind: input, shape index: {}]   ;;  %s6812_s1 = inlined_call_operand.vmem [shape: bf16[2,1024,64], index: 1, kind: input, shape index: {}]   ;;  %s6813_s2 = inlined_call_operand.hbm [shape: f32[2,1,64], index: 2, kind: input, shape index: {}]   ;;  %s6814_s3 = inlined_call_operand.vmem [shape: f32[2,256,64], index: 3, kind: output, shape index: {}]  }
   0x1   :  { %10 = vsyncpa [#allocation3 + $0x1], 0 }
   0x2   :  { %11 = vsyncpa [#allocation5], 0 }
   0x3   :  { %13 = vsyncpa [#allocation5 + $0x1], 0  ;;  %s4668_s12 = smov 0   ;;  %s4670_s13 = smov 0  }
   0x4   :  { %s4672_s14 = smov 0   ;;  %s4674_s15 = smov 0  }
   0x5   :  { %s4676_s16 = smov 0   ;;  %s4678_s17 = smov 0  }
   0x6 LB: > { %s3550_s18 = sadd.s32 4294967295, %s4642_s17   ;;  %s31_s19 = sadd.s32 1, %s4638_s16  ;;  %s4642_s17 = sphi %s4678_s17, %s19_s17   ;;  %s4638_s16 = sphi %s4676_s16, %s6923_s16   ;;  %s4634_s15 = sphi %s4674_s15, %s6922_s15   ;;  %s4630_s14 = sphi %s4672_s14, %s6921_s14   ;;  %s4626_s13 = sphi %s4670_s13, %s6920_s13   ;;  %s4622_s12 = sphi %s4668_s12, %s6919_s12  }
   0x7   : > { %p33_p0 = scmp.ge.s32.totalorder %s31_s19, 2  ;;  %s40_s20 = sadd.s32 1, %s4630_s14 }
   0x8   : > { %p47_p1 = scmp.ne.s32.totalorder %s4630_s14, %s4626_s13  ;;  %p48_p2 = scmp.eq.s32.totalorder %s4642_s17, 0 }
   0x9   : > { %s6925_s19 = smov (%p33_p0, %s31_s19), 0  ;;  %p53_p4 = scmp.ne.s32.totalorder %s4626_s13, %s4622_s12 }
   0xa   : > { %p4704_p3 = por %p48_p2, %p47_p1  ;;  %s35_s22 = ssub.s32 %s4638_s16, %s6925_s19 }
   0xb   : > { %p54_p5 = scmp.eq.s32.totalorder %s3550_s18, 0  ;;  %p38_p6 = scmp.eq.s32.totalorder %s35_s22, 0 }
   0xc   : > { %p4093_p8 = scmp.lt.s32.totalorder %s4642_s17, 2  ;;  %s4720_s25 = sand.u32 1, %s4630_s14  }
   0xd   : > { %p4711_p7 = por %p54_p5, %p53_p4  ;;  %s3631_s26 = sshll.u32 %s4638_s16, 15 }
   0xe   : > { %s4717_s24 = scalar_select %p38_p6, %s4630_s14, %s40_s20  }
   0xf   : > { %s6863_s23 = scalar_select %p4711_p7, 1, 0 }
  0x10   : > { %s3554_s27 = sshll.u32 %s4720_s25, 11  ;;  %s4727_s30 = scalar_lea.hbm %s6811_s0, %s3631_s26 }
  0x11   : > { %s161_s4 = scalar_lea.vmem [#allocation2], %s3554_s27  ;;  %p4731_p9 = pnand %p4093_p8, %p4704_p3 }
  0x12   : > { %s171_s5 = sshll.u32 %s161_s4, 4  ;;  %s158_s7 = scalar_lea.sflag [#allocation3], %s4720_s25  ;;  %s4735_s5 = int_to_ptr.vmem [resolvable:$true] %s171_s5 }
  0x13   : > { %s4528_s8 = scalar_lea.hbm %s4727_s30, 32768  ;;  %p4530_p11 = pneg %p4731_p9 }
  0x14   : > { %p4529_p10 = scmp.ne.s32.totalorder %s4727_s30, %s4528_s8  ;;  %s4533_s11 = scalar_lea.hbm %s6811_s0, 65536 }
  0x15   : > { %p4534_p0 = scmp.lt.u32.totalorder %s4727_s30, %s6811_s0  ;;  %p4535_p1 = scmp.lt.u32.totalorder %s4533_s11, %s4528_s8 }
  0x16   : > { %p4531_p12 = pnand %p4530_p11, %p4529_p10  ;;  %p4537_p3 = scmp.lt.u32.totalorder %s4528_s8, %s4727_s30 }
  0x17   : > { %p4536_p2 = por %p4535_p1, %p4534_p0 }
  0x18   : > { %p4532_p13 = pneg %p4531_p12 }
  0x19   : > { %p4538_p4 = por %p4537_p3, %p4536_p2 }
  0x1b   : > { %p4539_p5 = pnand %p4538_p4, %p4532_p13 }
  0x1d   : > { %4542 = shalt.err (!%p4539_p5)
}
  0x1e   : > { %s4543_s20 = scalar_lea.vmem %s4735_s5, 32768  ;;  %s4644_s21 = smov [#allocation2]  }
  0x1f   : > { %p4544_p6 = scmp.ne.s32.totalorder %s4735_s5, %s4543_s20  ;;  %s4548_s22 = sshll.u32 %s4644_s21, 4  ;;  %s4549_s22 = int_to_ptr.vmem [resolvable:$false] %s4548_s22 }
  0x20   : > { %s4550_s26 = scalar_lea.vmem %s4549_s22, 65536  ;;  %p4551_p12 = scmp.lt.s32.totalorder %s4735_s5, %s4549_s22 }
  0x21   : > { %p4546_p8 = pnand %p4544_p6, %p4530_p11  ;;  %p4552_p0 = scmp.lt.s32.totalorder %s4550_s26, %s4543_s20 }
  0x23   : > { %p4547_p10 = pneg %p4546_p8  ;;  %p4553_p1 = por %p4552_p0, %p4551_p12 }
  0x25   : > { %p4554_p2 = pnand %p4553_p1, %p4547_p10 }
  0x27   : > { %4557 = shalt.err (!%p4554_p2)
}
  0x28   : > { %s4645_s27 = smov 1024   ;;  %s4646_s28 = smov 64  }
  0x29   : > { %4089 = dma.hbm_to_vmem [thread:$0]  (!%p4731_p9), %s4727_s30, 32768, %s4735_s5, %s158_s7, %s4645_s27, %s4645_s27, %s4646_s28  }
  0x2a   : > { %p3558_p13 = scmp.ge.s32.totalorder %s4642_s17, 1  ;;  %p204_p3 = scmp.lt.s32.totalorder %s4642_s17, 3 }
  0x2b   : > { %s3557_s4 = sshll.u32 %s4638_s16, 4  ;;  %s192_s11 = scalar_lea.vmem [#allocation4], %s4720_s25 }
  0x2c   : > { %p4767_p4 = pnand %p3558_p13, %p204_p3  ;;  %s4775_s10 = scalar_lea.hbm %s6813_s2, %s3557_s4 }
  0x2d   : > { %s199_s12 = sshll.u32 %s192_s11, 4  ;;  %s190_s30 = scalar_lea.sflag [#allocation5], %s4720_s25  ;;  %s200_s12 = int_to_ptr.vmem [resolvable:$true] %s199_s12 }
  0x2e   : > { %s6865_s29 = scalar_select %p4767_p4, 1, 0 }
  0x2f   : > { %s4558_s5 = scalar_lea.hbm %s4775_s10, 16  ;;  %s4563_s20 = scalar_lea.hbm %s6813_s2, 32 }
  0x30   : > { %p4559_p5 = scmp.ne.s32.totalorder %s4775_s10, %s4558_s5  ;;  %p4564_p10 = scmp.lt.u32.totalorder %s4775_s10, %s6813_s2 }
  0x31   : > { %p4565_p12 = scmp.lt.u32.totalorder %s4563_s20, %s4558_s5  ;;  %p4567_p1 = scmp.lt.u32.totalorder %s4558_s5, %s4775_s10 }
  0x32   : > { %p4561_p6 = pnand %p4559_p5, %p4530_p11 }
  0x33   : > { %p4566_p0 = por %p4565_p12, %p4564_p10 }
  0x34   : > { %p4562_p8 = pneg %p4561_p6 }
  0x35   : > { %p4568_p2 = por %p4567_p1, %p4566_p0 }
  0x37   : > { %p4569_p13 = pnand %p4568_p2, %p4562_p8 }
  0x39   : > { %4572 = shalt.err (!%p4569_p13)
}
  0x3a   : > { %s4573_s25 = scalar_lea.vmem %s200_s12, 16  ;;  %s4647_s26 = smov [#allocation4]  }
  0x3b   : > { %p4574_p3 = scmp.ne.s32.totalorder %s200_s12, %s4573_s25  ;;  %s4578_s27 = sshll.u32 %s4647_s26, 4  ;;  %s4579_s27 = int_to_ptr.vmem [resolvable:$false] %s4578_s27 }
  0x3c   : > { %s4580_s28 = scalar_lea.vmem %s4579_s27, 32  ;;  %p4581_p7 = scmp.lt.s32.totalorder %s200_s12, %s4579_s27 }
  0x3d   : > { %p4576_p5 = pnand %p4574_p3, %p4530_p11  ;;  %p4582_p4 = scmp.lt.s32.totalorder %s4580_s28, %s4573_s25 }
  0x3f   : > { %p4577_p6 = pneg %p4576_p5  ;;  %p4583_p10 = por %p4582_p4, %p4581_p7 }
  0x41   : > { %p4584_p12 = pnand %p4583_p10, %p4577_p6 }
  0x43   : > { %4587 = shalt.err (!%p4584_p12)
}
  0x44   : > { %4092 = dma.hbm_to_vmem [thread:$0]  (!%p4731_p9), %s4775_s10, 16, %s200_s12, %s190_s30  }
  0x45   : > { %p6866_p8 = scmp.ne.s32.totalorder %s6865_s29, 0 }
  0x47   : > { %208 = sbr.rel (%p6866_p8) target bundleno = 790 (0x316), region = 32 }
  0x4e   : > { %s4801_s4 = sand.u32 1, %s4626_s13   ;;  %p6867_p7 = scmp.ne.s32.totalorder %s6863_s23, 0 }
  0x4f   : > { %s3559_s8 = sshll.u32 %s4801_s4, 11  ;;  %s211_s9 = scalar_lea.sflag [#allocation3], %s4801_s4 }
  0x50   : > { %s4805_s11 = scalar_lea.vmem [#allocation2], %s3559_s8 }
  0x51   : > { %4613 = dma.done.wait (%p6867_p7), %s211_s9, 32768  }
  0x52   : > { %4615 = vsyncadd (%p6867_p7), %s211_s9, 4294934528  ;;  %s220_s6 = scalar_lea.sflag [#allocation5], %s4801_s4  ;;  %s222_s29 = scalar_lea.vmem [#allocation4], %s4801_s4 }
  0x53   : > { %4617 = dma.done.wait (%p6867_p7), %s220_s6, 16  }
  0x54   : > { %4619 = vsyncadd (%p6867_p7), %s220_s6, 4294967280  ;;  %v275_v0 = vld [vmem:[%s4805_s11] sm:$0xff]  ;;  %v276_v1 = vld [vmem:[%s4805_s11 + $0x8] sm:$0xff]  ;;  %p259_p9 = scmp.lt.s32.totalorder %s4634_s15, 1  ;;  %vm3390_vm0 = vcmask 523264  }
  0x55   : > { %v277_v2 = vld [vmem:[%s4805_s11 + $0x10] sm:$0xff]  ;;  %v278_v3 = vld [vmem:[%s4805_s11 + $0x18] sm:$0xff]  ;;  %v279_v4 = vld [vmem:[%s4805_s11 + $0x20] sm:$0xff]  ;;  %v531_v6 = vadd.f32 %v276_v1, %v275_v0  ;;  %v851_v7 = vmul.f32 %v275_v0, %v275_v0  ;;  %v852_v8 = vmul.f32 %v276_v1, %v276_v1 }
  0x56   : > { %v280_v5 = vld [vmem:[%s4805_s11 + $0x28] sm:$0xff]  ;;  %v853_v9 = vmul.f32 %v277_v2, %v277_v2  ;;  %v281_v10 = vld [vmem:[%s4805_s11 + $0x30] sm:$0xff]  ;;  %v4825_v11 = vld [vmem:[%s4805_s11 + $0x38] sm:$0xff]  ;;  %v854_v12 = vmul.f32 %v278_v3, %v278_v3  ;;  %v855_v13 = vmul.f32 %v279_v4, %v279_v4  ;;  %s6927_s15 = smov (!%p259_p9, %s4634_s15), 1 }
  0x57   : > { %v856_v14 = vmul.f32 %v280_v5, %v280_v5  ;;  %v283_v15 = vld [vmem:[%s4805_s11 + $0x40] sm:$0xff]  ;;  %v532_v16 = vadd.f32 %v531_v6, %v277_v2  ;;  %v857_v17 = vmul.f32 %v281_v10, %v281_v10  ;;  %v4830_v18 = vmul.f32 %v4825_v11, %v4825_v11  ;;  %v284_v20 = vld [vmem:[%s4805_s11 + $0x48] sm:$0xff]  ;;  %v285_v21 = vld [vmem:[%s4805_s11 + $0x50] sm:$0xff]  ;;  %s3632_s23 = sshll.u32 %s6927_s15, 9  ;;  %s3633_s5 = sshll.u32 %s6927_s15, 8 }
  0x58   : > { %v1107_v19 = vadd.f32 %v852_v8, %v851_v7  ;;  %v286_v22 = vld [vmem:[%s4805_s11 + $0x58] sm:$0xff]  ;;  %v287_v23 = vld [vmem:[%s4805_s11 + $0x60] sm:$0xff]  ;;  %v288_v24 = vld [vmem:[%s4805_s11 + $0x68] sm:$0xff]  ;;  %v540_v26 = vadd.f32 %v284_v20, %v283_v15  ;;  %v859_v27 = vmul.f32 %v283_v15, %v283_v15  ;;  %v860_v28 = vmul.f32 %v284_v20, %v284_v20  ;;  %s5026_s30 = scalar_lea.vmem %s6812_s1, %s3632_s23  ;;  %s6696_s20 = scalar_lea.vmem %s6814_s3, %s3633_s5 }
  0x59   : > { %v289_v25 = vld [vmem:[%s4805_s11 + $0x70] sm:$0xff]  ;;  %v861_v29 = vmul.f32 %v285_v21, %v285_v21  ;;  %v533_v30 = vadd.f32 %v532_v16, %v278_v3  ;;  %v290_v32 = vld [vmem:[%s4805_s11 + $0x78] sm:$0xff]  ;;  %v862_v33 = vmul.f32 %v286_v22, %v286_v22  ;;  %v863_v34 = vmul.f32 %v287_v23, %v287_v23  ;;  %v291_v35 = vld [vmem:[%s4805_s11 + $0x80] sm:$0xff] }
  0x5a   : > { %v1108_v31 = vadd.f32 %v1107_v19, %v853_v9  ;;  %v292_v36 = vld [vmem:[%s4805_s11 + $0x88] sm:$0xff]  ;;  %v541_v37 = vadd.f32 %v540_v26, %v285_v21  ;;  %v864_v38 = vmul.f32 %v288_v24, %v288_v24  ;;  %v865_v39 = vmul.f32 %v289_v25, %v289_v25  ;;  %v293_v41 = vld [vmem:[%s4805_s11 + $0x90] sm:$0xff]  ;;  %v294_v47 = vld [vmem:[%s4805_s11 + $0x98] sm:$0xff] }
  0x5b   : > { %v4841_v40 = vmul.f32 %v290_v32, %v290_v32  ;;  %v534_v42 = vadd.f32 %v533_v30, %v279_v4  ;;  %v1116_v44 = vadd.f32 %v860_v28, %v859_v27  ;;  %v549_v45 = vadd.f32 %v292_v36, %v291_v35  ;;  %v299_v48 = vld [vmem:[%s4805_s11 + $0xc0] sm:$0xff]  ;;  %v300_v49 = vld [vmem:[%s4805_s11 + $0xc8] sm:$0xff]  ;;  %v301_v58 = vld [vmem:[%s4805_s11 + $0xd0] sm:$0xff] }
  0x5c   : > { %v1109_v43 = vadd.f32 %v1108_v31, %v854_v12  ;;  %v542_v46 = vadd.f32 %v541_v37, %v286_v22  ;;  %v867_v50 = vmul.f32 %v291_v35, %v291_v35  ;;  %v868_v51 = vmul.f32 %v292_v36, %v292_v36  ;;  %v295_v56 = vld [vmem:[%s4805_s11 + $0xa0] sm:$0xff]  ;;  %v296_v2 = vld [vmem:[%s4805_s11 + $0xa8] sm:$0xff]  ;;  %v297_v3 = vld [vmem:[%s4805_s11 + $0xb0] sm:$0xff] }
  0x5d   : > { %v869_v52 = vmul.f32 %v293_v41, %v293_v41  ;;  %v535_v53 = vadd.f32 %v534_v42, %v280_v5  ;;  %v1117_v55 = vadd.f32 %v1116_v44, %v861_v29  ;;  %v550_v57 = vadd.f32 %v549_v45, %v293_v41  ;;  %v302_v6 = vld [vmem:[%s4805_s11 + $0xd8] sm:$0xff]  ;;  %v308_v36 = vld [vmem:[%s4805_s11 + $0x108] sm:$0xff] }
  0x5e   : > { %v1110_v54 = vadd.f32 %v1109_v43, %v855_v13  ;;  %v543_v59 = vadd.f32 %v542_v46, %v287_v23  ;;  %v558_v60 = vadd.f32 %v300_v49, %v299_v48  ;;  %v870_v61 = vmul.f32 %v294_v47, %v294_v47  ;;  %v298_v16 = vld [vmem:[%s4805_s11 + $0xb8] sm:$0xff]  ;;  %v315_v43 = vld [vmem:[%s4805_s11 + $0x140] sm:$0xff]  ;;  %v316_v44 = vld [vmem:[%s4805_s11 + $0x148] sm:$0xff] }
  0x5f   : > { %v871_v62 = vmul.f32 %v295_v56, %v295_v56  ;;  %v536_v63 = vadd.f32 %v535_v53, %v281_v10  ;;  %v1118_v1 = vadd.f32 %v1117_v55, %v862_v33  ;;  %v551_v4 = vadd.f32 %v550_v57, %v294_v47  ;;  %v303_v10 = vld [vmem:[%s4805_s11 + $0xe0] sm:$0xff]  ;;  %v305_v33 = vld [vmem:[%s4805_s11 + $0xf0] sm:$0xff]  ;;  %v306_v37 = vld [vmem:[%s4805_s11 + $0xf8] sm:$0xff] }
  0x60   : > { %v1111_v0 = vadd.f32 %v1110_v54, %v856_v14  ;;  %v544_v5 = vadd.f32 %v543_v59, %v288_v24  ;;  %v559_v7 = vadd.f32 %v558_v60, %v301_v58  ;;  %v872_v8 = vmul.f32 %v296_v2, %v296_v2  ;;  %v317_v53 = vld [vmem:[%s4805_s11 + $0x150] sm:$0xff]  ;;  %v310_v54 = vld [vmem:[%s4805_s11 + $0x118] sm:$0xff] }
  0x61   : > { %v4852_v9 = vmul.f32 %v297_v3, %v297_v3  ;;  %v537_v12 = vadd.f32 %v536_v63, %v4825_v11  ;;  %v1119_v15 = vadd.f32 %v1118_v1, %v863_v34  ;;  %v552_v19 = vadd.f32 %v551_v4, %v295_v56  ;;  %v304_v11 = vld [vmem:[%s4805_s11 + $0xe8] sm:$0xff]  ;;  %v313_v1 = vld [vmem:[%s4805_s11 + $0x130] sm:$0xff] }
  0x62   : > { %v1112_v13 = vadd.f32 %v1111_v0, %v857_v17  ;;  %v545_v20 = vadd.f32 %v544_v5, %v289_v25  ;;  %v560_v14 = vadd.f32 %v559_v7, %v302_v6  ;;  %v4857_v21 = vmul.f32 %v298_v16, %v298_v16  ;;  %v312_v63 = vld [vmem:[%s4805_s11 + $0x128] sm:$0xff] }
  0x63   : > { %v1125_v22 = vadd.f32 %v868_v51, %v867_v50  ;;  %538 = vadd.xlane.f32.xlu0 %v537_v12  ;;  %v1120_v24 = vadd.f32 %v1119_v15, %v864_v38  ;;  %v553_v26 = vadd.f32 %v552_v19, %v296_v2  ;;  %v875_v17 = vmul.f32 %v299_v48, %v299_v48  ;;  %v309_v48 = vld [vmem:[%s4805_s11 + $0x110] sm:$0xff]  ;;  %v314_v12 = vld [vmem:[%s4805_s11 + $0x138] sm:$0xff] }
  0x64   : > { %v1113_v23 = vadd.f32 %v1112_v13, %v4830_v18  ;;  %v546_v27 = vadd.f32 %v545_v20, %v290_v32  ;;  %v561_v28 = vadd.f32 %v560_v14, %v303_v10  ;;  %v876_v25 = vmul.f32 %v300_v49, %v300_v49  ;;  %v307_v18 = vld [vmem:[%s4805_s11 + $0x100] sm:$0xff] }
  0x65   : > { %v1126_v29 = vadd.f32 %v1125_v22, %v869_v52  ;;  %v1121_v30 = vadd.f32 %v1120_v24, %v865_v39  ;;  %v554_v31 = vadd.f32 %v553_v26, %v297_v3  ;;  %v877_v34 = vmul.f32 %v301_v58, %v301_v58  ;;  %v321_v26 = vld [vmem:[%s4805_s11 + $0x170] sm:$0xff] }
  0x66   : > { %1114 = vadd.xlane.f32.xlu1 %v1113_v23  ;;  %v878_v35 = vmul.f32 %v302_v6, %v302_v6  ;;  %v562_v38 = vadd.f32 %v561_v28, %v304_v11  ;;  %v879_v42 = vmul.f32 %v303_v10, %v303_v10  ;;  %v880_v32 = vmul.f32 %v304_v11, %v304_v11 }
  0x67   : > { %v1127_v41 = vadd.f32 %v1126_v29, %v870_v61  ;;  %547 = vadd.xlane.f32.xlu0 %v546_v27  ;;  %v1122_v45 = vadd.f32 %v1121_v30, %v4841_v40  ;;  %v555_v39 = vadd.f32 %v554_v31, %v298_v16  ;;  %v4868_v46 = vmul.f32 %v305_v33, %v305_v33  ;;  %v311_v61 = vld [vmem:[%s4805_s11 + $0x120] sm:$0xff] }
  0x68   : > { %v4870_v47 = vmul.f32 %v306_v37, %v306_v37  ;;  %v563_v49 = vadd.f32 %v562_v38, %v305_v33  ;;  %v1134_v51 = vadd.f32 %v876_v25, %v875_v17  ;;  %v567_v52 = vadd.f32 %v308_v36, %v307_v18  ;;  %v323_v29 = vld [vmem:[%s4805_s11 + $0x180] sm:$0xff]  ;;  %v324_v25 = vld [vmem:[%s4805_s11 + $0x188] sm:$0xff]  ;;  %v322_v33 = vld [vmem:[%s4805_s11 + $0x178] sm:$0xff] }
  0x69   : > { %v1128_v50 = vadd.f32 %v1127_v41, %v871_v62  ;;  %v576_v55 = vadd.f32 %v316_v44, %v315_v43  ;;  %v883_v56 = vmul.f32 %v307_v18, %v307_v18  ;;  %v884_v40 = vmul.f32 %v308_v36, %v308_v36  ;;  %v318_v62 = vld [vmem:[%s4805_s11 + $0x158] sm:$0xff]  ;;  %v332_v18 = vld [vmem:[%s4805_s11 + $0x1c8] sm:$0xff] }
  0x6a   : > { %1123 = vadd.xlane.f32.xlu1 %v1122_v45  ;;  %v885_v57 = vmul.f32 %v309_v48, %v309_v48  ;;  %v564_v58 = vadd.f32 %v563_v49, %v306_v37  ;;  %v1135_v60 = vadd.f32 %v1134_v51, %v877_v34  ;;  %v568_v0 = vadd.f32 %v567_v52, %v309_v48 }
  0x6b   : > { %v1129_v59 = vadd.f32 %v1128_v50, %v872_v8  ;;  %556 = vadd.xlane.f32.xlu0 %v555_v39  ;;  %v577_v2 = vadd.f32 %v576_v55, %v317_v53  ;;  %v886_v3 = vmul.f32 %v310_v54, %v310_v54  ;;  %v887_v4 = vmul.f32 %v311_v61, %v311_v61  ;;  %v319_v8 = vld [vmem:[%s4805_s11 + $0x160] sm:$0xff]  ;;  %v333_v39 = vld [vmem:[%s4805_s11 + $0x1d0] sm:$0xff]  ;;  %v326_v50 = vld [vmem:[%s4805_s11 + $0x198] sm:$0xff] }
  0x6c   : > { %v888_v6 = vmul.f32 %v312_v63, %v312_v63  ;;  %v1136_v7 = vadd.f32 %v1135_v60, %v878_v35  ;;  %v569_v13 = vadd.f32 %v568_v0, %v310_v54  ;;  %v889_v15 = vmul.f32 %v313_v1, %v313_v1  ;;  %v331_v35 = vld [vmem:[%s4805_s11 + $0x1c0] sm:$0xff] }
  0x6d   : > { %v1130_v5 = vadd.f32 %v1129_v59, %v4852_v9  ;;  %v578_v16 = vadd.f32 %v577_v2, %v318_v62  ;;  %v4882_v19 = vmul.f32 %v314_v12, %v314_v12  ;;  %v1143_v10 = vadd.f32 %v884_v40, %v883_v56  ;;  %v320_v9 = vld [vmem:[%s4805_s11 + $0x168] sm:$0xff]  ;;  %v334_v40 = vld [vmem:[%s4805_s11 + $0x1d8] sm:$0xff]  ;;  %v335_v0 = vld [vmem:[%s4805_s11 + $0x1e0] sm:$0xff] }
  0x6e   : > { %565 = vadd.xlane.f32.xlu1 %v564_v58  ;;  %v891_v20 = vmul.f32 %v315_v43, %v315_v43  ;;  %v1137_v22 = vadd.f32 %v1136_v7, %v879_v42  ;;  %v570_v23 = vadd.f32 %v569_v13, %v311_v61  ;;  %v892_v24 = vmul.f32 %v316_v44, %v316_v44  ;;  %v325_v42 = vld [vmem:[%s4805_s11 + $0x190] sm:$0xff]  ;;  %v327_v58 = vld [vmem:[%s4805_s11 + $0x1a0] sm:$0xff]  ;;  %v336_v13 = vld [vmem:[%s4805_s11 + $0x1e8] sm:$0xff] }
  0x6f   : > { %v1131_v14 = vadd.f32 %v1130_v5, %v4857_v21  ;;  %v579_v11 = vadd.f32 %v578_v16, %v319_v8  ;;  %v1144_v17 = vadd.f32 %v1143_v10, %v885_v57  ;;  %v893_v27 = vmul.f32 %v317_v53, %v317_v53  ;;  %v329_v2 = vld [vmem:[%s4805_s11 + $0x1b0] sm:$0xff] }
  0x70   : > { %v894_v28 = vmul.f32 %v318_v62, %v318_v62  ;;  %v1138_v30 = vadd.f32 %v1137_v22, %v880_v32  ;;  %v571_v31 = vadd.f32 %v570_v23, %v312_v63  ;;  %v895_v21 = vmul.f32 %v319_v8, %v319_v8 }
  0x71   : > { %1132 = vadd.xlane.f32.xlu0 %v1131_v14  ;;  %v896_v34 = vmul.f32 %v320_v9, %v320_v9  ;;  %v580_v36 = vadd.f32 %v579_v11, %v320_v9  ;;  %v1145_v37 = vadd.f32 %v1144_v17, %v886_v3  ;;  %v897_v38 = vmul.f32 %v321_v26, %v321_v26  ;;  %v337_v9 = vld [vmem:[%s4805_s11 + $0x1f0] sm:$0xff] }
  0x72   : > { %v4892_v41 = vmul.f32 %v322_v33, %v322_v33  ;;  %v1139_v43 = vadd.f32 %v1138_v30, %v4868_v46  ;;  %v572_v44 = vadd.f32 %v571_v31, %v313_v1  ;;  %v1152_v32 = vadd.f32 %v892_v24, %v891_v20  ;;  %v328_v1 = vld [vmem:[%s4805_s11 + $0x1a8] sm:$0xff]  ;;  %v338_v31 = vld [vmem:[%s4805_s11 + $0x1f8] sm:$0xff] }
  0x73   : > { %v585_v45 = vadd.f32 %v324_v25, %v323_v29  ;;  %v581_v48 = vadd.f32 %v580_v36, %v321_v26  ;;  %v1146_v49 = vadd.f32 %v1145_v37, %v887_v4  ;;  %v594_v51 = vadd.f32 %v332_v18, %v331_v35  ;;  %v348_v36 = vld [vmem:[%s4805_s11 + $0x248] sm:$0xff] }
  0x74   : > { %v899_v52 = vmul.f32 %v323_v29, %v323_v29  ;;  %v1140_v53 = vadd.f32 %v1139_v43, %v4870_v47  ;;  %v573_v54 = vadd.f32 %v572_v44, %v314_v12  ;;  %v1153_v55 = vadd.f32 %v1152_v32, %v893_v27  ;;  %v340_v29 = vld [vmem:[%s4805_s11 + $0x208] sm:$0xff]  ;;  %v341_v43 = vld [vmem:[%s4805_s11 + $0x210] sm:$0xff] }
  0x75   : > { %v586_v56 = vadd.f32 %v585_v45, %v325_v42  ;;  %v582_v46 = vadd.f32 %v581_v48, %v322_v33  ;;  %v1147_v57 = vadd.f32 %v1146_v49, %v888_v6  ;;  %v595_v59 = vadd.f32 %v594_v51, %v333_v39  ;;  %v330_v6 = vld [vmem:[%s4805_s11 + $0x1b8] sm:$0xff] }
  0x76   : > { %v900_v60 = vmul.f32 %v324_v25, %v324_v25  ;;  %1141 = vadd.xlane.f32.xlu1 %v1140_v53  ;;  %574 = vadd.xlane.f32.xlu0 %v573_v54  ;;  %v1154_v61 = vadd.f32 %v1153_v55, %v894_v28  ;;  %v901_v62 = vmul.f32 %v325_v42, %v325_v42  ;;  %v339_v28 = vld [vmem:[%s4805_s11 + $0x200] sm:$0xff]  ;;  %v350_v55 = vld [vmem:[%s4805_s11 + $0x258] sm:$0xff] }
  0x77   : > { %v587_v63 = vadd.f32 %v586_v56, %v326_v50  ;;  %v1148_v47 = vadd.f32 %v1147_v57, %v889_v15  ;;  %v596_v3 = vadd.f32 %v595_v59, %v334_v40  ;;  %v902_v4 = vmul.f32 %v326_v50, %v326_v50  ;;  %v342_v50 = vld [vmem:[%s4805_s11 + $0x218] sm:$0xff] }
  0x78   : > { %v903_v5 = vmul.f32 %v327_v58, %v327_v58  ;;  %v1155_v7 = vadd.f32 %v1154_v61, %v895_v21  ;;  %v904_v8 = vmul.f32 %v328_v1, %v328_v1  ;;  %v905_v16 = vmul.f32 %v329_v2, %v329_v2  ;;  %v345_v61 = vld [vmem:[%s4805_s11 + $0x230] sm:$0xff] }
  0x79   : > { %v588_v12 = vadd.f32 %v587_v63, %v327_v58  ;;  %v1149_v10 = vadd.f32 %v1148_v47, %v4882_v19  ;;  %v597_v20 = vadd.f32 %v596_v3, %v335_v0  ;;  %v4907_v14 = vmul.f32 %v330_v6, %v330_v6  ;;  %v346_v63 = vld [vmem:[%s4805_s11 + $0x238] sm:$0xff] }
  0x7a   : > { %v1161_v15 = vadd.f32 %v900_v60, %v899_v52  ;;  %583 = vadd.xlane.f32.xlu1 %v582_v46  ;;  %v1156_v22 = vadd.f32 %v1155_v7, %v896_v34  ;;  %v907_v24 = vmul.f32 %v331_v35, %v331_v35  ;;  %v908_v26 = vmul.f32 %v332_v18, %v332_v18  ;;  %v347_v34 = vld [vmem:[%s4805_s11 + $0x240] sm:$0xff]  ;;  %v344_v46 = vld [vmem:[%s4805_s11 + $0x228] sm:$0xff] }
  0x7b   : > { %v589_v23 = vadd.f32 %v588_v12, %v328_v1  ;;  %1150 = vadd.xlane.f32.xlu0 %v1149_v10  ;;  %v598_v11 = vadd.f32 %v597_v20, %v336_v13  ;;  %v909_v27 = vmul.f32 %v333_v39, %v333_v39  ;;  %v910_v19 = vmul.f32 %v334_v40, %v334_v40  ;;  %v349_v39 = vld [vmem:[%s4805_s11 + $0x250] sm:$0xff]  ;;  %v343_v40 = vld [vmem:[%s4805_s11 + $0x220] sm:$0xff]  ;;  %v352_v12 = vld [vmem:[%s4805_s11 + $0x268] sm:$0xff] }
  0x7c   : > { %v1162_v17 = vadd.f32 %v1161_v15, %v901_v62  ;;  %v1157_v25 = vadd.f32 %v1156_v22, %v897_v38  ;;  %v911_v33 = vmul.f32 %v335_v0, %v335_v0  ;;  %v912_v21 = vmul.f32 %v336_v13, %v336_v13  ;;  %v351_v62 = vld [vmem:[%s4805_s11 + $0x260] sm:$0xff]  ;;  %v353_v20 = vld [vmem:[%s4805_s11 + $0x270] sm:$0xff] }
  0x7d   : > { %v590_v30 = vadd.f32 %v589_v23, %v329_v2  ;;  %v599_v37 = vadd.f32 %v598_v11, %v337_v9  ;;  %v913_v18 = vmul.f32 %v337_v9, %v337_v9  ;;  %v4915_v42 = vmul.f32 %v338_v31, %v338_v31  ;;  %v355_v23 = vld [vmem:[%s4805_s11 + $0x280] sm:$0xff] }
  0x7e   : > { %v1163_v35 = vadd.f32 %v1162_v17, %v902_v4  ;;  %v1158_v44 = vadd.f32 %v1157_v25, %v4892_v41  ;;  %v1170_v38 = vadd.f32 %v908_v26, %v907_v24  ;;  %v603_v45 = vadd.f32 %v340_v29, %v339_v28  ;;  %v356_v17 = vld [vmem:[%s4805_s11 + $0x288] sm:$0xff] }
  0x7f   : > { %v591_v32 = vadd.f32 %v590_v30, %v330_v6  ;;  %v600_v48 = vadd.f32 %v599_v37, %v338_v31  ;;  %v612_v51 = vadd.f32 %v348_v36, %v347_v34  ;;  %v915_v52 = vmul.f32 %v339_v28, %v339_v28  ;;  %v354_v28 = vld [vmem:[%s4805_s11 + $0x278] sm:$0xff]  ;;  %v365_v37 = vld [vmem:[%s4805_s11 + $0x2d0] sm:$0xff] }
  0x80   : > { %v1164_v49 = vadd.f32 %v1163_v35, %v903_v5  ;;  %1159 = vadd.xlane.f32.xlu1 %v1158_v44  ;;  %v1171_v53 = vadd.f32 %v1170_v38, %v909_v27  ;;  %v604_v54 = vadd.f32 %v603_v45, %v341_v43  ;;  %v916_v41 = vmul.f32 %v340_v29, %v340_v29  ;;  %v363_v27 = vld [vmem:[%s4805_s11 + $0x2c0] sm:$0xff] }
  0x81   : > { %592 = vadd.xlane.f32.xlu0 %v591_v32  ;;  %v613_v57 = vadd.f32 %v612_v51, %v349_v39  ;;  %v917_v58 = vmul.f32 %v341_v43, %v341_v43  ;;  %v918_v59 = vmul.f32 %v342_v50, %v342_v50  ;;  %v919_v47 = vmul.f32 %v343_v40, %v343_v40 }
  0x82   : > { %v1165_v56 = vadd.f32 %v1164_v49, %v904_v8  ;;  %v1172_v60 = vadd.f32 %v1171_v53, %v910_v19  ;;  %v605_v0 = vadd.f32 %v604_v54, %v342_v50  ;;  %v920_v1 = vmul.f32 %v344_v46, %v344_v46  ;;  %v364_v19 = vld [vmem:[%s4805_s11 + $0x2c8] sm:$0xff] }
  0x83   : > { %v614_v3 = vadd.f32 %v613_v57, %v350_v55  ;;  %v921_v4 = vmul.f32 %v345_v61, %v345_v61  ;;  %v4927_v5 = vmul.f32 %v346_v63, %v346_v63  ;;  %v1179_v13 = vadd.f32 %v916_v41, %v915_v52  ;;  %v367_v41 = vld [vmem:[%s4805_s11 + $0x2e0] sm:$0xff]  ;;  %v361_v57 = vld [vmem:[%s4805_s11 + $0x2b0] sm:$0xff] }
  0x84   : > { %v1166_v2 = vadd.f32 %v1165_v56, %v905_v16  ;;  %601 = vadd.xlane.f32.xlu1 %v600_v48  ;;  %v1173_v7 = vadd.f32 %v1172_v60, %v911_v33  ;;  %v606_v6 = vadd.f32 %v605_v0, %v343_v40  ;;  %v923_v8 = vmul.f32 %v347_v34, %v347_v34  ;;  %v358_v48 = vld [vmem:[%s4805_s11 + $0x298] sm:$0xff]  ;;  %v368_v0 = vld [vmem:[%s4805_s11 + $0x2e8] sm:$0xff] }
  0x85   : > { %v615_v15 = vadd.f32 %v614_v3, %v351_v62  ;;  %v924_v22 = vmul.f32 %v348_v36, %v348_v36  ;;  %v925_v16 = vmul.f32 %v349_v39, %v349_v39  ;;  %v1180_v26 = vadd.f32 %v1179_v13, %v917_v58  ;;  %v357_v36 = vld [vmem:[%s4805_s11 + $0x290] sm:$0xff] }
  0x86   : > { %v1167_v10 = vadd.f32 %v1166_v2, %v4907_v14  ;;  %v1174_v9 = vadd.f32 %v1173_v7, %v912_v21  ;;  %v607_v24 = vadd.f32 %v606_v6, %v344_v46  ;;  %v926_v11 = vmul.f32 %v350_v55, %v350_v55  ;;  %v359_v55 = vld [vmem:[%s4805_s11 + $0x2a0] sm:$0xff]  ;;  %v360_v46 = vld [vmem:[%s4805_s11 + $0x2a8] sm:$0xff]  ;;  %v369_v13 = vld [vmem:[%s4805_s11 + $0x2f0] sm:$0xff] }
  0x87   : > { %v616_v29 = vadd.f32 %v615_v15, %v352_v12  ;;  %v927_v25 = vmul.f32 %v351_v62, %v351_v62  ;;  %v928_v14 = vmul.f32 %v352_v12, %v352_v12  ;;  %v4937_v30 = vmul.f32 %v353_v20, %v353_v20 }
  0x88   : > { %1168 = vadd.xlane.f32.xlu0 %v1167_v10  ;;  %v1175_v31 = vadd.f32 %v1174_v9, %v913_v18  ;;  %v608_v33 = vadd.f32 %v607_v24, %v345_v61  ;;  %v1181_v21 = vadd.f32 %v1180_v26, %v918_v59  ;;  %v4939_v34 = vmul.f32 %v354_v28, %v354_v28  ;;  %v366_v18 = vld [vmem:[%s4805_s11 + $0x2d8] sm:$0xff]  ;;  %v372_v9 = vld [vmem:[%s4805_s11 + $0x308] sm:$0xff] }
  0x89   : > { %v617_v35 = vadd.f32 %v616_v29, %v353_v20  ;;  %v1188_v43 = vadd.f32 %v924_v22, %v923_v8  ;;  %v621_v44 = vadd.f32 %v356_v17, %v355_v23  ;;  %v630_v32 = vadd.f32 %v364_v19, %v363_v27  ;;  %v370_v24 = vld [vmem:[%s4805_s11 + $0x2f8] sm:$0xff]  ;;  %v380_v29 = vld [vmem:[%s4805_s11 + $0x348] sm:$0xff] }
  0x8a   : > { %v1176_v38 = vadd.f32 %v1175_v31, %v4915_v42  ;;  %v609_v45 = vadd.f32 %v608_v33, %v346_v63  ;;  %v1182_v39 = vadd.f32 %v1181_v21, %v919_v47  ;;  %v931_v49 = vmul.f32 %v355_v23, %v355_v23  ;;  %v362_v63 = vld [vmem:[%s4805_s11 + $0x2b8] sm:$0xff]  ;;  %v371_v23 = vld [vmem:[%s4805_s11 + $0x300] sm:$0xff]  ;;  %v373_v31 = vld [vmem:[%s4805_s11 + $0x310] sm:$0xff] }
  0x8b   : > { %v618_v50 = vadd.f32 %v617_v35, %v354_v28  ;;  %v1189_v51 = vadd.f32 %v1188_v43, %v925_v16  ;;  %v622_v52 = vadd.f32 %v621_v44, %v357_v36  ;;  %v631_v53 = vadd.f32 %v630_v32, %v365_v37  ;;  %v379_v28 = vld [vmem:[%s4805_s11 + $0x340] sm:$0xff]  ;;  %v381_v35 = vld [vmem:[%s4805_s11 + $0x350] sm:$0xff] }
  0x8c   : > { %1177 = vadd.xlane.f32.xlu1 %v1176_v38  ;;  %610 = vadd.xlane.f32.xlu0 %v609_v45  ;;  %v1183_v54 = vadd.f32 %v1182_v39, %v920_v1  ;;  %v932_v56 = vmul.f32 %v356_v17, %v356_v17  ;;  %v933_v42 = vmul.f32 %v357_v36, %v357_v36  ;;  %v374_v38 = vld [vmem:[%s4805_s11 + $0x318] sm:$0xff] }
  0x8d   : > { %v1190_v40 = vadd.f32 %v1189_v51, %v926_v11  ;;  %v623_v58 = vadd.f32 %v622_v52, %v358_v48  ;;  %v632_v59 = vadd.f32 %v631_v53, %v366_v18  ;;  %v934_v60 = vmul.f32 %v358_v48, %v358_v48 }
  0x8e   : > { %v1184_v61 = vadd.f32 %v1183_v54, %v921_v4  ;;  %v935_v62 = vmul.f32 %v359_v55, %v359_v55  ;;  %v936_v47 = vmul.f32 %v360_v46, %v360_v46  ;;  %v4952_v2 = vmul.f32 %v361_v57, %v361_v57 }
  0x8f   : > { %v1191_v1 = vadd.f32 %v1190_v40, %v927_v25  ;;  %v624_v3 = vadd.f32 %v623_v58, %v359_v55  ;;  %v633_v7 = vadd.f32 %v632_v59, %v367_v41  ;;  %v4954_v6 = vmul.f32 %v362_v63, %v362_v63  ;;  %v376_v55 = vld [vmem:[%s4805_s11 + $0x328] sm:$0xff] }
  0x90   : > { %619 = vadd.xlane.f32.xlu1 %v618_v50  ;;  %v1185_v12 = vadd.f32 %v1184_v61, %v4927_v5  ;;  %v1197_v4 = vadd.f32 %v932_v56, %v931_v49  ;;  %v939_v8 = vmul.f32 %v363_v27, %v363_v27  ;;  %v940_v10 = vmul.f32 %v364_v19, %v364_v19  ;;  %v375_v50 = vld [vmem:[%s4805_s11 + $0x320] sm:$0xff] }
  0x91   : > { %v1192_v20 = vadd.f32 %v1191_v1, %v928_v14  ;;  %v625_v15 = vadd.f32 %v624_v3, %v360_v46  ;;  %v634_v22 = vadd.f32 %v633_v7, %v368_v0  ;;  %v941_v16 = vmul.f32 %v365_v37, %v365_v37  ;;  %v378_v46 = vld [vmem:[%s4805_s11 + $0x338] sm:$0xff] }
  0x92   : > { %1186 = vadd.xlane.f32.xlu0 %v1185_v12  ;;  %v1198_v26 = vadd.f32 %v1197_v4, %v933_v42  ;;  %v942_v11 = vmul.f32 %v366_v18, %v366_v18  ;;  %v943_v17 = vmul.f32 %v367_v41, %v367_v41  ;;  %v944_v5 = vmul.f32 %v368_v0, %v368_v0  ;;  %v382_v18 = vld [vmem:[%s4805_s11 + $0x358] sm:$0xff]  ;;  %v377_v41 = vld [vmem:[%s4805_s11 + $0x330] sm:$0xff]  ;;  %v383_v42 = vld [vmem:[%s4805_s11 + $0x360] sm:$0xff] }
  0x93   : > { %v1193_v27 = vadd.f32 %v1192_v20, %v4937_v30  ;;  %v626_v19 = vadd.f32 %v625_v15, %v361_v57  ;;  %v635_v25 = vadd.f32 %v634_v22, %v369_v13  ;;  %v945_v14 = vmul.f32 %v369_v13, %v369_v13  ;;  %v387_v20 = vld [vmem:[%s4805_s11 + $0x380] sm:$0xff] }
  0x94   : > { %v1199_v33 = vadd.f32 %v1198_v26, %v934_v60  ;;  %v4965_v21 = vmul.f32 %v370_v24, %v370_v24  ;;  %v1206_v36 = vadd.f32 %v940_v10, %v939_v8  ;;  %v639_v37 = vadd.f32 %v372_v9, %v371_v23  ;;  %v396_v26 = vld [vmem:[%s4805_s11 + $0x3c8] sm:$0xff] }
  0x95   : > { %v1194_v43 = vadd.f32 %v1193_v27, %v4939_v34  ;;  %v627_v44 = vadd.f32 %v626_v19, %v362_v63  ;;  %v636_v32 = vadd.f32 %v635_v25, %v370_v24  ;;  %v648_v30 = vadd.f32 %v380_v29, %v379_v28  ;;  %v395_v24 = vld [vmem:[%s4805_s11 + $0x3c0] sm:$0xff] }
  0x96   : > { %v1200_v45 = vadd.f32 %v1199_v33, %v935_v62  ;;  %v1207_v39 = vadd.f32 %v1206_v36, %v941_v16  ;;  %v640_v48 = vadd.f32 %v639_v37, %v373_v31  ;;  %v947_v49 = vmul.f32 %v371_v23, %v371_v23  ;;  %v384_v62 = vld [vmem:[%s4805_s11 + $0x368] sm:$0xff]  ;;  %v397_v33 = vld [vmem:[%s4805_s11 + $0x3d0] sm:$0xff] }
  0x97   : > { %1195 = vadd.xlane.f32.xlu1 %v1194_v43  ;;  %628 = vadd.xlane.f32.xlu0 %v627_v44  ;;  %v649_v51 = vadd.f32 %v648_v30, %v381_v35  ;;  %v948_v52 = vmul.f32 %v372_v9, %v372_v9  ;;  %v949_v53 = vmul.f32 %v373_v31, %v373_v31  ;;  %v388_v9 = vld [vmem:[%s4805_s11 + $0x388] sm:$0xff]  ;;  %v389_v31 = vld [vmem:[%s4805_s11 + $0x390] sm:$0xff]  ;;  %v398_v30 = vld [vmem:[%s4805_s11 + $0x3d8] sm:$0xff] }
  0x98   : > { %v1201_v34 = vadd.f32 %v1200_v45, %v936_v47  ;;  %v1208_v54 = vadd.f32 %v1207_v39, %v942_v11  ;;  %v641_v56 = vadd.f32 %v640_v48, %v374_v38  ;;  %v950_v40 = vmul.f32 %v374_v38, %v374_v38  ;;  %v390_v38 = vld [vmem:[%s4805_s11 + $0x398] sm:$0xff] }
  0x99   : > { %v650_v57 = vadd.f32 %v649_v51, %v382_v18  ;;  %v951_v58 = vmul.f32 %v375_v50, %v375_v50  ;;  %v952_v59 = vmul.f32 %v376_v55, %v376_v55  ;;  %v4976_v60 = vmul.f32 %v377_v41, %v377_v41  ;;  %v392_v51 = vld [vmem:[%s4805_s11 + $0x3a8] sm:$0xff] }
  0x9a   : > { %v1202_v61 = vadd.f32 %v1201_v34, %v4952_v2  ;;  %v1209_v63 = vadd.f32 %v1208_v54, %v943_v17  ;;  %v642_v0 = vadd.f32 %v641_v56, %v375_v50  ;;  %v4980_v47 = vmul.f32 %v378_v46, %v378_v46  ;;  %v385_v2 = vld [vmem:[%s4805_s11 + $0x370] sm:$0xff]  ;;  %v386_v17 = vld [vmem:[%s4805_s11 + $0x378] sm:$0xff]  ;;  %v391_v50 = vld [vmem:[%s4805_s11 + $0x3a0] sm:$0xff] }
  0x9b   : > { %637 = vadd.xlane.f32.xlu1 %v636_v32  ;;  %v651_v1 = vadd.f32 %v650_v57, %v383_v42  ;;  %v1215_v3 = vadd.f32 %v948_v52, %v947_v49  ;;  %v955_v7 = vmul.f32 %v379_v28, %v379_v28  ;;  %v956_v12 = vmul.f32 %v380_v29, %v380_v29  ;;  %v399_v52 = vld [vmem:[%s4805_s11 + $0x3e0] sm:$0xff]  ;;  %v393_v54 = vld [vmem:[%s4805_s11 + $0x3b0] sm:$0xff] }
  0x9c   : > { %v1203_v13 = vadd.f32 %v1202_v61, %v4954_v6  ;;  %v1210_v4 = vadd.f32 %v1209_v63, %v944_v5  ;;  %v643_v8 = vadd.f32 %v642_v0, %v376_v55  ;;  %v957_v10 = vmul.f32 %v381_v35, %v381_v35  ;;  %v394_v55 = vld [vmem:[%s4805_s11 + $0x3b8] sm:$0xff]  ;;  %v401_v0 = vld [vmem:[%s4805_s11 + $0x3f0] sm:$0xff] }
  0x9d   : > { %v652_v15 = vadd.f32 %v651_v1, %v384_v62  ;;  %v1216_v22 = vadd.f32 %v1215_v3, %v949_v53  ;;  %v958_v16 = vmul.f32 %v382_v18, %v382_v18  ;;  %v959_v23 = vmul.f32 %v383_v42, %v383_v42 }
  0x9e   : > { %1204 = vadd.xlane.f32.xlu0 %v1203_v13  ;;  %v1211_v6 = vadd.f32 %v1210_v4, %v945_v14  ;;  %v644_v11 = vadd.f32 %v643_v8, %v377_v41  ;;  %v960_v5 = vmul.f32 %v384_v62, %v384_v62  ;;  %v4990_v28 = vmul.f32 %v385_v2, %v385_v2  ;;  %v403_v8 = vld [vmem:[%s4805_s11 + $0x400] sm:$0xff] }
  0x9f   : > { %v653_v29 = vadd.f32 %v652_v15, %v385_v2  ;;  %v1217_v27 = vadd.f32 %v1216_v22, %v950_v40  ;;  %v4992_v19 = vmul.f32 %v386_v17, %v386_v17  ;;  %v1224_v25 = vadd.f32 %v956_v12, %v955_v7  ;;  %v402_v12 = vld [vmem:[%s4805_s11 + $0x3f8] sm:$0xff]  ;;  %v404_v2 = vld [vmem:[%s4805_s11 + $0x408] sm:$0xff] }
  0xa0   : > { %v1212_v36 = vadd.f32 %v1211_v6, %v4965_v21  ;;  %v645_v37 = vadd.f32 %v644_v11, %v378_v46  ;;  %v657_v35 = vadd.f32 %v388_v9, %v387_v20  ;;  %v666_v14 = vadd.f32 %v396_v26, %v395_v24  ;;  %v413_v11 = vld [vmem:[%s4805_s11 + $0x450] sm:$0xff] }
  0xa1   : > { %v654_v43 = vadd.f32 %v653_v29, %v386_v17  ;;  %v1218_v44 = vadd.f32 %v1217_v27, %v951_v58  ;;  %v1225_v32 = vadd.f32 %v1224_v25, %v957_v10  ;;  %v963_v45 = vmul.f32 %v387_v20, %v387_v20  ;;  %v400_v58 = vld [vmem:[%s4805_s11 + $0x3e8] sm:$0xff]  ;;  %v406_v25 = vld [vmem:[%s4805_s11 + $0x418] sm:$0xff] }
  0xa2   : > { %1213 = vadd.xlane.f32.xlu1 %v1212_v36  ;;  %646 = vadd.xlane.f32.xlu0 %v645_v37  ;;  %v658_v21 = vadd.f32 %v657_v35, %v389_v31  ;;  %v667_v39 = vadd.f32 %v666_v14, %v397_v33  ;;  %v964_v48 = vmul.f32 %v388_v9, %v388_v9  ;;  %v407_v37 = vld [vmem:[%s4805_s11 + $0x420] sm:$0xff] }
  0xa3   : > { %v1219_v18 = vadd.f32 %v1218_v44, %v952_v59  ;;  %v1226_v49 = vadd.f32 %v1225_v32, %v958_v16  ;;  %v965_v53 = vmul.f32 %v389_v31, %v389_v31  ;;  %v966_v34 = vmul.f32 %v390_v38, %v390_v38  ;;  %v411_v16 = vld [vmem:[%s4805_s11 + $0x440] sm:$0xff]  ;;  %v414_v31 = vld [vmem:[%s4805_s11 + $0x458] sm:$0xff] }
  0xa4   : > { %v659_v41 = vadd.f32 %v658_v21, %v390_v38  ;;  %v668_v56 = vadd.f32 %v667_v39, %v398_v30  ;;  %v967_v42 = vmul.f32 %v391_v50, %v391_v50  ;;  %v5009_v40 = vmul.f32 %v392_v51, %v392_v51  ;;  %v4146_v21 = vld [vmem:[%s5026_s30 + $0xc0] sm:$0xff]  }
  0xa5   : > { %v1220_v46 = vadd.f32 %v1219_v18, %v4976_v60  ;;  %v1227_v57 = vadd.f32 %v1226_v49, %v959_v23  ;;  %v5014_v59 = vmul.f32 %v393_v54, %v393_v54  ;;  %v5016_v61 = vmul.f32 %v394_v55, %v394_v55  ;;  %v5031_v23 = vld [vmem:[%s4805_s11 + $0x448] sm:$0xff]  ;;  %v415_v49 = vld [vmem:[%s4805_s11 + $0x460] sm:$0xff]  ;;  %3746 = vmatprep.subr.bf16.mxu1 %v4146_v21 }
  0xa6   : > { %655 = vadd.xlane.f32.xlu1 %v654_v43  ;;  %v660_v63 = vadd.f32 %v659_v41, %v391_v50  ;;  %v669_v62 = vadd.f32 %v668_v56, %v399_v52  ;;  %v1233_v1 = vadd.f32 %v964_v48, %v963_v45  ;;  %v971_v3 = vmul.f32 %v395_v24, %v395_v24  ;;  %v4145_v43 = vld [vmem:[%s5026_s30] sm:$0xff]   ;;  %v5052_v48 = vld [vmem:[%s4805_s11 + $0x438] sm:$0xff] }
  0xa7   : > { %v1221_v7 = vadd.f32 %v1220_v46, %v4980_v47  ;;  %v1228_v60 = vadd.f32 %v1227_v57, %v960_v5  ;;  %v972_v13 = vmul.f32 %v396_v26, %v396_v26  ;;  %v973_v4 = vmul.f32 %v397_v33, %v397_v33  ;;  %v405_v47 = vld [vmem:[%s4805_s11 + $0x410] sm:$0xff]  ;;  %v4144_v33 = vld [vmem:[%s5026_s30 + $0x40] sm:$0xff]  }
  0xa8   : > { %v661_v10 = vadd.f32 %v660_v63, %v392_v51  ;;  %v670_v20 = vadd.f32 %v669_v62, %v400_v58  ;;  %v1234_v15 = vadd.f32 %v1233_v1, %v965_v53  ;;  %v974_v22 = vmul.f32 %v398_v30, %v398_v30  ;;  %v408_v30 = vld [vmem:[%s4805_s11 + $0x428] sm:$0xff]  ;;  %3634 = vmatprep.subr.bf16.mxu0 %v4144_v33  ;;  %v4147_v41 = vld [vmem:[%s5026_s30 + $0x80] sm:$0xff]  }
  0xa9   : > { %1222 = vadd.xlane.f32.xlu0 %v1221_v7  ;;  %v1229_v9 = vadd.f32 %v1228_v60, %v4990_v28  ;;  %v975_v24 = vmul.f32 %v399_v52, %v399_v52  ;;  %v5034_v26 = vmul.f32 %v400_v58, %v400_v58  ;;  %v5036_v6 = vmul.f32 %v401_v0, %v401_v0  ;;  %v416_v53 = vld [vmem:[%s4805_s11 + $0x468] sm:$0xff] }
  0xaa   : > { %v662_v17 = vadd.f32 %v661_v10, %v393_v54  ;;  %v671_v5 = vadd.f32 %v670_v20, %v401_v0  ;;  %v1235_v29 = vadd.f32 %v1234_v15, %v966_v34  ;;  %v5039_v27 = vmul.f32 %v402_v12, %v402_v12  ;;  %3635 = vmatpush3.bf16.msra.mxu0 %v4145_v43  ;;  %v4148_v58 = vld [vmem:[%s5026_s30 + $0x48] sm:$0xff]   ;;  %v417_v0 = vld [vmem:[%s4805_s11 + $0x470] sm:$0xff]  ;;  %v418_v20 = vld [vmem:[%s4805_s11 + $0x478] sm:$0xff] }
  0xab   : > { %v1230_v28 = vadd.f32 %v1229_v9, %v4992_v19  ;;  %v1242_v36 = vadd.f32 %v972_v13, %v971_v3  ;;  %v675_v35 = vadd.f32 %v404_v2, %v403_v8  ;;  %v684_v14 = vadd.f32 %v5031_v23, %v411_v16  ;;  %v409_v19 = vld [vmem:[%s4805_s11 + $0x430] sm:$0xff]  ;;  %v419_v13 = vld [vmem:[%s4805_s11 + $0x480] sm:$0xff]  ;;  %3747 = vmatpush3.bf16.msra.mxu1 %v4147_v41  ;;  %v5097_v43 = vld [vmem:[%s4805_s11 + $0x4d8] sm:$0xff] }
  0xac   : > { %v663_v44 = vadd.f32 %v662_v17, %v394_v55  ;;  %v672_v32 = vadd.f32 %v671_v5, %v402_v12  ;;  %v1236_v38 = vadd.f32 %v1235_v29, %v967_v42  ;;  %v979_v45 = vmul.f32 %v403_v8, %v403_v8  ;;  %v5073_v8 = vld [vmem:[%s4805_s11 + $0x4c8] sm:$0xff]  ;;  %v421_v29 = vld [vmem:[%s4805_s11 + $0x490] sm:$0xff]  ;;  %3636 = vmatprep.subr.bf16.mxu0 %v4148_v58 }
  0xad   : > { %1231 = vadd.xlane.f32.xlu1 %v1230_v28  ;;  %v1243_v39 = vadd.f32 %v1242_v36, %v973_v4  ;;  %v676_v18 = vadd.f32 %v675_v35, %v405_v47  ;;  %v685_v50 = vadd.f32 %v684_v14, %v413_v11  ;;  %v980_v51 = vmul.f32 %v404_v2, %v404_v2  ;;  %v420_v4 = vld [vmem:[%s4805_s11 + $0x488] sm:$0xff]  ;;  %v4152_v36 = vld [vmem:[%s5026_s30 + $0x50] sm:$0xff]   ;;  %v422_v14 = vld [vmem:[%s4805_s11 + $0x498] sm:$0xff] }
  0xae   : > { %664 = vadd.xlane.f32.xlu0 %v663_v44  ;;  %v1237_v52 = vadd.f32 %v1236_v38, %v5009_v40  ;;  %v981_v34 = vmul.f32 %v405_v47, %v405_v47  ;;  %v982_v54 = vmul.f32 %v406_v25, %v406_v25  ;;  %v983_v55 = vmul.f32 %v407_v37, %v407_v37  ;;  %v4149_v2 = vld [vmem:[%s5026_s30 + $0x8] sm:$0xff]  }
  0xaf   : > { %v1244_v56 = vadd.f32 %v1243_v39, %v974_v22  ;;  %v677_v42 = vadd.f32 %v676_v18, %v406_v25  ;;  %v686_v46 = vadd.f32 %v685_v50, %v414_v31  ;;  %v984_v57 = vmul.f32 %v408_v30, %v408_v30  ;;  %v5084_v25 = vld [vmem:[%s4805_s11 + $0x4d0] sm:$0xff]  ;;  %3637 = vmatpush3.bf16.msra.mxu0 %v4149_v2 }
  0xb0   : > { %v1238_v63 = vadd.f32 %v1237_v52, %v5014_v59  ;;  %v5061_v40 = vmul.f32 %v409_v19, %v409_v19  ;;  %v5065_v62 = vmul.f32 %v5052_v48, %v5052_v48  ;;  %v1251_v1 = vadd.f32 %v980_v51, %v979_v45  ;;  %v5070_v59 = vld [vmem:[%s4805_s11 + $0x4c0] sm:$0xff]  ;;  %v424_v52 = vld [vmem:[%s4805_s11 + $0x4a8] sm:$0xff]  ;;  %3638 = vmatprep.subr.bf16.mxu0 %v4152_v36 }
  0xb1   : > { %673 = vadd.xlane.f32.xlu1 %v672_v32  ;;  %v1245_v3 = vadd.f32 %v1244_v56, %v975_v24  ;;  %v678_v7 = vadd.f32 %v677_v42, %v407_v37  ;;  %v687_v60 = vadd.f32 %v686_v46, %v415_v49  ;;  %v987_v12 = vmul.f32 %v411_v16, %v411_v16  ;;  %v4150_v16 = vld [vmem:[%s5026_s30 + $0xc8] sm:$0xff]  }
  0xb2   : > { %v1239_v10 = vadd.f32 %v1238_v63, %v5016_v61  ;;  %v1252_v15 = vadd.f32 %v1251_v1, %v981_v34  ;;  %v988_v22 = vmul.f32 %v5031_v23, %v5031_v23  ;;  %v989_v47 = vmul.f32 %v413_v11, %v413_v11  ;;  %v4151_v61 = vld [vmem:[%s5026_s30 + $0x88] sm:$0xff]   ;;  %3748 = vmatprep.subr.bf16.mxu1 %v4150_v16  ;;  %v5109_v34 = vld [vmem:[%s4805_s11 + $0x4b8] sm:$0xff]  ;;  %v433_v1 = vld [vmem:[%s4805_s11 + $0x4f0] sm:$0xff] }
  0xb3   : > { %v1246_v9 = vadd.f32 %v1245_v3, %v5034_v26  ;;  %v679_v24 = vadd.f32 %v678_v7, %v408_v30  ;;  %v688_v17 = vadd.f32 %v687_v60, %v416_v53  ;;  %v990_v5 = vmul.f32 %v414_v31, %v414_v31  ;;  %3749 = vmatpush3.bf16.msra.mxu1 %v4151_v61  ;;  %v432_v63 = vld [vmem:[%s4805_s11 + $0x4e8] sm:$0xff]  ;;  %v4157_v16 = vld [vmem:[%s5026_s30 + $0x18] sm:$0xff]  }
  0xb4   : > { %1240 = vadd.xlane.f32.xlu0 %v1239_v10  ;;  %v1253_v33 = vadd.f32 %v1252_v15, %v982_v54  ;;  %v991_v28 = vmul.f32 %v415_v49, %v415_v49  ;;  %v5087_v23 = vmul.f32 %v416_v53, %v416_v53  ;;  %v5089_v11 = vmul.f32 %v417_v0, %v417_v0  ;;  %v4154_v49 = vld [vmem:[%s5026_s30 + $0xd0] sm:$0xff]   ;;  %v436_v15 = vld [vmem:[%s4805_s11 + $0x508] sm:$0xff] }
  0xb5   : > { %v1247_v26 = vadd.f32 %v1246_v9, %v5036_v6  ;;  %v680_v37 = vadd.f32 %v679_v24, %v409_v19  ;;  %v689_v31 = vadd.f32 %v688_v17, %v417_v0  ;;  %v5093_v35 = vmul.f32 %v418_v20, %v418_v20  ;;  %v4153_v6 = vld [vmem:[%s5026_s30 + $0x10] sm:$0xff]   ;;  %v423_v19 = vld [vmem:[%s4805_s11 + $0x4a0] sm:$0xff]  ;;  %3750 = vmatprep.subr.bf16.mxu1 %v4154_v49  ;;  %v434_v9 = vld [vmem:[%s4805_s11 + $0x4f8] sm:$0xff] }
  0xb6   : > { %v1254_v44 = vadd.f32 %v1253_v33, %v983_v55  ;;  %v1260_v32 = vadd.f32 %v988_v22, %v987_v12  ;;  %v693_v38 = vadd.f32 %v420_v4, %v419_v13  ;;  %v702_v30 = vadd.f32 %v5073_v8, %v5070_v59  ;;  %v425_v53 = vld [vmem:[%s4805_s11 + $0x4b0] sm:$0xff]  ;;  %3639 = vmatpush3.bf16.msra.mxu0 %v4153_v6  ;;  %v4156_v12 = vld [vmem:[%s5026_s30 + $0x58] sm:$0xff]   ;;  %v5131_v22 = vld [vmem:[%s4805_s11 + $0x540] sm:$0xff] }
  0xb7   : > { %v1248_v45 = vadd.f32 %v1247_v26, %v5039_v27  ;;  %v681_v21 = vadd.f32 %v680_v37, %v5052_v48  ;;  %v690_v39 = vadd.f32 %v689_v31, %v418_v20  ;;  %v995_v18 = vmul.f32 %v419_v13, %v419_v13  ;;  %v4155_v27 = vld [vmem:[%s5026_s30 + $0x90] sm:$0xff]   ;;  %v431_v48 = vld [vmem:[%s4805_s11 + $0x4e0] sm:$0xff]  ;;  %v4159_v37 = vld [vmem:[%s5026_s30 + $0x98] sm:$0xff]   ;;  %3640 = vmatprep.subr.bf16.mxu0 %v4156_v12 }
  0xb8   : > { %v1255_v50 = vadd.f32 %v1254_v44, %v984_v57  ;;  %v1261_v51 = vadd.f32 %v1260_v32, %v989_v47  ;;  %v694_v54 = vadd.f32 %v693_v38, %v421_v29  ;;  %v703_v55 = vadd.f32 %v702_v30, %v5084_v25  ;;  %v435_v20 = vld [vmem:[%s4805_s11 + $0x500] sm:$0xff]  ;;  %v5134_v47 = vld [vmem:[%s4805_s11 + $0x548] sm:$0xff]  ;;  %3751 = vmatpush3.bf16.msra.mxu1 %v4155_v27  ;;  %v437_v26 = vld [vmem:[%s4805_s11 + $0x510] sm:$0xff] }
  0xb9   : > { %1249 = vadd.xlane.f32.xlu1 %v1248_v45  ;;  %682 = vadd.xlane.f32.xlu0 %v681_v21  ;;  %v996_v41 = vmul.f32 %v420_v4, %v420_v4  ;;  %v997_v56 = vmul.f32 %v421_v29, %v421_v29  ;;  %v998_v42 = vmul.f32 %v422_v14, %v422_v14  ;;  %v4158_v29 = vld [vmem:[%s5026_s30 + $0xd8] sm:$0xff]  }
  0xba   : > { %v1256_v46 = vadd.f32 %v1255_v50, %v5061_v40  ;;  %v1262_v57 = vadd.f32 %v1261_v51, %v990_v5  ;;  %v695_v58 = vadd.f32 %v694_v54, %v422_v14  ;;  %v704_v0 = vadd.f32 %v703_v55, %v5097_v43  ;;  %v438_v30 = vld [vmem:[%s4805_s11 + $0x518] sm:$0xff]  ;;  %3641 = vmatpush3.bf16.msra.mxu0 %v4157_v16  ;;  %v439_v51 = vld [vmem:[%s4805_s11 + $0x520] sm:$0xff] }
  0xbb   : > { %v999_v3 = vmul.f32 %v423_v19, %v423_v19  ;;  %v5118_v7 = vmul.f32 %v424_v52, %v424_v52  ;;  %v5120_v60 = vmul.f32 %v425_v53, %v425_v53  ;;  %v5124_v40 = vmul.f32 %v5109_v34, %v5109_v34  ;;  %v5163_v6 = vld [vmem:[%s4805_s11 + $0x558] sm:$0xff]  ;;  %3752 = vmatprep.subr.bf16.mxu1 %v4158_v29  ;;  %v4162_v54 = vld [vmem:[%s5026_s30 + $0xe0] sm:$0xff]  }
  0xbc   : > { %v1257_v13 = vadd.f32 %v1256_v46, %v5065_v62  ;;  %v1263_v4 = vadd.f32 %v1262_v57, %v991_v28  ;;  %v696_v2 = vadd.f32 %v695_v58, %v423_v19  ;;  %v705_v10 = vadd.f32 %v704_v0, %v431_v48  ;;  %v4161_v19 = vld [vmem:[%s5026_s30 + $0x20] sm:$0xff]   ;;  %3753 = vmatpush3.bf16.msra.mxu1 %v4159_v37  ;;  %v448_v46 = vld [vmem:[%s4805_s11 + $0x568] sm:$0xff]  ;;  %v450_v29 = vld [vmem:[%s4805_s11 + $0x578] sm:$0xff] }
  0xbd   : > { %691 = vadd.xlane.f32.xlu1 %v690_v39  ;;  %v1269_v24 = vadd.f32 %v996_v41, %v995_v18  ;;  %v1003_v62 = vmul.f32 %v5070_v59, %v5070_v59  ;;  %v1004_v17 = vmul.f32 %v5073_v8, %v5073_v8  ;;  %v1005_v5 = vmul.f32 %v5084_v25, %v5084_v25  ;;  %v5150_v59 = vld [vmem:[%s4805_s11 + $0x550] sm:$0xff]  ;;  %v4166_v37 = vld [vmem:[%s5026_s30 + $0xe8] sm:$0xff]  }
  0xbe   : > { %1258 = vadd.xlane.f32.xlu0 %v1257_v13  ;;  %v1264_v61 = vadd.f32 %v1263_v4, %v5087_v23  ;;  %v697_v33 = vadd.f32 %v696_v2, %v424_v52  ;;  %v706_v28 = vadd.f32 %v705_v10, %v432_v63  ;;  %v1006_v36 = vmul.f32 %v5097_v43, %v5097_v43  ;;  %v4160_v23 = vld [vmem:[%s5026_s30 + $0x60] sm:$0xff]   ;;  %v441_v41 = vld [vmem:[%s4805_s11 + $0x530] sm:$0xff]  ;;  %v4164_v13 = vld [vmem:[%s5026_s30 + $0x68] sm:$0xff]  }
  0xbf   : > { %v1270_v8 = vadd.f32 %v1269_v24, %v997_v56  ;;  %v1007_v31 = vmul.f32 %v431_v48, %v431_v48  ;;  %v5153_v14 = vmul.f32 %v432_v63, %v432_v63  ;;  %v5155_v25 = vmul.f32 %v433_v1, %v433_v1  ;;  %v447_v52 = vld [vmem:[%s4805_s11 + $0x560] sm:$0xff]  ;;  %v440_v48 = vld [vmem:[%s4805_s11 + $0x528] sm:$0xff]  ;;  %v5176_v56 = vld [vmem:[%s4805_s11 + $0x538] sm:$0xff]  ;;  %3642 = vmatprep.subr.bf16.mxu0 %v4160_v23 }
  0xc0   : > { %v1265_v44 = vadd.f32 %v1264_v61, %v5089_v11  ;;  %v698_v32 = vadd.f32 %v697_v33, %v425_v53  ;;  %v707_v38 = vadd.f32 %v706_v28, %v433_v1  ;;  %v5159_v43 = vmul.f32 %v434_v9, %v434_v9  ;;  %3643 = vmatpush3.bf16.msra.mxu0 %v4161_v19  ;;  %v449_v4 = vld [vmem:[%s4805_s11 + $0x570] sm:$0xff] }
  0xc1   : > { %v1271_v45 = vadd.f32 %v1270_v8, %v998_v42  ;;  %v1278_v21 = vadd.f32 %v1004_v17, %v1003_v62  ;;  %v711_v39 = vadd.f32 %v436_v15, %v435_v20  ;;  %v720_v11 = vadd.f32 %v5134_v47, %v5131_v22  ;;  %3754 = vmatprep.subr.bf16.mxu1 %v4162_v54  ;;  %v451_v17 = vld [vmem:[%s4805_s11 + $0x580] sm:$0xff]  ;;  %v5225_v19 = vld [vmem:[%s4805_s11 + $0x5d0] sm:$0xff] }
  0xc2   : > { %v1266_v18 = vadd.f32 %v1265_v44, %v5093_v35  ;;  %v699_v49 = vadd.f32 %v698_v32, %v5109_v34  ;;  %v708_v50 = vadd.f32 %v707_v38, %v434_v9  ;;  %v1011_v53 = vmul.f32 %v435_v20, %v435_v20  ;;  %v4163_v34 = vld [vmem:[%s5026_s30 + $0xa0] sm:$0xff]   ;;  %3644 = vmatprep.subr.bf16.mxu0 %v4164_v13 }
  0xc3   : > { %v1272_v55 = vadd.f32 %v1271_v45, %v999_v3  ;;  %v1279_v27 = vadd.f32 %v1278_v21, %v1005_v5  ;;  %v712_v42 = vadd.f32 %v711_v39, %v437_v26  ;;  %v721_v35 = vadd.f32 %v720_v11, %v5150_v59  ;;  %v452_v5 = vld [vmem:[%s4805_s11 + $0x588] sm:$0xff]  ;;  %3755 = vmatpush3.bf16.msra.mxu1 %v4163_v34  ;;  %v454_v11 = vld [vmem:[%s4805_s11 + $0x598] sm:$0xff]  ;;  %v457_v34 = vld [vmem:[%s4805_s11 + $0x5b0] sm:$0xff] }
  0xc4   : > { %1267 = vadd.xlane.f32.xlu1 %v1266_v18  ;;  %700 = vadd.xlane.f32.xlu0 %v699_v49  ;;  %v1012_v57 = vmul.f32 %v436_v15, %v436_v15  ;;  %v1013_v58 = vmul.f32 %v437_v26, %v437_v26  ;;  %v1014_v63 = vmul.f32 %v438_v30, %v438_v30  ;;  %v5208_v26 = vld [vmem:[%s4805_s11 + $0x5c8] sm:$0xff] }
  0xc5   : > { %v1273_v0 = vadd.f32 %v1272_v55, %v5118_v7  ;;  %v1280_v1 = vadd.f32 %v1279_v27, %v1006_v36  ;;  %v713_v3 = vadd.f32 %v712_v42, %v438_v30  ;;  %v722_v12 = vadd.f32 %v721_v35, %v5163_v6  ;;  %v4165_v7 = vld [vmem:[%s5026_s30 + $0x28] sm:$0xff]   ;;  %v5205_v36 = vld [vmem:[%s4805_s11 + $0x5c0] sm:$0xff]  ;;  %3756 = vmatprep.subr.bf16.mxu1 %v4166_v37 }
  0xc6   : > { %v1015_v2 = vmul.f32 %v439_v51, %v439_v51  ;;  %v5185_v10 = vmul.f32 %v440_v48, %v440_v48  ;;  %v5187_v20 = vmul.f32 %v441_v41, %v441_v41  ;;  %v5191_v15 = vmul.f32 %v5176_v56, %v5176_v56  ;;  %3645 = vmatpush3.bf16.msra.mxu0 %v4165_v7  ;;  %v455_v55 = vld [vmem:[%s4805_s11 + $0x5a0] sm:$0xff]  ;;  %v456_v35 = vld [vmem:[%s4805_s11 + $0x5a8] sm:$0xff]  ;;  %v4172_v7 = vld [vmem:[%s5026_s30 + $0x78] sm:$0xff]  }
  0xc7   : > { %v1274_v16 = vadd.f32 %v1273_v0, %v5120_v60  ;;  %v1281_v9 = vadd.f32 %v1280_v1, %v1007_v31  ;;  %v714_v24 = vadd.f32 %v713_v3, %v439_v51  ;;  %v723_v62 = vadd.f32 %v722_v12, %v447_v52  ;;  %v5230_v51 = vld [vmem:[%s4805_s11 + $0x5d8] sm:$0xff] }
  0xc8   : > { %709 = vadd.xlane.f32.xlu1 %v708_v50  ;;  %v1287_v61 = vadd.f32 %v1012_v57, %v1011_v53  ;;  %v1019_v33 = vmul.f32 %v5131_v22, %v5131_v22  ;;  %v1020_v28 = vmul.f32 %v5134_v47, %v5134_v47  ;;  %v1021_v60 = vmul.f32 %v5150_v59, %v5150_v59  ;;  %v453_v22 = vld [vmem:[%s4805_s11 + $0x590] sm:$0xff]  ;;  %v4167_v47 = vld [vmem:[%s5026_s30 + $0xa8] sm:$0xff]  }
  0xc9   : > { %v1275_v8 = vadd.f32 %v1274_v16, %v5124_v40  ;;  %v1282_v31 = vadd.f32 %v1281_v9, %v5153_v14  ;;  %v715_v23 = vadd.f32 %v714_v24, %v440_v48  ;;  %v724_v44 = vadd.f32 %v723_v62, %v448_v46  ;;  %v4168_v40 = vld [vmem:[%s5026_s30 + $0x70] sm:$0xff]   ;;  %3757 = vmatpush3.bf16.msra.mxu1 %v4167_v47  ;;  %v4175_v47 = vld [vmem:[%s5026_s30 + $0xb8] sm:$0xff]  }
  0xca   : > { %v1288_v32 = vadd.f32 %v1287_v61, %v1013_v58  ;;  %v1022_v59 = vmul.f32 %v5163_v6, %v5163_v6  ;;  %v1023_v38 = vmul.f32 %v447_v52, %v447_v52  ;;  %v5217_v30 = vmul.f32 %v448_v46, %v448_v46  ;;  %v4170_v48 = vld [vmem:[%s5026_s30 + $0xf0] sm:$0xff]   ;;  %3646 = vmatprep.subr.bf16.mxu0 %v4168_v40  ;;  %v463_v58 = vld [vmem:[%s4805_s11 + $0x5e0] sm:$0xff]  ;;  %v466_v40 = vld [vmem:[%s4805_s11 + $0x5f8] sm:$0xff] }
  0xcb   : > { %1276 = vadd.xlane.f32.xlu0 %v1275_v8  ;;  %v1283_v14 = vadd.f32 %v1282_v31, %v5155_v25  ;;  %v716_v45 = vadd.f32 %v715_v23, %v441_v41  ;;  %v725_v21 = vadd.f32 %v724_v44, %v449_v4  ;;  %v5221_v39 = vmul.f32 %v449_v4, %v449_v4  ;;  %v4169_v25 = vld [vmem:[%s5026_s30 + $0x30] sm:$0xff]   ;;  %v464_v4 = vld [vmem:[%s4805_s11 + $0x5e8] sm:$0xff]  ;;  %v467_v31 = vld [vmem:[%s4805_s11 + $0x600] sm:$0xff] }
  0xcc   : > { %v1289_v6 = vadd.f32 %v1288_v32, %v1014_v63  ;;  %v5227_v18 = vmul.f32 %v450_v29, %v450_v29  ;;  %v1296_v49 = vadd.f32 %v1020_v28, %v1019_v33  ;;  %v729_v50 = vadd.f32 %v452_v5, %v451_v17  ;;  %3647 = vmatpush3.bf16.msra.mxu0 %v4169_v25  ;;  %v465_v61 = vld [vmem:[%s4805_s11 + $0x5f0] sm:$0xff]  ;;  %v4174_v28 = vld [vmem:[%s5026_s30 + $0xf8] sm:$0xff]   ;;  %v468_v23 = vld [vmem:[%s4805_s11 + $0x608] sm:$0xff] }
  0xcd   : > { %v1284_v52 = vadd.f32 %v1283_v14, %v5159_v43  ;;  %v717_v53 = vadd.f32 %v716_v45, %v5176_v56  ;;  %v726_v54 = vadd.f32 %v725_v21, %v450_v29  ;;  %v738_v27 = vadd.f32 %v5208_v26, %v5205_v36  ;;  %v4171_v43 = vld [vmem:[%s5026_s30 + $0xb0] sm:$0xff]   ;;  %v5243_v56 = vld [vmem:[%s4805_s11 + $0x5b8] sm:$0xff]  ;;  %3758 = vmatprep.subr.bf16.mxu1 %v4170_v48  ;;  %v5270_v44 = vld [vmem:[%s4805_s11 + $0x640] sm:$0xff] }
  0xce   : > { %v1290_v41 = vadd.f32 %v1289_v6, %v1015_v2  ;;  %v1297_v42 = vadd.f32 %v1296_v49, %v1021_v60  ;;  %v730_v46 = vadd.f32 %v729_v50, %v453_v22  ;;  %v1027_v57 = vmul.f32 %v451_v17, %v451_v17  ;;  %3759 = vmatpush3.bf16.msra.mxu1 %v4171_v43  ;;  %v469_v6 = vld [vmem:[%s4805_s11 + $0x610] sm:$0xff]  ;;  %v472_v43 = vld [vmem:[%s4805_s11 + $0x628] sm:$0xff] }
  0xcf   : > { %1285 = vadd.xlane.f32.xlu1 %v1284_v52  ;;  %718 = vadd.xlane.f32.xlu0 %v717_v53  ;;  %v739_v63 = vadd.f32 %v738_v27, %v5225_v19  ;;  %v1028_v0 = vmul.f32 %v452_v5, %v452_v5  ;;  %v1029_v1 = vmul.f32 %v453_v22, %v453_v22  ;;  %v5273_v22 = vld [vmem:[%s4805_s11 + $0x648] sm:$0xff]  ;;  %v5286_v49 = vld [vmem:[%s4805_s11 + $0x650] sm:$0xff]  ;;  %v478_v27 = vld [vmem:[%s4805_s11 + $0x658] sm:$0xff] }
  0xd0   : > { %v1291_v3 = vadd.f32 %v1290_v41, %v5185_v10  ;;  %v1298_v12 = vadd.f32 %v1297_v42, %v1022_v59  ;;  %v731_v13 = vadd.f32 %v730_v46, %v454_v11  ;;  %v1030_v2 = vmul.f32 %v454_v11, %v454_v11  ;;  %v4173_v10 = vld [vmem:[%s5026_s30 + $0x38] sm:$0xff]   ;;  %3648 = vmatprep.subr.bf16.mxu0 %v4172_v7 }
  0xd1   : > { %v740_v16 = vadd.f32 %v739_v63, %v5230_v51  ;;  %v1031_v9 = vmul.f32 %v455_v55, %v455_v55  ;;  %v5251_v24 = vmul.f32 %v456_v35, %v456_v35  ;;  %v5253_v62 = vmul.f32 %v457_v34, %v457_v34  ;;  %3649 = vmatpush3.bf16.msra.mxu0 %v4173_v10 }
  0xd2   : > { %v1292_v17 = vadd.f32 %v1291_v3, %v5187_v20  ;;  %v1299_v5 = vadd.f32 %v1298_v12, %v1023_v38  ;;  %v732_v29 = vadd.f32 %v731_v13, %v455_v55  ;;  %v5260_v33 = vmul.f32 %v5243_v56, %v5243_v56  ;;  %v470_v55 = vld [vmem:[%s4805_s11 + $0x618] sm:$0xff]  ;;  %3760 = vmatprep.subr.bf16.mxu1 %v4174_v28 }
  0xd3   : > { %727 = vadd.xlane.f32.xlu1 %v726_v54  ;;  %v741_v60 = vadd.f32 %v740_v16, %v463_v58  ;;  %v1305_v37 = vadd.f32 %v1028_v0, %v1027_v57  ;;  %v1035_v8 = vmul.f32 %v5205_v36, %v5205_v36  ;;  %v1036_v20 = vmul.f32 %v5208_v26, %v5208_v26  ;;  %v4176_v26 = vld [vmem:[%s5026_s30 + $0x140] sm:$0xff]   ;;  %v474_v0 = vld [vmem:[%s4805_s11 + $0x638] sm:$0xff] }
  0xd4   : > { %v1293_v32 = vadd.f32 %v1292_v17, %v5191_v15  ;;  %v1300_v59 = vadd.f32 %v1299_v5, %v5217_v30  ;;  %v733_v38 = vadd.f32 %v732_v29, %v456_v35  ;;  %v1037_v36 = vmul.f32 %v5225_v19, %v5225_v19  ;;  %v4178_v15 = vld [vmem:[%s5026_s30 + $0x1c0] sm:$0xff]   ;;  %3761 = vmatpush3.bf16.msra.mxu1 %v4175_v47 }
  0xd5   : > { %v742_v14 = vadd.f32 %v741_v60, %v464_v4  ;;  %v1306_v45 = vadd.f32 %v1305_v37, %v1029_v1  ;;  %v1038_v21 = vmul.f32 %v5230_v51, %v5230_v51  ;;  %v1039_v11 = vmul.f32 %v463_v58, %v463_v58  ;;  %v471_v57 = vld [vmem:[%s4805_s11 + $0x620] sm:$0xff]  ;;  %3858 = vmatprep.subr.bf16.mxu0 %v4176_v26 }
  0xd6   : > { %1294 = vadd.xlane.f32.xlu0 %v1293_v32  ;;  %v1301_v30 = vadd.f32 %v1300_v59, %v5221_v39  ;;  %v734_v50 = vadd.f32 %v733_v38, %v457_v34  ;;  %v1040_v19 = vmul.f32 %v464_v4, %v464_v4  ;;  %v5290_v25 = vmul.f32 %v465_v61, %v465_v61  ;;  %v479_v58 = vld [vmem:[%s4805_s11 + $0x660] sm:$0xff]  ;;  %v480_v4 = vld [vmem:[%s4805_s11 + $0x668] sm:$0xff]  ;;  %v482_v38 = vld [vmem:[%s4805_s11 + $0x678] sm:$0xff] }
  0xd7   : > { %v743_v52 = vadd.f32 %v742_v14, %v465_v61  ;;  %v1307_v53 = vadd.f32 %v1306_v45, %v1030_v2  ;;  %v5292_v51 = vmul.f32 %v466_v40, %v466_v40  ;;  %v1314_v54 = vadd.f32 %v1036_v20, %v1035_v8  ;;  %3970 = vmatprep.subr.bf16.mxu1 %v4178_v15  ;;  %v481_v61 = vld [vmem:[%s4805_s11 + $0x670] sm:$0xff]  ;;  %v491_v47 = vld [vmem:[%s4805_s11 + $0x6c0] sm:$0xff]  ;;  %v5318_v32 = vld [vmem:[%s4805_s11 + $0x6c8] sm:$0xff] }
  0xd8   : > { %v1302_v48 = vadd.f32 %v1301_v30, %v5227_v18  ;;  %v735_v39 = vadd.f32 %v734_v50, %v5243_v56  ;;  %v747_v41 = vadd.f32 %v468_v23, %v467_v31  ;;  %v756_v42 = vadd.f32 %v5273_v22, %v5270_v44  ;;  %v473_v18 = vld [vmem:[%s4805_s11 + $0x630] sm:$0xff] }
  0xd9   : > { %v744_v35 = vadd.f32 %v743_v52, %v466_v40  ;;  %v1308_v34 = vadd.f32 %v1307_v53, %v1031_v9  ;;  %v1315_v46 = vadd.f32 %v1314_v54, %v1037_v36  ;;  %v1043_v63 = vmul.f32 %v467_v31, %v467_v31  ;;  %v483_v31 = vld [vmem:[%s4805_s11 + $0x680] sm:$0xff] }
  0xda   : > { %1303 = vadd.xlane.f32.xlu1 %v1302_v48  ;;  %736 = vadd.xlane.f32.xlu0 %v735_v39  ;;  %v748_v56 = vadd.f32 %v747_v41, %v469_v6  ;;  %v757_v1 = vadd.f32 %v756_v42, %v5286_v49  ;;  %v1044_v3 = vmul.f32 %v468_v23, %v468_v23  ;;  %v484_v23 = vld [vmem:[%s4805_s11 + $0x688] sm:$0xff]  ;;  %v486_v39 = vld [vmem:[%s4805_s11 + $0x698] sm:$0xff] }
  0xdb   : > { %v1309_v12 = vadd.f32 %v1308_v34, %v5251_v24  ;;  %v1316_v13 = vadd.f32 %v1315_v46, %v1038_v21  ;;  %v1045_v2 = vmul.f32 %v469_v6, %v469_v6  ;;  %v1046_v7 = vmul.f32 %v470_v55, %v470_v55  ;;  %v485_v21 = vld [vmem:[%s4805_s11 + $0x690] sm:$0xff]  ;;  %v494_v41 = vld [vmem:[%s4805_s11 + $0x6d8] sm:$0xff]  ;;  %v487_v34 = vld [vmem:[%s4805_s11 + $0x6a0] sm:$0xff] }
  0xdc   : > { %v749_v16 = vadd.f32 %v748_v56, %v470_v55  ;;  %v758_v9 = vadd.f32 %v757_v1, %v478_v27  ;;  %v1047_v10 = vmul.f32 %v471_v57, %v471_v57  ;;  %v1048_v17 = vmul.f32 %v472_v43, %v472_v43 }
  0xdd   : > { %v1310_v5 = vadd.f32 %v1309_v12, %v5253_v62  ;;  %v1317_v29 = vadd.f32 %v1316_v13, %v1039_v11  ;;  %v1049_v28 = vmul.f32 %v473_v18, %v473_v18  ;;  %v5310_v24 = vmul.f32 %v474_v0, %v474_v0  ;;  %v490_v12 = vld [vmem:[%s4805_s11 + $0x6b8] sm:$0xff] }
  0xde   : > { %745 = vadd.xlane.f32.xlu1 %v744_v35  ;;  %v750_v60 = vadd.f32 %v749_v16, %v471_v57  ;;  %v759_v37 = vadd.f32 %v758_v9, %v479_v58  ;;  %v1323_v8 = vadd.f32 %v1044_v3, %v1043_v63  ;;  %v1051_v20 = vmul.f32 %v5270_v44, %v5270_v44  ;;  %v495_v63 = vld [vmem:[%s4805_s11 + $0x6e0] sm:$0xff]  ;;  %v489_v3 = vld [vmem:[%s4805_s11 + $0x6b0] sm:$0xff]  ;;  %v496_v16 = vld [vmem:[%s4805_s11 + $0x6e8] sm:$0xff] }
  0xdf   : > { %v1311_v62 = vadd.f32 %v1310_v5, %v5260_v33  ;;  %v1318_v59 = vadd.f32 %v1317_v29, %v1040_v19  ;;  %v1052_v40 = vmul.f32 %v5273_v22, %v5273_v22  ;;  %v1053_v36 = vmul.f32 %v5286_v49, %v5286_v49  ;;  %v493_v49 = vld [vmem:[%s4805_s11 + $0x6d0] sm:$0xff] }
  0xe0   : > { %v751_v26 = vadd.f32 %v750_v60, %v472_v43  ;;  %v760_v14 = vadd.f32 %v759_v37, %v480_v4  ;;  %v1324_v45 = vadd.f32 %v1323_v8, %v1045_v2  ;;  %v1054_v44 = vmul.f32 %v478_v27, %v478_v27  ;;  %v497_v8 = vld [vmem:[%s4805_s11 + $0x6f0] sm:$0xff] }
  0xe1   : > { %1312 = vadd.xlane.f32.xlu0 %v1311_v62  ;;  %v1319_v11 = vadd.f32 %v1318_v59, %v5290_v25  ;;  %v1055_v6 = vmul.f32 %v479_v58, %v479_v58  ;;  %v1056_v33 = vmul.f32 %v480_v4, %v480_v4  ;;  %v5328_v15 = vmul.f32 %v481_v61, %v481_v61  ;;  %v488_v58 = vld [vmem:[%s4805_s11 + $0x6a8] sm:$0xff] }
  0xe2   : > { %v752_v30 = vadd.f32 %v751_v26, %v473_v18  ;;  %v761_v22 = vadd.f32 %v760_v14, %v481_v61  ;;  %v1325_v50 = vadd.f32 %v1324_v45, %v1046_v7  ;;  %v5330_v19 = vmul.f32 %v482_v38, %v482_v38  ;;  %v507_v26 = vld [vmem:[%s4805_s11 + $0x740] sm:$0xff]  ;;  %v508_v14 = vld [vmem:[%s4805_s11 + $0x748] sm:$0xff] }
  0xe3   : > { %v1320_v52 = vadd.f32 %v1319_v11, %v5292_v51  ;;  %v1332_v53 = vadd.f32 %v1052_v40, %v1051_v20  ;;  %v765_v54 = vadd.f32 %v484_v23, %v483_v31  ;;  %v774_v25 = vadd.f32 %v5318_v32, %v491_v47 }
  0xe4   : > { %v753_v55 = vadd.f32 %v752_v30, %v474_v0  ;;  %v762_v27 = vadd.f32 %v761_v22, %v482_v38  ;;  %v1326_v48 = vadd.f32 %v1325_v50, %v1047_v10  ;;  %v1059_v42 = vmul.f32 %v483_v31, %v483_v31  ;;  %v501_v30 = vld [vmem:[%s4805_s11 + $0x710] sm:$0xff] }
  0xe5   : > { %1321 = vadd.xlane.f32.xlu1 %v1320_v52  ;;  %v1333_v35 = vadd.f32 %v1332_v53, %v1053_v36  ;;  %v766_v46 = vadd.f32 %v765_v54, %v485_v21  ;;  %v775_v57 = vadd.f32 %v774_v25, %v493_v49  ;;  %v1060_v51 = vmul.f32 %v484_v23, %v484_v23  ;;  %v499_v23 = vld [vmem:[%s4805_s11 + $0x700] sm:$0xff]  ;;  %v500_v36 = vld [vmem:[%s4805_s11 + $0x708] sm:$0xff]  ;;  %v509_v22 = vld [vmem:[%s4805_s11 + $0x750] sm:$0xff] }
  0xe6   : > { %754 = vadd.xlane.f32.xlu0 %v753_v55  ;;  %v1327_v43 = vadd.f32 %v1326_v48, %v1048_v17  ;;  %v1061_v18 = vmul.f32 %v485_v21, %v485_v21  ;;  %v1062_v0 = vmul.f32 %v486_v39, %v486_v39  ;;  %v1063_v56 = vmul.f32 %v487_v34, %v487_v34  ;;  %v510_v48 = vld [vmem:[%s4805_s11 + $0x758] sm:$0xff] }
  0xe7   : > { %v1334_v1 = vadd.f32 %v1333_v35, %v1054_v44  ;;  %v767_v13 = vadd.f32 %v766_v46, %v486_v39  ;;  %v776_v4 = vadd.f32 %v775_v57, %v494_v41  ;;  %v1064_v2 = vmul.f32 %v488_v58, %v488_v58  ;;  %v503_v46 = vld [vmem:[%s4805_s11 + $0x720] sm:$0xff] }
  0xe8   : > { %v1328_v7 = vadd.f32 %v1327_v43, %v1049_v28  ;;  %v1065_v9 = vmul.f32 %v489_v3, %v489_v3  ;;  %v5343_v10 = vmul.f32 %v490_v12, %v490_v12  ;;  %v1341_v5 = vadd.f32 %v1060_v51, %v1059_v42  ;;  %v511_v57 = vld [vmem:[%s4805_s11 + $0x760] sm:$0xff] }
  0xe9   : > { %763 = vadd.xlane.f32.xlu1 %v762_v27  ;;  %v1335_v17 = vadd.f32 %v1334_v1, %v1055_v6  ;;  %v768_v29 = vadd.f32 %v767_v13, %v487_v34  ;;  %v777_v61 = vadd.f32 %v776_v4, %v495_v63  ;;  %v1067_v60 = vmul.f32 %v491_v47, %v491_v47  ;;  %v498_v47 = vld [vmem:[%s4805_s11 + $0x6f8] sm:$0xff]  ;;  %v512_v4 = vld [vmem:[%s4805_s11 + $0x768] sm:$0xff] }
  0xea   : > { %v1329_v37 = vadd.f32 %v1328_v7, %v5310_v24  ;;  %v1342_v20 = vadd.f32 %v1341_v5, %v1061_v18  ;;  %v1068_v28 = vmul.f32 %v5318_v32, %v5318_v32  ;;  %v1069_v31 = vmul.f32 %v493_v49, %v493_v49  ;;  %v502_v27 = vld [vmem:[%s4805_s11 + $0x718] sm:$0xff] }
  0xeb   : > { %v1336_v62 = vadd.f32 %v1335_v17, %v1056_v33  ;;  %v769_v59 = vadd.f32 %v768_v29, %v488_v58  ;;  %v778_v38 = vadd.f32 %v777_v61, %v496_v16  ;;  %v1070_v40 = vmul.f32 %v494_v41, %v494_v41  ;;  %v506_v1 = vld [vmem:[%s4805_s11 + $0x738] sm:$0xff] }
  0xec   : > { %1330 = vadd.xlane.f32.xlu0 %v1329_v37  ;;  %v1343_v45 = vadd.f32 %v1342_v20, %v1062_v0  ;;  %v1071_v24 = vmul.f32 %v495_v63, %v495_v63  ;;  %v1072_v44 = vmul.f32 %v496_v16, %v496_v16  ;;  %v5354_v21 = vmul.f32 %v497_v8, %v497_v8  ;;  %v504_v0 = vld [vmem:[%s4805_s11 + $0x728] sm:$0xff]  ;;  %v513_v37 = vld [vmem:[%s4805_s11 + $0x770] sm:$0xff] }
  0xed   : > { %v1337_v32 = vadd.f32 %v1336_v62, %v5328_v15  ;;  %v770_v11 = vadd.f32 %v769_v59, %v489_v3  ;;  %v779_v6 = vadd.f32 %v778_v38, %v497_v8  ;;  %v5357_v33 = vmul.f32 %v498_v47, %v498_v47 }
  0xee   : > { %v1344_v50 = vadd.f32 %v1343_v45, %v1063_v56  ;;  %v1350_v49 = vadd.f32 %v1068_v28, %v1067_v60  ;;  %v783_v52 = vadd.f32 %v500_v36, %v499_v23  ;;  %v792_v53 = vadd.f32 %v508_v14, %v507_v26  ;;  %v505_v56 = vld [vmem:[%s4805_s11 + $0x730] sm:$0xff]  ;;  %v514_v45 = vld [vmem:[%s4805_s11 + $0x778] sm:$0xff] }
  0xef   : > { %v1338_v54 = vadd.f32 %v1337_v32, %v5330_v19  ;;  %v771_v25 = vadd.f32 %v770_v11, %v490_v12  ;;  %v780_v55 = vadd.f32 %v779_v6, %v498_v47  ;;  %v1075_v39 = vmul.f32 %v499_v23, %v499_v23  ;;  %v515_v23 = vld [vmem:[%s4805_s11 + $0x780] sm:$0xff]  ;;  %v524_v47 = vld [vmem:[%s4805_s11 + $0x7c8] sm:$0xff] }
  0xf0   : > { %v1345_v15 = vadd.f32 %v1344_v50, %v1064_v2  ;;  %v1351_v41 = vadd.f32 %v1350_v49, %v1069_v31  ;;  %v784_v42 = vadd.f32 %v783_v52, %v501_v30  ;;  %v793_v35 = vadd.f32 %v792_v53, %v509_v22  ;;  %v539_v34 = vpop.xlane.xlu0 %538  ;;  %v517_v50 = vld [vmem:[%s4805_s11 + $0x790] sm:$0xff] }
  0xf1   : > { %1339 = vadd.xlane.f32.xlu1 %v1338_v54  ;;  %772 = vadd.xlane.f32.xlu0 %v771_v25  ;;  %v1076_v51 = vmul.f32 %v500_v36, %v500_v36  ;;  %v1077_v19 = vmul.f32 %v501_v30, %v501_v30  ;;  %v1078_v43 = vmul.f32 %v502_v27, %v502_v27  ;;  %v5366_v58 = vmul.f32 0.0009765625, %v539_v34  ;;  %v523_v36 = vld [vmem:[%s4805_s11 + $0x7c0] sm:$0xff]  ;;  %v525_v49 = vld [vmem:[%s4805_s11 + $0x7d0] sm:$0xff] }
  0xf2   : > { %v1346_v63 = vadd.f32 %v1345_v15, %v1065_v9  ;;  %v1352_v18 = vadd.f32 %v1351_v41, %v1070_v40  ;;  %v785_v3 = vadd.f32 %v784_v42, %v502_v27  ;;  %v794_v12 = vadd.f32 %v793_v35, %v510_v48  ;;  %v516_v40 = vld [vmem:[%s4805_s11 + $0x788] sm:$0xff]  ;;  %v518_v15 = vld [vmem:[%s4805_s11 + $0x798] sm:$0xff] }
  0xf3   : > { %v1115_v13 = vpop.xlane.xlu1 %1114  ;;  %v1079_v2 = vmul.f32 %v503_v46, %v503_v46  ;;  %v1080_v7 = vmul.f32 %v504_v0, %v504_v0  ;;  %v5372_v16 = vmul.f32 %v505_v56, %v505_v56  ;;  %v5374_v5 = vmul.f32 %v506_v1, %v506_v1 }
  0xf4   : > { %v1347_v17 = vadd.f32 %v1346_v63, %v5343_v10  ;;  %v1353_v29 = vadd.f32 %v1352_v18, %v1071_v24  ;;  %v786_v9 = vadd.f32 %v785_v3, %v503_v46  ;;  %v795_v61 = vadd.f32 %v794_v12, %v511_v57  ;;  %v5377_v60 = vpop.xlane.xlu0 %547  ;;  %v522_v3 = vld [vmem:[%s4805_s11 + $0x7b8] sm:$0xff] }
  0xf5   : > { %781 = vadd.xlane.f32.xlu1 %v780_v55  ;;  %v1359_v8 = vadd.f32 %v1076_v51, %v1075_v39  ;;  %v1083_v20 = vmul.f32 %v507_v26, %v507_v26  ;;  %v1084_v28 = vmul.f32 %v508_v14, %v508_v14  ;;  %v1085_v31 = vmul.f32 %v509_v22, %v509_v22  ;;  %v527_v51 = vld [vmem:[%s4805_s11 + $0x7e0] sm:$0xff] }
  0xf6   : > { %1348 = vadd.xlane.f32.xlu0 %v1347_v17  ;;  %v1354_v62 = vadd.f32 %v1353_v29, %v1072_v44  ;;  %v787_v59 = vadd.f32 %v786_v9, %v504_v0  ;;  %v796_v10 = vadd.f32 %v795_v61, %v512_v4  ;;  %v1086_v38 = vmul.f32 %v510_v48, %v510_v48  ;;  %v528_v29 = vld [vmem:[%s4805_s11 + $0x7e8] sm:$0xff] }
  0xf7   : > { %v1360_v24 = vadd.f32 %v1359_v8, %v1077_v19  ;;  %v1087_v32 = vmul.f32 %v511_v57, %v511_v57  ;;  %v1088_v11 = vmul.f32 %v512_v4, %v512_v4  ;;  %v5385_v6 = vmul.f32 %v513_v37, %v513_v37  ;;  %v5387_v26 = vpop.xlane.xlu1 %1123  ;;  %v519_v57 = vld [vmem:[%s4805_s11 + $0x7a0] sm:$0xff] }
  0xf8   : > { %v1355_v14 = vadd.f32 %v1354_v62, %v5354_v21  ;;  %v788_v44 = vadd.f32 %v787_v59, %v505_v56  ;;  %v797_v30 = vadd.f32 %v796_v10, %v513_v37  ;;  %v5390_v22 = vmul.f32 %v514_v45, %v514_v45  ;;  %v5394_v52 = vpop.xlane.xlu0 %556  ;;  %v526_v21 = vld [vmem:[%s4805_s11 + $0x7d8] sm:$0xff]  ;;  %v520_v56 = vld [vmem:[%s4805_s11 + $0x7a8] sm:$0xff] }
  0xf9   : > { %v1361_v53 = vadd.f32 %v1360_v24, %v1078_v43  ;;  %v1368_v54 = vadd.f32 %v1084_v28, %v1083_v20  ;;  %v801_v25 = vadd.f32 %v516_v40, %v515_v23  ;;  %v810_v55 = vadd.f32 %v524_v47, %v523_v36 }
  0xfa   : > { %v1356_v27 = vadd.f32 %v1355_v14, %v5357_v33  ;;  %v789_v48 = vadd.f32 %v788_v44, %v506_v1  ;;  %v798_v39 = vadd.f32 %v797_v30, %v514_v45  ;;  %v1091_v41 = vmul.f32 %v515_v23, %v515_v23  ;;  %v521_v1 = vld [vmem:[%s4805_s11 + $0x7b0] sm:$0xff]  ;;  %v530_v14 = vld [vmem:[%s4805_s11 + $0x7f8] sm:$0xff] }
  0xfb   : > { %v1362_v42 = vadd.f32 %v1361_v53, %v1079_v2  ;;  %v1369_v35 = vadd.f32 %v1368_v54, %v1085_v31  ;;  %v802_v34 = vadd.f32 %v801_v25, %v517_v50  ;;  %v811_v46 = vadd.f32 %v810_v55, %v525_v49  ;;  %v566_v2 = vpop.xlane.xlu1 %565  ;;  %v529_v31 = vld [vmem:[%s4805_s11 + $0x7f0] sm:$0xff] }
  0xfc   : > { %1357 = vadd.xlane.f32.xlu1 %v1356_v27  ;;  %790 = vadd.xlane.f32.xlu0 %v789_v48  ;;  %v1092_v19 = vmul.f32 %v516_v40, %v516_v40  ;;  %v1093_v43 = vmul.f32 %v517_v50, %v517_v50  ;;  %v1094_v33 = vmul.f32 %v518_v15, %v518_v15  ;;  %v1395_v63 = vmul.f32 0.0009765625, %v1115_v13 }
  0xfd   : > { %v1363_v18 = vadd.f32 %v1362_v42, %v1080_v7  ;;  %v1370_v0 = vadd.f32 %v1369_v35, %v1086_v38  ;;  %v803_v12 = vadd.f32 %v802_v34, %v518_v15  ;;  %v812_v4 = vadd.f32 %v811_v46, %v526_v21 }
  0xfe   : > { %v1133_v17 = vpop.xlane.xlu0 %1132  ;;  %v1095_v9 = vmul.f32 %v519_v57, %v519_v57  ;;  %v1096_v61 = vmul.f32 %v520_v56, %v520_v56  ;;  %v1097_v37 = vmul.f32 %v521_v1, %v521_v1  ;;  %v5405_v8 = vmul.f32 %v522_v3, %v522_v3 }
  0xff   : > { %v1364_v20 = vadd.f32 %v1363_v18, %v5372_v16  ;;  %v1371_v13 = vadd.f32 %v1370_v0, %v1087_v32  ;;  %v804_v7 = vadd.f32 %v803_v12, %v519_v57  ;;  %v813_v28 = vadd.f32 %v812_v4, %v527_v51 }
 0x100   : > { %799 = vadd.xlane.f32.xlu1 %v798_v39  ;;  %v1377_v23 = vadd.f32 %v1092_v19, %v1091_v41  ;;  %v1099_v62 = vmul.f32 %v523_v36, %v523_v36  ;;  %v1100_v59 = vmul.f32 %v524_v47, %v524_v47  ;;  %v1101_v10 = vmul.f32 %v525_v49, %v525_v49 }
 0x101   : > { %v1365_v38 = vadd.f32 %v1364_v20, %v5374_v5  ;;  %v1372_v40 = vadd.f32 %v1371_v13, %v1088_v11  ;;  %v805_v45 = vadd.f32 %v804_v7, %v520_v56  ;;  %v814_v24 = vadd.f32 %v813_v28, %v528_v29 }
 0x102   : > { %v1378_v44 = vadd.f32 %v1377_v23, %v1093_v43  ;;  %v1102_v30 = vmul.f32 %v526_v21, %v526_v21  ;;  %v1103_v50 = vmul.f32 %v527_v51, %v527_v51  ;;  %v1104_v53 = vmul.f32 %v528_v29, %v528_v29 }
 0x103   : > { %1366 = vadd.xlane.f32.xlu0 %v1365_v38  ;;  %v1373_v16 = vadd.f32 %v1372_v40, %v5385_v6  ;;  %v806_v32 = vadd.f32 %v805_v45, %v521_v1  ;;  %v815_v54 = vadd.f32 %v814_v24, %v529_v31  ;;  %v1105_v25 = vmul.f32 %v529_v31, %v529_v31  ;;  %v1142_v55 = vpop.xlane.xlu1 %1141  ;;  %v575_v36 = vpop.xlane.xlu0 %574 }
 0x104   : > { %v1379_v47 = vadd.f32 %v1378_v44, %v1094_v33  ;;  %v1106_v49 = vmul.f32 %v530_v14, %v530_v14  ;;  %v1386_v27 = vadd.f32 %v1100_v59, %v1099_v62  ;;  %v1427_v5 = vmul.f32 %v5366_v58, %v5366_v58 }
 0x105   : > { %v1374_v11 = vadd.f32 %v1373_v16, %v5390_v22  ;;  %v807_v48 = vadd.f32 %v806_v32, %v522_v3  ;;  %v816_v39 = vadd.f32 %v815_v54, %v530_v14  ;;  %v5416_v15 = vmul.f32 0.0009765625, %v5377_v60  ;;  %v4273_v54 = vld [vmem:[%s4805_s11 + $0x48] sm:$0xff] }
 0x106   : > { %v1380_v21 = vadd.f32 %v1379_v47, %v1095_v9  ;;  %v1387_v6 = vadd.f32 %v1386_v27, %v1101_v10  ;;  %v1459_v41 = vsub.f32 %v1395_v63, %v1427_v5  ;;  %v1396_v42 = vmul.f32 0.0009765625, %v5387_v26  ;;  %v4275_v47 = vld [vmem:[%s4805_s11 + $0x58] sm:$0xff]  ;;  %v4276_v27 = vld [vmem:[%s4805_s11] sm:$0xff] }
 0x107   : > { %1375 = vadd.xlane.f32.xlu1 %v1374_v11  ;;  %808 = vadd.xlane.f32.xlu0 %v807_v48  ;;  %v1428_v35 = vmul.f32 %v5416_v15, %v5416_v15  ;;  %v5422_v34 = vmul.f32 0.0009765625, %v5394_v52  ;;  %v5424_v46 = vmul.f32 0.0009765625, %v566_v2  ;;  %v1397_v22 = vmul.f32 0.0009765625, %v1133_v17  ;;  %v584_v57 = vpop.xlane.xlu1 %583 }
 0x108   : > { %v1381_v51 = vadd.f32 %v1380_v21, %v1096_v61  ;;  %v1388_v60 = vadd.f32 %v1387_v6, %v1102_v30  ;;  %v1491_v19 = vmax.f32 %v1459_v41, 0.0  ;;  %v1398_v43 = vmul.f32 0.0009765625, %v1142_v55  ;;  %v1151_v33 = vpop.xlane.xlu0 %1150  ;;  %v4272_v30 = vld [vmem:[%s4805_s11 + $0x8] sm:$0xff]  ;;  %v4274_v55 = vld [vmem:[%s4805_s11 + $0x18] sm:$0xff]  ;;  %v4278_v6 = vld [vmem:[%s4805_s11 + $0x10] sm:$0xff] }
 0x109   : > { %v1460_v63 = vsub.f32 %v1396_v42, %v1428_v35  ;;  %v1429_v26 = vmul.f32 %v5422_v34, %v5422_v34  ;;  %v1430_v18 = vmul.f32 %v5424_v46, %v5424_v46  ;;  %v5430_v0 = vmul.f32 0.0009765625, %v575_v36  ;;  %v4279_v42 = vld [vmem:[%s4805_s11 + $0x50] sm:$0xff] }
 0x10a   : > { %v1382_v52 = vadd.f32 %v1381_v51, %v1097_v37  ;;  %v1389_v56 = vadd.f32 %v1388_v60, %v1103_v50  ;;  %v1779_v1 = vadd.f32 1e-06, %v1491_v19  ;;  %v5432_v3 = vmul.f32 0.0009765625, %v584_v57  ;;  %v4280_v51 = vld [vmem:[%s4805_s11 + $0x88] sm:$0xff] }
 0x10b   : > { %817 = vadd.xlane.f32.xlu1 %v816_v39  ;;  %v1492_v12 = vmax.f32 %v1460_v63, 0.0  ;;  %v1461_v4 = vsub.f32 %v1397_v22, %v1429_v26  ;;  %v1462_v2 = vsub.f32 %v1398_v43, %v1430_v18  ;;  %v1431_v17 = vmul.f32 %v5430_v0, %v5430_v0  ;;  %v4277_v39 = vld [vmem:[%s4805_s11 + $0x40] sm:$0xff]  ;;  %v4281_v43 = vld [vmem:[%s4805_s11 + $0xc8] sm:$0xff]  ;;  %v4282_v63 = vld [vmem:[%s4805_s11 + $0x98] sm:$0xff] }
 0x10c   : > { %v1383_v29 = vadd.f32 %v1382_v52, %v5405_v8  ;;  %v1390_v9 = vadd.f32 %v1389_v56, %v1104_v53  ;;  %4208 = vrsqrt.f32 %v1779_v1  ;;  %v1399_v61 = vmul.f32 0.0009765625, %v1151_v33  ;;  %v4283_v18 = vld [vmem:[%s4805_s11 + $0xd8] sm:$0xff]  ;;  %v5474_v1 = vld [vmem:[%s4805_s11 + $0x80] sm:$0xff] }
 0x10d   : > { %v1780_v20 = vadd.f32 1e-06, %v1492_v12  ;;  %v1493_v13 = vmax.f32 %v1461_v4, 0.0  ;;  %v1494_v7 = vmax.f32 %v1462_v2, 0.0  ;;  %v1432_v37 = vmul.f32 %v5432_v3, %v5432_v3  ;;  %v1160_v28 = vpop.xlane.xlu1 %1159  ;;  %v4285_v4 = vld [vmem:[%s4805_s11 + $0xc0] sm:$0xff] }
 0x10e   : > { %v593_v31 = vpop.xlane.xlu0 %592  ;;  %1384 = vadd.xlane.f32.xlu0 %v1383_v29  ;;  %v1391_v23 = vadd.f32 %v1390_v9, %v1105_v25  ;;  %v1463_v62 = vsub.f32 %v1399_v61, %v1431_v17  ;;  %v1400_v59 = vmul.f32 0.0009765625, %v1160_v28  ;;  %v1524_v50 = vsub.f32 %v4272_v30, %v5366_v58  ;;  %v5481_v17 = vld [vmem:[%s4805_s11 + $0x90] sm:$0xff] }
 0x10f   : > { %v5439_v10 = vmul.f32 0.0009765625, %v593_v31  ;;  %4210 = vrsqrt.f32 %v1780_v20  ;;  %v1781_v8 = vadd.f32 1e-06, %v1493_v13  ;;  %v1782_v38 = vadd.f32 1e-06, %v1494_v7 }
 0x110   : > { %v1392_v40 = vadd.f32 %v1391_v23, %v1106_v49  ;;  %v1495_v45 = vmax.f32 %v1463_v62, 0.0  ;;  %v1464_v24 = vsub.f32 %v1400_v59, %v1432_v37  ;;  %v1532_v25 = vsub.f32 %v4273_v54, %v5416_v15  ;;  %v4287_v23 = vld [vmem:[%s4805_s11 + $0xd0] sm:$0xff]  ;;  %v5494_v59 = vld [vmem:[%s4805_s11 + $0x108] sm:$0xff]  ;;  %v4290_v54 = vld [vmem:[%s4805_s11 + $0x118] sm:$0xff] }
 0x111   : > { %4212 = vrsqrt.f32 %v1781_v8  ;;  %v602_v14 = vpop.xlane.xlu1 %601  ;;  %v1433_v44 = vmul.f32 %v5439_v10, %v5439_v10  ;;  %v1526_v36 = vsub.f32 %v4274_v55, %v5366_v58  ;;  %v1534_v49 = vsub.f32 %v4275_v47, %v5416_v15 }
 0x112   : > { %1393 = vadd.xlane.f32.xlu1 %v1392_v40  ;;  %4214 = vrsqrt.f32 %v1782_v38  ;;  %v1783_v53 = vadd.f32 1e-06, %v1495_v45  ;;  %v1496_v16 = vmax.f32 %v1464_v24, 0.0  ;;  %v5445_v32 = vmul.f32 0.0009765625, %v602_v14  ;;  %v4289_v38 = vld [vmem:[%s4805_s11 + $0x148] sm:$0xff] }
 0x113   : > { %v1523_v5 = vsub.f32 %v4276_v27, %v5366_v58  ;;  %v1531_v21 = vsub.f32 %v4277_v39, %v5416_v15  ;;  %v1525_v41 = vsub.f32 %v4278_v6, %v5366_v58  ;;  %v1533_v35 = vsub.f32 %v4279_v42, %v5416_v15  ;;  %v4292_v42 = vld [vmem:[%s4805_s11 + $0x140] sm:$0xff] }
 0x114   : > { %v1784_v11 = vadd.f32 1e-06, %v1496_v16  ;;  %4216 = vrsqrt.f32 %v1783_v53  ;;  %v1434_v57 = vmul.f32 %v5445_v32, %v5445_v32  ;;  %v1540_v60 = vsub.f32 %v4280_v51, %v5422_v34 }
 0x115   : > { %v1169_v48 = vpop.xlane.xlu0 %1168  ;;  %v1548_v33 = vsub.f32 %v4281_v43, %v5424_v46  ;;  %v1542_v26 = vsub.f32 %v4282_v63, %v5422_v34  ;;  %v1550_v52 = vsub.f32 %v4283_v18, %v5424_v46  ;;  %v1539_v12 = vsub.f32 %v5474_v1, %v5422_v34  ;;  %v4182_v63 = vld [vmem:[%s5026_s30 + $0x1c8] sm:$0xff]  }
 0x116   : > { %v1401_v22 = vmul.f32 0.0009765625, %v1169_v48  ;;  %v5465_v19 = vpop.eup %4208  ;;  %4218 = vrsqrt.f32 %v1784_v11  ;;  %v1547_v2 = vsub.f32 %v4285_v4, %v5424_v46  ;;  %v1541_v29 = vsub.f32 %v5481_v17, %v5422_v34  ;;  %v4179_v11 = vld [vmem:[%s5026_s30 + $0x180] sm:$0xff]  }
 0x117   : > { %v1844_v9 = vmul.f32 %v5465_v19, %v1524_v50  ;;  %v1846_v61 = vmul.f32 %v5465_v19, %v1526_v36  ;;  %v1843_v20 = vmul.f32 %v5465_v19, %v1523_v5  ;;  %v1845_v13 = vmul.f32 %v5465_v19, %v1525_v41  ;;  %v4177_v5 = vld [vmem:[%s5026_s30 + $0x100] sm:$0xff]   ;;  %v4180_v41 = vld [vmem:[%s5026_s30 + $0x148] sm:$0xff]  }
 0x118   : > { %v1465_v56 = vsub.f32 %v1401_v22, %v1433_v44  ;;  %v1549_v62 = vsub.f32 %v4287_v23, %v5424_v46  ;;  %v1556_v8 = vsub.f32 %v5494_v59, %v5430_v0  ;;  %v1564_v40 = vsub.f32 %v4289_v38, %v5432_v3  ;;  %v4184_v59 = vld [vmem:[%s5026_s30 + $0x150] sm:$0xff]  }
 0x119   : > { %v5489_v7 = vpop.eup %4210  ;;  %v1178_v28 = vpop.xlane.xlu1 %1177  ;;  %v1558_v55 = vsub.f32 %v4290_v54, %v5430_v0  ;;  %v4186_v38 = vld [vmem:[%s5026_s30 + $0x1d0] sm:$0xff]  }
 0x11a   : > { %v1497_v37 = vmax.f32 %v1465_v56, 0.0  ;;  %v611_v31 = vpop.xlane.xlu0 %610  ;;  %v1402_v45 = vmul.f32 0.0009765625, %v1178_v28  ;;  %v1852_v24 = vmul.f32 %v5489_v7, %v1532_v25  ;;  %v1854_v14 = vmul.f32 %v5489_v7, %v1534_v49  ;;  %v4181_v28 = vld [vmem:[%s5026_s30 + $0x108] sm:$0xff]  }
 0x11b   : > { %v1851_v44 = vmul.f32 %v5489_v7, %v1531_v21  ;;  %v5503_v30 = vpop.eup %4212  ;;  %v1853_v53 = vmul.f32 %v5489_v7, %v1533_v35  ;;  %v5506_v16 = vmul.f32 0.0009765625, %v611_v31  ;;  %v4291_v21 = vld [vmem:[%s4805_s11 + $0x158] sm:$0xff]  ;;  %v1563_v35 = vsub.f32 %v4292_v42, %v5432_v3  ;;  %v4183_v31 = vld [vmem:[%s5026_s30 + $0x188] sm:$0xff]  }
 0x11c   : > { %v1785_v50 = vadd.f32 1e-06, %v1497_v37  ;;  %v5510_v36 = vpop.eup %4214  ;;  %v1466_v25 = vsub.f32 %v1402_v45, %v1434_v57  ;;  %v2100_v47 = vpack.c.bf16 %v1852_v24, %v1844_v9  ;;  %v2102_v49 = vpack.c.bf16 %v1854_v14, %v1846_v61 }
 0x11d   : > { %v2099_v27 = vpack.c.bf16 %v1851_v44, %v1843_v20  ;;  %v2101_v48 = vpack.c.bf16 %v1853_v53, %v1845_v13  ;;  %v620_v39 = vpop.xlane.xlu1 %619  ;;  %v1566_v6 = vsub.f32 %v4291_v21, %v5432_v3  ;;  %v1435_v57 = vmul.f32 %v5506_v16, %v5506_v16 }
 0x11e   : > { %4220 = vrsqrt.f32 %v1785_v50  ;;  %v1498_v22 = vmax.f32 %v1466_v25, 0.0  ;;  %2778 = vmatprep.mubr.bf16.mxu0 %v2100_v47  ;;  %2939 = vmatprep.mubr.bf16.mxu1 %v2102_v49  ;;  %v1860_v51 = vmul.f32 %v5503_v30, %v1540_v60  ;;  %v1868_v43 = vmul.f32 %v5510_v36, %v1548_v33  ;;  %v5524_v18 = vpop.eup %4216  ;;  %v4294_v49 = vld [vmem:[%s4805_s11 + $0x150] sm:$0xff] }
 0x11f   : > { %2779 = vmatmul.mubr.bf16.vlgmr.msra.gmra.mrb[0].mxu0 %v2099_v27  ;;  %2940 = vmatmul.mubr.bf16.vlgmr.msra.gmra.mrb[0].mxu1 %v2101_v48  ;;  %v1187_v56 = vpop.xlane.xlu0 %1186  ;;  %v1862_v4 = vmul.f32 %v5503_v30, %v1542_v26  ;;  %v1870_v9 = vmul.f32 %v5510_v36, %v1550_v52  ;;  %v1867_v61 = vmul.f32 %v5510_v36, %v1547_v2  ;;  %v5531_v33 = vmul.f32 0.0009765625, %v620_v39 }
 0x120   : > { %v5529_v20 = vpop.eup %4218  ;;  %v1786_v60 = vadd.f32 1e-06, %v1498_v22  ;;  %3859 = vmatpush3.bf16.msra.mxu0 %v4177_v5  ;;  %3971 = vmatpush3.bf16.msra.mxu1 %v4179_v11  ;;  %v1403_v13 = vmul.f32 0.0009765625, %v1187_v56  ;;  %v2108_v37 = vpack.c.bf16 %v1868_v43, %v1860_v51  ;;  %v1859_v26 = vmul.f32 %v5503_v30, %v1539_v12  ;;  %v4185_v5 = vld [vmem:[%s5026_s30 + $0x110] sm:$0xff]   ;;  %v4190_v51 = vld [vmem:[%s5026_s30 + $0x1d8] sm:$0xff]  }
 0x121   : > { %v2110_v23 = vpack.c.bf16 %v1870_v9, %v1862_v4  ;;  %v1861_v52 = vmul.f32 %v5503_v30, %v1541_v29  ;;  %v1869_v2 = vmul.f32 %v5510_v36, %v1549_v62  ;;  %3860 = vmatprep.subr.bf16.mxu0 %v4180_v41  ;;  %v1876_v24 = vmul.f32 %v5524_v18, %v1556_v8  ;;  %v4293_v8 = vld [vmem:[%s4805_s11 + $0x100] sm:$0xff]  ;;  %v4187_v11 = vld [vmem:[%s5026_s30 + $0x190] sm:$0xff]   ;;  %v4296_v9 = vld [vmem:[%s4805_s11 + $0x188] sm:$0xff] }
 0x122   : > { %4222 = vrsqrt.f32 %v1786_v60  ;;  %v1467_v45 = vsub.f32 %v1403_v13, %v1435_v57  ;;  %2786 = vmatprep.mubr.bf16.mxu0 %v2108_v37  ;;  %v1884_v1 = vmul.f32 %v5529_v20, %v1564_v40  ;;  %3972 = vmatprep.subr.bf16.mxu1 %v4182_v63  ;;  %v2107_v12 = vpack.c.bf16 %v1867_v61, %v1859_v26  ;;  %v4189_v60 = vld [vmem:[%s5026_s30 + $0x118] sm:$0xff]  }
 0x123   : > { %2947 = vmatprep.mubr.bf16.mxu1 %v2110_v23  ;;  %v2109_v17 = vpack.c.bf16 %v1869_v2, %v1861_v52  ;;  %v1878_v29 = vmul.f32 %v5524_v18, %v1558_v55  ;;  %v1886_v62 = vmul.f32 %v5529_v20, %v1566_v6  ;;  %v1436_v44 = vmul.f32 %v5531_v33, %v5531_v33  ;;  %v4188_v6 = vld [vmem:[%s5026_s30 + $0x158] sm:$0xff]   ;;  %v4192_v52 = vld [vmem:[%s5026_s30 + $0x160] sm:$0xff]  }
 0x124   : > { %v1499_v14 = vmax.f32 %v1467_v45, 0.0  ;;  %v1196_v50 = vpop.xlane.xlu1 %1195  ;;  %v2116_v53 = vpack.c.bf16 %v1884_v1, %v1876_v24  ;;  %v1555_v40 = vsub.f32 %v4293_v8, %v5430_v0  ;;  %3861 = vmatpush3.bf16.msra.mxu0 %v4181_v28  ;;  %3973 = vmatpush3.bf16.msra.mxu1 %v4183_v31  ;;  %v629_v25 = vpop.xlane.xlu0 %628  ;;  %v5555_v55 = vmul.f32 %v5529_v20, %v1563_v35  ;;  %v4295_v35 = vld [vmem:[%s4805_s11 + $0x110] sm:$0xff]  ;;  %v4191_v13 = vld [vmem:[%s5026_s30 + $0x198] sm:$0xff]   ;;  %v4297_v28 = vld [vmem:[%s4805_s11 + $0x1c8] sm:$0xff] }
 0x125   : > { %v1404_v54 = vmul.f32 0.0009765625, %v1196_v50  ;;  %v2118_v47 = vpack.c.bf16 %v1886_v62, %v1878_v29  ;;  %v1565_v27 = vsub.f32 %v4294_v49, %v5432_v3  ;;  %3862 = vmatprep.subr.bf16.mxu0 %v4184_v59  ;;  %3974 = vmatprep.subr.bf16.mxu1 %v4186_v38  ;;  %v5561_v39 = vmul.f32 0.0009765625, %v629_v25  ;;  %v4298_v23 = vld [vmem:[%s4805_s11 + $0x198] sm:$0xff]  ;;  %v4194_v50 = vld [vmem:[%s5026_s30 + $0x1e0] sm:$0xff]  }
 0x126   : > { %v1787_v48 = vadd.f32 1e-06, %v1499_v14  ;;  %v1875_v21 = vmul.f32 %v5524_v18, %v1555_v40  ;;  %v1557_v22 = vsub.f32 %v4295_v35, %v5430_v0  ;;  %v1572_v61 = vsub.f32 %v4296_v9, %v5439_v10  ;;  %v4299_v24 = vld [vmem:[%s4805_s11 + $0x1d8] sm:$0xff]  ;;  %v4300_v14 = vld [vmem:[%s4805_s11 + $0x1c0] sm:$0xff]  ;;  %v4301_v40 = vld [vmem:[%s4805_s11 + $0x1d0] sm:$0xff] }
 0x127   : > { %v1468_v42 = vsub.f32 %v1404_v54, %v1436_v44  ;;  %2787 = vmatmul.mubr.bf16.gmra.mrb[4].mxu0 %v2107_v12  ;;  %2948 = vmatmul.mubr.bf16.gmra.mrb[4].mxu1 %v2109_v17  ;;  %v1885_v57 = vmul.f32 %v5529_v20, %v1565_v27  ;;  %v1437_v37 = vmul.f32 %v5561_v39, %v5561_v39  ;;  %v4303_v27 = vld [vmem:[%s4805_s11 + $0x190] sm:$0xff] }
 0x128   : > { %v5565_v41 = vpop.eup %4220  ;;  %2794 = vmatprep.mubr.bf16.mxu0 %v2116_v53  ;;  %2955 = vmatprep.mubr.bf16.mxu1 %v2118_v47  ;;  %v638_v63 = vpop.xlane.xlu1 %637  ;;  %v2115_v56 = vpack.c.bf16 %v5555_v55, %v1875_v21  ;;  %v1877_v4 = vmul.f32 %v5524_v18, %v1557_v22  ;;  %4224 = vrsqrt.f32 %v1787_v48  ;;  %v1580_v31 = vsub.f32 %v4297_v28, %v5445_v32  ;;  %v4302_v47 = vld [vmem:[%s4805_s11 + $0x180] sm:$0xff]  ;;  %v4196_v22 = vld [vmem:[%s5026_s30 + $0x168] sm:$0xff]  }
 0x129   : > { %v1500_v43 = vmax.f32 %v1468_v42, 0.0  ;;  %3863 = vmatpush3.bf16.msra.mxu0 %v4185_v5  ;;  %3975 = vmatpush3.bf16.msra.mxu1 %v4187_v11  ;;  %v1574_v26 = vsub.f32 %v4298_v23, %v5439_v10  ;;  %v1892_v45 = vmul.f32 %v5565_v41, %v1572_v61  ;;  %v1582_v1 = vsub.f32 %v4299_v24, %v5445_v32  ;;  %v4193_v11 = vld [vmem:[%s5026_s30 + $0x120] sm:$0xff]   ;;  %v4199_v28 = vld [vmem:[%s5026_s30 + $0x1a8] sm:$0xff]  }
 0x12a   : > { %3864 = vmatprep.subr.bf16.mxu0 %v4188_v6  ;;  %v2117_v38 = vpack.c.bf16 %v1885_v57, %v1877_v4  ;;  %3976 = vmatprep.subr.bf16.mxu1 %v4190_v51  ;;  %v5589_v17 = vmul.f32 0.0009765625, %v638_v63  ;;  %v1579_v44 = vsub.f32 %v4300_v14, %v5445_v32  ;;  %v1581_v54 = vsub.f32 %v4301_v40, %v5445_v32  ;;  %v4195_v48 = vld [vmem:[%s5026_s30 + $0x1a0] sm:$0xff]   ;;  %v4198_v4 = vld [vmem:[%s5026_s30 + $0x1e8] sm:$0xff]   ;;  %v4306_v14 = vld [vmem:[%s4805_s11 + $0x218] sm:$0xff] }
 0x12b   : > { %v1788_v2 = vadd.f32 1e-06, %v1500_v43  ;;  %v1205_v59 = vpop.xlane.xlu0 %1204  ;;  %v1894_v62 = vmul.f32 %v5565_v41, %v1574_v26  ;;  %v1571_v55 = vsub.f32 %v4302_v47, %v5439_v10  ;;  %v1573_v5 = vsub.f32 %v4303_v27, %v5439_v10  ;;  %v4310_v27 = vld [vmem:[%s4805_s11 + $0x210] sm:$0xff] }
 0x12c   : > { %v5587_v12 = vpop.eup %4222  ;;  %v1405_v29 = vmul.f32 0.0009765625, %v1205_v59  ;;  %v1438_v51 = vmul.f32 %v5589_v17, %v5589_v17  ;;  %v4304_v59 = vld [vmem:[%s4805_s11 + $0x208] sm:$0xff] }
 0x12d   : > { %4226 = vrsqrt.f32 %v1788_v2  ;;  %v1900_v53 = vmul.f32 %v5587_v12, %v1580_v31  ;;  %v1902_v8 = vmul.f32 %v5587_v12, %v1582_v1  ;;  %3865 = vmatpush3.bf16.msra.mxu0 %v4189_v60  ;;  %3977 = vmatpush3.bf16.msra.mxu1 %v4191_v13  ;;  %v5602_v49 = vmul.f32 %v5587_v12, %v1579_v44  ;;  %v4200_v1 = vld [vmem:[%s5026_s30 + $0x170] sm:$0xff]  }
 0x12e   : > { %v1469_v25 = vsub.f32 %v1405_v29, %v1437_v37  ;;  %3866 = vmatprep.subr.bf16.mxu0 %v4192_v52  ;;  %v1901_v35 = vmul.f32 %v5587_v12, %v1581_v54  ;;  %3978 = vmatprep.subr.bf16.mxu1 %v4194_v50  ;;  %v1893_v61 = vmul.f32 %v5565_v41, %v1573_v5  ;;  %v4197_v37 = vld [vmem:[%s5026_s30 + $0x128] sm:$0xff]   ;;  %v4202_v29 = vld [vmem:[%s5026_s30 + $0x1f0] sm:$0xff]   ;;  %v4307_v50 = vld [vmem:[%s4805_s11 + $0x258] sm:$0xff] }
 0x12f   : > { %v1214_v21 = vpop.xlane.xlu1 %1213  ;;  %2795 = vmatmul.mubr.bf16.gmra.mrb[8].mxu0 %v2115_v56  ;;  %2956 = vmatmul.mubr.bf16.gmra.mrb[8].mxu1 %v2117_v38  ;;  %v2124_v6 = vpack.c.bf16 %v1900_v53, %v1892_v45  ;;  %v2126_v42 = vpack.c.bf16 %v1902_v8, %v1894_v62  ;;  %v647_v63 = vpop.xlane.xlu0 %646  ;;  %v1891_v56 = vmul.f32 %v5565_v41, %v1571_v55  ;;  %v4305_v45 = vld [vmem:[%s4805_s11 + $0x248] sm:$0xff]  ;;  %v4308_v8 = vld [vmem:[%s4805_s11 + $0x200] sm:$0xff] }
 0x130   : > { %v1501_v57 = vmax.f32 %v1469_v25, 0.0  ;;  %v1406_v43 = vmul.f32 0.0009765625, %v1214_v21  ;;  %v5613_v9 = vmul.f32 0.0009765625, %v647_v63  ;;  %v2125_v26 = vpack.c.bf16 %v1901_v35, %v1893_v61  ;;  %v4309_v55 = vld [vmem:[%s4805_s11 + $0x240] sm:$0xff]  ;;  %v4311_v35 = vld [vmem:[%s4805_s11 + $0x250] sm:$0xff] }
 0x131   : > { %2802 = vmatprep.mubr.bf16.mxu0 %v2124_v6  ;;  %2963 = vmatprep.mubr.bf16.mxu1 %v2126_v42  ;;  %v2123_v23 = vpack.c.bf16 %v5602_v49, %v1891_v56  ;;  %v1588_v38 = vsub.f32 %v4304_v59, %v5506_v16  ;;  %v1596_v24 = vsub.f32 %v4305_v45, %v5531_v33 }
 0x132   : > { %v1789_v60 = vadd.f32 1e-06, %v1501_v57  ;;  %v1470_v13 = vsub.f32 %v1406_v43, %v1438_v51  ;;  %3867 = vmatpush3.bf16.msra.mxu0 %v4193_v11  ;;  %3979 = vmatpush3.bf16.msra.mxu1 %v4195_v48  ;;  %v5620_v52 = vpop.eup %4224  ;;  %v1439_v62 = vmul.f32 %v5613_v9, %v5613_v9  ;;  %v1590_v44 = vsub.f32 %v4306_v14, %v5506_v16  ;;  %v4201_v11 = vld [vmem:[%s5026_s30 + $0x130] sm:$0xff]   ;;  %v4204_v51 = vld [vmem:[%s5026_s30 + $0x178] sm:$0xff]  }
 0x133   : > { %v656_v31 = vpop.xlane.xlu1 %655  ;;  %3868 = vmatprep.subr.bf16.mxu0 %v4196_v22  ;;  %3980 = vmatprep.subr.bf16.mxu1 %v4198_v4  ;;  %v1598_v53 = vsub.f32 %v4307_v50, %v5531_v33  ;;  %v1587_v40 = vsub.f32 %v4308_v8, %v5506_v16  ;;  %v1595_v49 = vsub.f32 %v4309_v55, %v5531_v33  ;;  %v4203_v57 = vld [vmem:[%s5026_s30 + $0x1b0] sm:$0xff]   ;;  %v4312_v50 = vld [vmem:[%s4805_s11 + $0x288] sm:$0xff]  ;;  %v4314_v55 = vld [vmem:[%s4805_s11 + $0x298] sm:$0xff] }
 0x134   : > { %4228 = vrsqrt.f32 %v1789_v60  ;;  %v1502_v2 = vmax.f32 %v1470_v13, 0.0  ;;  %v5636_v25 = vmul.f32 0.0009765625, %v656_v31  ;;  %v1589_v5 = vsub.f32 %v4310_v27, %v5506_v16  ;;  %v4313_v8 = vld [vmem:[%s4805_s11 + $0x2c8] sm:$0xff]  ;;  %v4315_v27 = vld [vmem:[%s4805_s11 + $0x2d8] sm:$0xff] }
 0x135   : > { %v1908_v6 = vmul.f32 %v5620_v52, %v1588_v38  ;;  %v1910_v42 = vmul.f32 %v5620_v52, %v1590_v44  ;;  %v1597_v22 = vsub.f32 %v4311_v35, %v5531_v33  ;;  %v1907_v61 = vmul.f32 %v5620_v52, %v1587_v40 }
 0x136   : > { %v1790_v54 = vadd.f32 1e-06, %v1502_v2  ;;  %v1223_v47 = vpop.xlane.xlu0 %1222  ;;  %3869 = vmatpush3.bf16.msra.mxu0 %v4197_v37  ;;  %3981 = vmatpush3.bf16.msra.mxu1 %v4199_v28  ;;  %v1909_v60 = vmul.f32 %v5620_v52, %v1589_v5  ;;  %v4206_v37 = vld [vmem:[%s5026_s30 + $0x1f8] sm:$0xff]   ;;  %v1440_v28 = vmul.f32 %v5636_v25, %v5636_v25  ;;  %v1612_v40 = vsub.f32 %v4313_v8, %v5589_v17 }
 0x137   : > { %v5643_v48 = vpop.eup %4226  ;;  %v1407_v21 = vmul.f32 0.0009765625, %v1223_v47  ;;  %2803 = vmatmul.mubr.bf16.gmra.mrb[12].mxu0 %v2123_v23  ;;  %2964 = vmatmul.mubr.bf16.gmra.mrb[12].mxu1 %v2125_v26  ;;  %v4205_v2 = vld [vmem:[%s5026_s30 + $0x138] sm:$0xff]   ;;  %v1614_v5 = vsub.f32 %v4315_v27, %v5589_v17 }
 0x138   : > { %4230 = vrsqrt.f32 %v1790_v54  ;;  %v1916_v43 = vmul.f32 %v5643_v48, %v1596_v24  ;;  %v1918_v63 = vmul.f32 %v5643_v48, %v1598_v53  ;;  %v1915_v4 = vmul.f32 %v5643_v48, %v1595_v49  ;;  %3870 = vmatprep.subr.bf16.mxu0 %v4200_v1  ;;  %3982 = vmatprep.subr.bf16.mxu1 %v4202_v29 }
 0x139   : > { %v1471_v56 = vsub.f32 %v1407_v21, %v1439_v62  ;;  %v1917_v13 = vmul.f32 %v5643_v48, %v1597_v22  ;;  %v4207_v62 = vld [vmem:[%s5026_s30 + $0x1b8] sm:$0xff]   ;;  %v1604_v53 = vsub.f32 %v4312_v50, %v5561_v39  ;;  %v1606_v49 = vsub.f32 %v4314_v55, %v5561_v39  ;;  %v4318_v22 = vld [vmem:[%s4805_s11 + $0x290] sm:$0xff] }
 0x13a   : > { %v1232_v31 = vpop.xlane.xlu1 %1231  ;;  %v2132_v23 = vpack.c.bf16 %v1916_v43, %v1908_v6  ;;  %v2134_v26 = vpack.c.bf16 %v1918_v63, %v1910_v42  ;;  %3871 = vmatpush3.bf16.msra.mxu0 %v4201_v11  ;;  %v2131_v24 = vpack.c.bf16 %v1915_v4, %v1907_v61  ;;  %3983 = vmatpush3.bf16.msra.mxu1 %v4203_v57  ;;  %v4316_v11 = vld [vmem:[%s4805_s11 + $0x280] sm:$0xff]  ;;  %v4320_v4 = vld [vmem:[%s4805_s11 + $0x28] sm:$0xff] }
 0x13b   : > { %v1503_v59 = vmax.f32 %v1471_v56, 0.0  ;;  %v1408_v38 = vmul.f32 0.0009765625, %v1232_v31  ;;  %v665_v45 = vpop.xlane.xlu0 %664  ;;  %v2133_v1 = vpack.c.bf16 %v1917_v13, %v1909_v60  ;;  %3872 = vmatprep.subr.bf16.mxu0 %v4204_v51  ;;  %3984 = vmatprep.subr.bf16.mxu1 %v4206_v37  ;;  %v1603_v21 = vsub.f32 %v4316_v11, %v5561_v39  ;;  %v4317_v6 = vld [vmem:[%s4805_s11 + $0x2c0] sm:$0xff]  ;;  %v4319_v51 = vld [vmem:[%s4805_s11 + $0x2d0] sm:$0xff]  ;;  %v4321_v61 = vld [vmem:[%s4805_s11 + $0x68] sm:$0xff] }
 0x13c   : > { %v5661_v29 = vmul.f32 0.0009765625, %v665_v45  ;;  %2810 = vmatprep.mubr.bf16.mxu0 %v2132_v23  ;;  %2971 = vmatprep.mubr.bf16.mxu1 %v2134_v26  ;;  %v1611_v42 = vsub.f32 %v4317_v6, %v5589_v17  ;;  %v1605_v57 = vsub.f32 %v4318_v22, %v5561_v39  ;;  %v1613_v43 = vsub.f32 %v4319_v51, %v5589_v17  ;;  %v4322_v13 = vld [vmem:[%s4805_s11 + $0x38] sm:$0xff] }
 0x13d   : > { %v1791_v14 = vadd.f32 1e-06, %v1503_v59  ;;  %v1472_v44 = vsub.f32 %v1408_v38, %v1440_v28  ;;  %v1528_v56 = vsub.f32 %v4320_v4, %v5366_v58  ;;  %v1536_v60 = vsub.f32 %v4321_v61, %v5416_v15  ;;  %v4325_v61 = vld [vmem:[%s4805_s11 + $0x348] sm:$0xff] }
 0x13e   : > { %v5668_v54 = vpop.eup %4228  ;;  %v674_v47 = vpop.xlane.xlu1 %673  ;;  %3873 = vmatpush3.bf16.msra.mxu0 %v4205_v2  ;;  %v1441_v63 = vmul.f32 %v5661_v29, %v5661_v29  ;;  %3985 = vmatpush3.bf16.msra.mxu1 %v4207_v62  ;;  %v1530_v37 = vsub.f32 %v4322_v13, %v5366_v58  ;;  %v4326_v13 = vld [vmem:[%s4805_s11 + $0x318] sm:$0xff] }
 0x13f   : > { %4232 = vrsqrt.f32 %v1791_v14  ;;  %v1504_v35 = vmax.f32 %v1472_v44, 0.0  ;;  %2811 = vmatmul.mubr.bf16.gmra.mrb[16].mxu0 %v2131_v24  ;;  %2972 = vmatmul.mubr.bf16.gmra.mrb[16].mxu1 %v2133_v1  ;;  %v5690_v31 = vmul.f32 0.0009765625, %v674_v47  ;;  %v1924_v26 = vmul.f32 %v5668_v54, %v1604_v53  ;;  %v4323_v47 = vld [vmem:[%s4805_s11 + $0x78] sm:$0xff] }
 0x140   : > { %v1926_v2 = vmul.f32 %v5668_v54, %v1606_v49  ;;  %v1923_v45 = vmul.f32 %v5668_v54, %v1603_v21  ;;  %v1925_v24 = vmul.f32 %v5668_v54, %v1605_v57  ;;  %v5699_v1 = vmul.f32 %v5465_v19, %v1528_v56 }
 0x141   : > { %v1792_v28 = vadd.f32 1e-06, %v1504_v35  ;;  %v1241_v23 = vpop.xlane.xlu0 %1240  ;;  %v5706_v8 = vmul.f32 %v5489_v7, %v1536_v60  ;;  %v1538_v55 = vsub.f32 %v4323_v47, %v5416_v15  ;;  %v5711_v21 = vmul.f32 %v5465_v19, %v1530_v37 }
 0x142   : > { %v5694_v59 = vpop.eup %4230  ;;  %v1409_v38 = vmul.f32 0.0009765625, %v1241_v23  ;;  %v1442_v57 = vmul.f32 %v5690_v31, %v5690_v31  ;;  %v1628_v60 = vsub.f32 %v4325_v61, %v5636_v25  ;;  %v1622_v37 = vsub.f32 %v4326_v13, %v5613_v9 }
 0x143   : > { %4234 = vrsqrt.f32 %v1792_v28  ;;  %v1932_v62 = vmul.f32 %v5694_v59, %v1612_v40  ;;  %v1934_v14 = vmul.f32 %v5694_v59, %v1614_v5  ;;  %v1931_v44 = vmul.f32 %v5694_v59, %v1611_v42 }
 0x144   : > { %v1473_v50 = vsub.f32 %v1409_v38, %v1441_v63  ;;  %v1933_v53 = vmul.f32 %v5694_v59, %v1613_v43  ;;  %v5716_v22 = vmul.f32 %v5489_v7, %v1538_v55  ;;  %v4324_v63 = vld [vmem:[%s4805_s11 + $0x308] sm:$0xff]  ;;  %v4331_v55 = vld [vmem:[%s4805_s11 + $0x350] sm:$0xff] }
 0x145   : > { %v2140_v49 = vpack.c.bf16 %v1932_v62, %v1924_v26  ;;  %v2142_v27 = vpack.c.bf16 %v1934_v14, %v1926_v2  ;;  %v2139_v11 = vpack.c.bf16 %v1931_v44, %v1923_v45  ;;  %v1620_v4 = vsub.f32 %v4324_v63, %v5613_v9  ;;  %v4327_v2 = vld [vmem:[%s4805_s11 + $0x358] sm:$0xff]  ;;  %v4328_v45 = vld [vmem:[%s4805_s11 + $0x300] sm:$0xff] }
 0x146   : > { %v1505_v40 = vmax.f32 %v1473_v50, 0.0  ;;  %v1250_v5 = vpop.xlane.xlu1 %1249  ;;  %v683_v6 = vpop.xlane.xlu0 %682  ;;  %v2141_v42 = vpack.c.bf16 %v1933_v53, %v1925_v24  ;;  %v1630_v38 = vsub.f32 %v4327_v2, %v5636_v25  ;;  %v1619_v24 = vsub.f32 %v4328_v45, %v5613_v9  ;;  %v4329_v62 = vld [vmem:[%s4805_s11 + $0x340] sm:$0xff]  ;;  %v4330_v53 = vld [vmem:[%s4805_s11 + $0x310] sm:$0xff] }
 0x147   : > { %v1410_v51 = vmul.f32 0.0009765625, %v1250_v5  ;;  %v5720_v43 = vmul.f32 0.0009765625, %v683_v6  ;;  %2818 = vmatprep.mubr.bf16.mxu0 %v2140_v49  ;;  %2979 = vmatprep.mubr.bf16.mxu1 %v2142_v27  ;;  %v1627_v14 = vsub.f32 %v4329_v62, %v5636_v25  ;;  %v1621_v47 = vsub.f32 %v4330_v53, %v5613_v9  ;;  %v4332_v27 = vld [vmem:[%s4805_s11 + $0x20] sm:$0xff]  ;;  %v4335_v2 = vld [vmem:[%s4805_s11 + $0x70] sm:$0xff] }
 0x148   : > { %v1793_v56 = vadd.f32 1e-06, %v1505_v40  ;;  %2819 = vmatmul.mubr.bf16.gmra.mrb[20].mxu0 %v2139_v11  ;;  %2980 = vmatmul.mubr.bf16.gmra.mrb[20].mxu1 %v2141_v42  ;;  %v1629_v49 = vsub.f32 %v4331_v55, %v5636_v25  ;;  %v1527_v11 = vsub.f32 %v4332_v27, %v5366_v58  ;;  %v4333_v6 = vld [vmem:[%s4805_s11 + $0x60] sm:$0xff]  ;;  %v1537_v45 = vsub.f32 %v4335_v2, %v5416_v15 }
 0x149   : > { %6868 = vst [vmem:[#allocation8_spill] sm:$0xff] %v5720_v43  ;;  %v5730_v23 = vpop.eup %4232  ;;  %v1474_v26 = vsub.f32 %v1410_v51, %v1442_v57  ;;  %v1443_v50 = vmul.f32 %v5720_v43, %v5720_v43  ;;  %v1535_v42 = vsub.f32 %v4333_v6, %v5416_v15  ;;  %v4334_v57 = vld [vmem:[%s4805_s11 + $0x30] sm:$0xff] }
 0x14a   : > { %v692_v44 = vpop.xlane.xlu1 %691  ;;  %4236 = vrsqrt.f32 %v1793_v56  ;;  %v1529_v51 = vsub.f32 %v4334_v57, %v5366_v58  ;;  %v1940_v61 = vmul.f32 %v5730_v23, %v1620_v4  ;;  %v1942_v13 = vmul.f32 %v5730_v23, %v1622_v37 }
 0x14b   : > { %v1506_v40 = vmax.f32 %v1474_v26, 0.0  ;;  %v1259_v5 = vpop.xlane.xlu0 %1258  ;;  %v5756_v56 = vmul.f32 0.0009765625, %v692_v44  ;;  %v1939_v26 = vmul.f32 %v5730_v23, %v1619_v24  ;;  %v5760_v55 = vmul.f32 %v5489_v7, %v1535_v42 }
 0x14c   : > { %v1411_v63 = vmul.f32 0.0009765625, %v1259_v5  ;;  %v1941_v15 = vmul.f32 %v5730_v23, %v1621_v47  ;;  %v5768_v44 = vmul.f32 %v5465_v19, %v1527_v11 }
 0x14d   : > { %v5754_v62 = vpop.eup %4234  ;;  %v1794_v53 = vadd.f32 1e-06, %v1506_v40  ;;  %6869 = vst [vmem:[#allocation9_spill] sm:$0xff] %v5756_v56 }
 0x14e   : > { %v1475_v27 = vsub.f32 %v1411_v63, %v1443_v50  ;;  %v1948_v58 = vmul.f32 %v5754_v62, %v1628_v60  ;;  %v1950_v4 = vmul.f32 %v5754_v62, %v1630_v38  ;;  %v1947_v37 = vmul.f32 %v5754_v62, %v1627_v14 }
 0x14f   : > { %4238 = vrsqrt.f32 %v1794_v53  ;;  %v1949_v5 = vmul.f32 %v5754_v62, %v1629_v49  ;;  %v5773_v38 = vmul.f32 %v5465_v19, %v1529_v51  ;;  %v5776_v14 = vmul.f32 %v5489_v7, %v1537_v45 }
 0x150   : > { %v1507_v40 = vmax.f32 %v1475_v27, 0.0  ;;  %v2148_v24 = vpack.c.bf16 %v1948_v58, %v1940_v61  ;;  %v2150_v6 = vpack.c.bf16 %v1950_v4, %v1942_v13  ;;  %v2147_v42 = vpack.c.bf16 %v1947_v37, %v1939_v26  ;;  %v4336_v13 = vld [vmem:[%s4805_s11 + $0x388] sm:$0xff]  ;;  %v4337_v26 = vld [vmem:[%s4805_s11 + $0x398] sm:$0xff]  ;;  %v4338_v58 = vld [vmem:[%s4805_s11 + $0x380] sm:$0xff] }
 0x151   : > { %v1268_v57 = vpop.xlane.xlu1 %1267  ;;  %v2149_v50 = vpack.c.bf16 %v1949_v5, %v1941_v15  ;;  %v1444_v49 = vmul.f32 %v5756_v56, %v5756_v56  ;;  %v701_v63 = vpop.xlane.xlu0 %700  ;;  %v1636_v2 = vsub.f32 %v4336_v13, %v5661_v29  ;;  %v1638_v27 = vsub.f32 %v4337_v26, %v5661_v29  ;;  %v4339_v15 = vld [vmem:[%s4805_s11 + $0x3c8] sm:$0xff] }
 0x152   : > { %v1795_v47 = vadd.f32 1e-06, %v1507_v40  ;;  %v1412_v11 = vmul.f32 0.0009765625, %v1268_v57  ;;  %2826 = vmatprep.mubr.bf16.mxu0 %v2148_v24  ;;  %2987 = vmatprep.mubr.bf16.mxu1 %v2150_v6  ;;  %v5780_v61 = vmul.f32 0.0009765625, %v701_v63  ;;  %v1635_v4 = vsub.f32 %v4338_v58, %v5661_v29  ;;  %v4340_v40 = vld [vmem:[%s4805_s11 + $0x3d8] sm:$0xff]  ;;  %v4341_v6 = vld [vmem:[%s4805_s11 + $0x390] sm:$0xff] }
 0x153   : > { %2827 = vmatmul.mubr.bf16.gmra.mrb[24].mxu0 %v2147_v42  ;;  %2988 = vmatmul.mubr.bf16.gmra.mrb[24].mxu1 %v2149_v50  ;;  %v1644_v5 = vsub.f32 %v4339_v15, %v5690_v31  ;;  %v1646_v24 = vsub.f32 %v4340_v40, %v5690_v31  ;;  %v1637_v42 = vsub.f32 %v4341_v6, %v5661_v29  ;;  %v4343_v63 = vld [vmem:[%s4805_s11 + $0x3d0] sm:$0xff] }
 0x154   : > { %6870 = vst [vmem:[#allocation10_spill] sm:$0xff] %v5780_v61  ;;  %v1476_v7 = vsub.f32 %v1412_v11, %v1444_v49  ;;  %v5784_v51 = vpop.eup %4236  ;;  %4240 = vrsqrt.f32 %v1795_v47  ;;  %v1445_v37 = vmul.f32 %v5780_v61, %v5780_v61  ;;  %v4342_v49 = vld [vmem:[%s4805_s11 + $0x3c0] sm:$0xff] }
 0x155   : > { %6871 = vst [vmem:[#allocation11_spill] sm:$0xff] %v5784_v51  ;;  %v710_v53 = vpop.xlane.xlu1 %709  ;;  %v1956_v47 = vmul.f32 %v5784_v51, %v1636_v2  ;;  %v1643_v11 = vsub.f32 %v4342_v49, %v5690_v31  ;;  %v1958_v15 = vmul.f32 %v5784_v51, %v1638_v27  ;;  %v1955_v40 = vmul.f32 %v5784_v51, %v1635_v4 }
 0x156   : > { %v1508_v45 = vmax.f32 %v1476_v7, 0.0  ;;  %v1645_v7 = vsub.f32 %v4343_v63, %v5690_v31  ;;  %v5807_v26 = vmul.f32 0.0009765625, %v710_v53  ;;  %v1957_v19 = vmul.f32 %v5784_v51, %v1637_v42 }
 0x158   : > { %v1796_v57 = vadd.f32 1e-06, %v1508_v45  ;;  %v1277_v50 = vpop.xlane.xlu0 %1276  ;;  %6873 = vst [vmem:[#allocation13_spill] sm:$0xff] %v5807_v26  ;;  %v1446_v4 = vmul.f32 %v5807_v26, %v5807_v26 }
 0x159   : > { %v5805_v13 = vpop.eup %4238  ;;  %v1413_v58 = vmul.f32 0.0009765625, %v1277_v50 }
 0x15a   : > { %6872 = vst [vmem:[#allocation12_spill] sm:$0xff] %v5805_v13  ;;  %4242 = vrsqrt.f32 %v1796_v57  ;;  %v1964_v45 = vmul.f32 %v5805_v13, %v1644_v5  ;;  %v1966_v2 = vmul.f32 %v5805_v13, %v1646_v24  ;;  %v1963_v6 = vmul.f32 %v5805_v13, %v1643_v11 }
 0x15b   : > { %v1477_v49 = vsub.f32 %v1413_v58, %v1445_v37  ;;  %v1965_v63 = vmul.f32 %v5805_v13, %v1645_v7  ;;  %v4344_v7 = vld [vmem:[%s4805_s11 + $0x408] sm:$0xff] }
 0x15c   : > { %v1286_v60 = vpop.xlane.xlu1 %1285  ;;  %v2156_v53 = vpack.c.bf16 %v1964_v45, %v1956_v47  ;;  %v2158_v50 = vpack.c.bf16 %v1966_v2, %v1958_v15  ;;  %v2155_v28 = vpack.c.bf16 %v1963_v6, %v1955_v40  ;;  %v719_v57 = vpop.xlane.xlu0 %718  ;;  %v1652_v58 = vsub.f32 %v4344_v7, %v5720_v43  ;;  %v4346_v45 = vld [vmem:[%s4805_s11 + $0x400] sm:$0xff]  ;;  %v4347_v6 = vld [vmem:[%s4805_s11 + $0x410] sm:$0xff] }
 0x15d   : > { %v1509_v27 = vmax.f32 %v1477_v49, 0.0  ;;  %v1414_v5 = vmul.f32 0.0009765625, %v1286_v60  ;;  %v2157_v24 = vpack.c.bf16 %v1965_v63, %v1957_v19  ;;  %v5818_v11 = vmul.f32 0.0009765625, %v719_v57  ;;  %v4345_v19 = vld [vmem:[%s4805_s11 + $0x418] sm:$0xff]  ;;  %v4348_v63 = vld [vmem:[%s4805_s11 + $0x448] sm:$0xff]  ;;  %v4351_v7 = vld [vmem:[%s4805_s11 + $0x450] sm:$0xff] }
 0x15e   : > { %2834 = vmatprep.mubr.bf16.mxu0 %v2156_v53  ;;  %2995 = vmatprep.mubr.bf16.mxu1 %v2158_v50  ;;  %v5820_v47 = vpop.eup %4240  ;;  %v1654_v40 = vsub.f32 %v4345_v19, %v5720_v43  ;;  %v1651_v2 = vsub.f32 %v4346_v45, %v5720_v43  ;;  %v1660_v53 = vsub.f32 %v4348_v63, %v5756_v56  ;;  %v4349_v50 = vld [vmem:[%s4805_s11 + $0x458] sm:$0xff] }
 0x15f   : > { %6874 = vst [vmem:[#allocation14_spill] sm:$0xff] %v5818_v11  ;;  %v1797_v37 = vadd.f32 1e-06, %v1509_v27  ;;  %v1478_v42 = vsub.f32 %v1414_v5, %v1446_v4  ;;  %2835 = vmatmul.mubr.bf16.gmra.mrb[28].mxu0 %v2155_v28  ;;  %2996 = vmatmul.mubr.bf16.gmra.mrb[28].mxu1 %v2157_v24  ;;  %6875 = vst [vmem:[#allocation15_spill] sm:$0xff] %v5820_v47  ;;  %v1653_v28 = vsub.f32 %v4347_v6, %v5720_v43  ;;  %v4350_v24 = vld [vmem:[%s4805_s11 + $0x440] sm:$0xff] }
 0x160   : > { %v728_v15 = vpop.xlane.xlu1 %727  ;;  %v1447_v49 = vmul.f32 %v5818_v11, %v5818_v11  ;;  %v1662_v27 = vsub.f32 %v4349_v50, %v5756_v56  ;;  %v1972_v57 = vmul.f32 %v5820_v47, %v1652_v58  ;;  %v1661_v19 = vsub.f32 %v4351_v7, %v5756_v56 }
 0x161   : > { %v1510_v60 = vmax.f32 %v1478_v42, 0.0  ;;  %4244 = vrsqrt.f32 %v1797_v37  ;;  %v1659_v42 = vsub.f32 %v4350_v24, %v5756_v56  ;;  %v5843_v45 = vmul.f32 0.0009765625, %v728_v15 }
 0x162   : > { %v1974_v63 = vmul.f32 %v5820_v47, %v1654_v40  ;;  %v1971_v35 = vmul.f32 %v5820_v47, %v1651_v2  ;;  %v1973_v43 = vmul.f32 %v5820_v47, %v1653_v28 }
 0x163   : > { %v1798_v4 = vadd.f32 1e-06, %v1510_v60  ;;  %v1295_v5 = vpop.xlane.xlu0 %1294  ;;  %6877 = vst [vmem:[#allocation17_spill] sm:$0xff] %v5843_v45  ;;  %v1448_v2 = vmul.f32 %v5843_v45, %v5843_v45 }
 0x164   : > { %v5841_v37 = vpop.eup %4242  ;;  %v1415_v6 = vmul.f32 0.0009765625, %v1295_v5 }
 0x165   : > { %6876 = vst [vmem:[#allocation16_spill] sm:$0xff] %v5841_v37  ;;  %4246 = vrsqrt.f32 %v1798_v4  ;;  %v1980_v60 = vmul.f32 %v5841_v37, %v1660_v53  ;;  %v1982_v58 = vmul.f32 %v5841_v37, %v1662_v27  ;;  %v1979_v50 = vmul.f32 %v5841_v37, %v1659_v42 }
 0x166   : > { %v1479_v24 = vsub.f32 %v1415_v6, %v1447_v49  ;;  %v1981_v7 = vmul.f32 %v5841_v37, %v1661_v19 }
 0x167   : > { %v1304_v56 = vpop.xlane.xlu1 %1303  ;;  %v2164_v15 = vpack.c.bf16 %v1980_v60, %v1972_v57  ;;  %v2166_v5 = vpack.c.bf16 %v1982_v58, %v1974_v63  ;;  %v2163_v51 = vpack.c.bf16 %v1979_v50, %v1971_v35  ;;  %v737_v4 = vpop.xlane.xlu0 %736  ;;  %v4352_v57 = vld [vmem:[%s4805_s11 + $0x488] sm:$0xff]  ;;  %v4354_v60 = vld [vmem:[%s4805_s11 + $0x480] sm:$0xff]  ;;  %v4355_v50 = vld [vmem:[%s4805_s11 + $0x490] sm:$0xff] }
 0x168   : > { %v1511_v40 = vmax.f32 %v1479_v24, 0.0  ;;  %v1416_v53 = vmul.f32 0.0009765625, %v1304_v56  ;;  %v2165_v27 = vpack.c.bf16 %v1981_v7, %v1973_v43  ;;  %v5854_v42 = vmul.f32 0.0009765625, %v737_v4  ;;  %v4353_v43 = vld [vmem:[%s4805_s11 + $0x498] sm:$0xff]  ;;  %v4356_v7 = vld [vmem:[%s4805_s11 + $0x4c8] sm:$0xff] }
 0x169   : > { %2842 = vmatprep.mubr.bf16.mxu0 %v2164_v15  ;;  %3003 = vmatprep.mubr.bf16.mxu1 %v2166_v5  ;;  %v1668_v19 = vsub.f32 %v4352_v57, %v5780_v61  ;;  %v1670_v63 = vsub.f32 %v4353_v43, %v5780_v61  ;;  %v1667_v58 = vsub.f32 %v4354_v60, %v5780_v61  ;;  %v4357_v5 = vld [vmem:[%s4805_s11 + $0x4d8] sm:$0xff]  ;;  %v4359_v57 = vld [vmem:[%s4805_s11 + $0x4d0] sm:$0xff] }
 0x16a   : > { %6878 = vst [vmem:[#allocation18_spill] sm:$0xff] %v5854_v42  ;;  %v1799_v28 = vadd.f32 1e-06, %v1511_v40  ;;  %v1480_v49 = vsub.f32 %v1416_v53, %v1448_v2  ;;  %2843 = vmatmul.mubr.bf16.gmra.mrb[32].mxu0 %v2163_v51  ;;  %3004 = vmatmul.mubr.bf16.gmra.mrb[32].mxu1 %v2165_v27  ;;  %v1669_v51 = vsub.f32 %v4355_v50, %v5780_v61  ;;  %v4358_v27 = vld [vmem:[%s4805_s11 + $0x4c0] sm:$0xff] }
 0x16b   : > { %v746_v35 = vpop.xlane.xlu1 %745  ;;  %v5858_v6 = vpop.eup %4244  ;;  %v1449_v24 = vmul.f32 %v5854_v42, %v5854_v42  ;;  %v1676_v15 = vsub.f32 %v4356_v7, %v5807_v26  ;;  %v1678_v40 = vsub.f32 %v4357_v5, %v5807_v26  ;;  %v1677_v43 = vsub.f32 %v4359_v57, %v5807_v26 }
 0x16c   : > { %6879 = vst [vmem:[#allocation19_spill] sm:$0xff] %v5858_v6  ;;  %v1512_v56 = vmax.f32 %v1480_v49, 0.0  ;;  %4248 = vrsqrt.f32 %v1799_v28  ;;  %v5872_v53 = vmul.f32 0.0009765625, %v746_v35  ;;  %v1675_v49 = vsub.f32 %v4358_v27, %v5807_v26 }
 0x16d   : > { %v1988_v50 = vmul.f32 %v5858_v6, %v1668_v19  ;;  %v1990_v7 = vmul.f32 %v5858_v6, %v1670_v63  ;;  %v1987_v61 = vmul.f32 %v5858_v6, %v1667_v58  ;;  %v1989_v47 = vmul.f32 %v5858_v6, %v1669_v51 }
 0x16e   : > { %v1800_v2 = vadd.f32 1e-06, %v1512_v56  ;;  %6880 = vst [vmem:[#allocation20_spill] sm:$0xff] %v5872_v53  ;;  %v1313_v4 = vpop.xlane.xlu0 %1312  ;;  %v1450_v58 = vmul.f32 %v5872_v53, %v5872_v53 }
 0x16f   : > { %v5878_v28 = vpop.eup %4246  ;;  %v1417_v60 = vmul.f32 0.0009765625, %v1313_v4 }
 0x170   : > { %6881 = vst [vmem:[#allocation21_spill] sm:$0xff] %v5878_v28  ;;  %4250 = vrsqrt.f32 %v1800_v2  ;;  %v1996_v35 = vmul.f32 %v5878_v28, %v1676_v15  ;;  %v1998_v56 = vmul.f32 %v5878_v28, %v1678_v40  ;;  %v1995_v5 = vmul.f32 %v5878_v28, %v1675_v49 }
 0x171   : > { %v1481_v27 = vsub.f32 %v1417_v60, %v1449_v24  ;;  %v1997_v57 = vmul.f32 %v5878_v28, %v1677_v43  ;;  %v4360_v43 = vld [vmem:[%s4805_s11 + $0x508] sm:$0xff] }
 0x172   : > { %v1322_v26 = vpop.xlane.xlu1 %1321  ;;  %v2172_v4 = vpack.c.bf16 %v1996_v35, %v1988_v50  ;;  %v2174_v19 = vpack.c.bf16 %v1998_v56, %v1990_v7  ;;  %v2171_v37 = vpack.c.bf16 %v1995_v5, %v1987_v61  ;;  %v1684_v60 = vsub.f32 %v4360_v43, %v5818_v11  ;;  %v4361_v50 = vld [vmem:[%s4805_s11 + $0x518] sm:$0xff]  ;;  %v4362_v35 = vld [vmem:[%s4805_s11 + $0x500] sm:$0xff]  ;;  %v4363_v5 = vld [vmem:[%s4805_s11 + $0x548] sm:$0xff] }
 0x173   : > { %v1513_v63 = vmax.f32 %v1481_v27, 0.0  ;;  %v1418_v2 = vmul.f32 0.0009765625, %v1322_v26  ;;  %v755_v15 = vpop.xlane.xlu0 %754  ;;  %v2173_v40 = vpack.c.bf16 %v1997_v57, %v1989_v47  ;;  %v1686_v7 = vsub.f32 %v4361_v50, %v5818_v11  ;;  %v4364_v57 = vld [vmem:[%s4805_s11 + $0x558] sm:$0xff] }
 0x174   : > { %v5890_v49 = vmul.f32 0.0009765625, %v755_v15  ;;  %2850 = vmatprep.mubr.bf16.mxu0 %v2172_v4  ;;  %3011 = vmatprep.mubr.bf16.mxu1 %v2174_v19  ;;  %v1683_v56 = vsub.f32 %v4362_v35, %v5818_v11  ;;  %v1692_v27 = vsub.f32 %v4363_v5, %v5843_v45  ;;  %v1694_v4 = vsub.f32 %v4364_v57, %v5843_v45  ;;  %v4365_v19 = vld [vmem:[%s4805_s11 + $0x510] sm:$0xff] }
 0x175   : > { %v1801_v51 = vadd.f32 1e-06, %v1513_v63  ;;  %v1482_v24 = vsub.f32 %v1418_v2, %v1450_v58  ;;  %2851 = vmatmul.mubr.bf16.gmra.mrb[36].mxu0 %v2171_v37  ;;  %3012 = vmatmul.mubr.bf16.gmra.mrb[36].mxu1 %v2173_v40  ;;  %v1685_v63 = vsub.f32 %v4365_v19, %v5818_v11  ;;  %v4366_v40 = vld [vmem:[%s4805_s11 + $0x540] sm:$0xff] }
 0x176   : > { %6882 = vst [vmem:[#allocation22_spill] sm:$0xff] %v5890_v49  ;;  %v764_v61 = vpop.xlane.xlu1 %763  ;;  %v5894_v26 = vpop.eup %4248  ;;  %v1451_v37 = vmul.f32 %v5890_v49, %v5890_v49 }
 0x177   : > { %6883 = vst [vmem:[#allocation23_spill] sm:$0xff] %v5894_v26  ;;  %4252 = vrsqrt.f32 %v1801_v51  ;;  %v1514_v47 = vmax.f32 %v1482_v24, 0.0  ;;  %v5908_v2 = vmul.f32 0.0009765625, %v764_v61  ;;  %v1691_v51 = vsub.f32 %v4366_v40, %v5843_v45  ;;  %v4367_v24 = vld [vmem:[%s4805_s11 + $0x550] sm:$0xff] }
 0x178   : > { %v1693_v43 = vsub.f32 %v4367_v24, %v5843_v45  ;;  %v2004_v5 = vmul.f32 %v5894_v26, %v1684_v60  ;;  %v2006_v57 = vmul.f32 %v5894_v26, %v1686_v7  ;;  %v2003_v6 = vmul.f32 %v5894_v26, %v1683_v56 }
 0x179   : > { %v1802_v58 = vadd.f32 1e-06, %v1514_v47  ;;  %6884 = vst [vmem:[#allocation24_spill] sm:$0xff] %v5908_v2  ;;  %v1331_v15 = vpop.xlane.xlu0 %1330  ;;  %v2005_v11 = vmul.f32 %v5894_v26, %v1685_v63 }
 0x17a   : > { %v5914_v50 = vpop.eup %4250  ;;  %v1419_v35 = vmul.f32 0.0009765625, %v1331_v15 }
 0x17b   : > { %6885 = vst [vmem:[#allocation25_spill] sm:$0xff] %v5914_v50  ;;  %4254 = vrsqrt.f32 %v1802_v58  ;;  %v2012_v61 = vmul.f32 %v5914_v50, %v1692_v27  ;;  %v2014_v47 = vmul.f32 %v5914_v50, %v1694_v4  ;;  %v2011_v19 = vmul.f32 %v5914_v50, %v1691_v51  ;;  %v4368_v51 = vld [vmem:[%s4805_s11 + $0x588] sm:$0xff] }
 0x17c   : > { %v1483_v40 = vsub.f32 %v1419_v35, %v1451_v37  ;;  %v2013_v24 = vmul.f32 %v5914_v50, %v1693_v43  ;;  %v1452_v27 = vmul.f32 %v5908_v2, %v5908_v2 }
 0x17d   : > { %v2180_v45 = vpack.c.bf16 %v2012_v61, %v2004_v5  ;;  %v2182_v15 = vpack.c.bf16 %v2014_v47, %v2006_v57  ;;  %v2179_v60 = vpack.c.bf16 %v2011_v19, %v2003_v6  ;;  %v4371_v57 = vld [vmem:[%s4805_s11 + $0x590] sm:$0xff] }
 0x17e   : > { %v1515_v28 = vmax.f32 %v1483_v40, 0.0  ;;  %v1340_v7 = vpop.xlane.xlu1 %1339  ;;  %v773_v13 = vpop.xlane.xlu0 %772  ;;  %v2181_v56 = vpack.c.bf16 %v2013_v24, %v2005_v11  ;;  %v1700_v11 = vsub.f32 %v4368_v51, %v5854_v42  ;;  %v1701_v61 = vsub.f32 %v4371_v57, %v5854_v42  ;;  %v4372_v40 = vld [vmem:[%s4805_s11 + $0x5c8] sm:$0xff]  ;;  %v4375_v51 = vld [vmem:[%s4805_s11 + $0x5d0] sm:$0xff] }
 0x17f   : > { %v1420_v4 = vmul.f32 0.0009765625, %v1340_v7  ;;  %v5926_v58 = vmul.f32 0.0009765625, %v773_v13  ;;  %2858 = vmatprep.mubr.bf16.mxu0 %v2180_v45  ;;  %3019 = vmatprep.mubr.bf16.mxu1 %v2182_v15  ;;  %v4369_v13 = vld [vmem:[%s4805_s11 + $0x598] sm:$0xff]  ;;  %v1708_v24 = vsub.f32 %v4372_v40, %v5872_v53 }
 0x180   : > { %v1803_v37 = vadd.f32 1e-06, %v1515_v28  ;;  %2859 = vmatmul.mubr.bf16.gmra.mrb[40].mxu0 %v2179_v60  ;;  %3020 = vmatmul.mubr.bf16.gmra.mrb[40].mxu1 %v2181_v56  ;;  %v1702_v45 = vsub.f32 %v4369_v13, %v5854_v42  ;;  %v4370_v28 = vld [vmem:[%s4805_s11 + $0x580] sm:$0xff]  ;;  %v4373_v15 = vld [vmem:[%s4805_s11 + $0x5d8] sm:$0xff]  ;;  %v1709_v13 = vsub.f32 %v4375_v51, %v5872_v53 }
 0x181   : > { %6886 = vst [vmem:[#allocation26_spill] sm:$0xff] %v5926_v58  ;;  %v5928_v6 = vpop.eup %4252  ;;  %v1484_v63 = vsub.f32 %v1420_v4, %v1452_v27  ;;  %v1453_v35 = vmul.f32 %v5926_v58, %v5926_v58  ;;  %v1699_v5 = vsub.f32 %v4370_v28, %v5854_v42  ;;  %v1710_v60 = vsub.f32 %v4373_v15, %v5872_v53  ;;  %v4374_v27 = vld [vmem:[%s4805_s11 + $0x5c0] sm:$0xff] }
 0x182   : > { %6887 = vst [vmem:[#allocation27_spill] sm:$0xff] %v5928_v6  ;;  %v782_v43 = vpop.xlane.xlu1 %781  ;;  %4256 = vrsqrt.f32 %v1803_v37  ;;  %v2020_v56 = vmul.f32 %v5928_v6, %v1700_v11  ;;  %v1707_v4 = vsub.f32 %v4374_v27, %v5872_v53  ;;  %v2022_v57 = vmul.f32 %v5928_v6, %v1702_v45 }
 0x183   : > { %v1516_v47 = vmax.f32 %v1484_v63, 0.0  ;;  %v1349_v19 = vpop.xlane.xlu0 %1348  ;;  %v5951_v63 = vmul.f32 0.0009765625, %v782_v43  ;;  %v2019_v40 = vmul.f32 %v5928_v6, %v1699_v5  ;;  %v2021_v27 = vmul.f32 %v5928_v6, %v1701_v61 }
 0x184   : > { %v1421_v7 = vmul.f32 0.0009765625, %v1349_v19 }
 0x185   : > { %v5949_v28 = vpop.eup %4254  ;;  %v1804_v37 = vadd.f32 1e-06, %v1516_v47  ;;  %6888 = vst [vmem:[#allocation28_spill] sm:$0xff] %v5951_v63 }
 0x186   : > { %v1485_v42 = vsub.f32 %v1421_v7, %v1453_v35  ;;  %v2028_v19 = vmul.f32 %v5949_v28, %v1708_v24  ;;  %v2030_v11 = vmul.f32 %v5949_v28, %v1710_v60  ;;  %v2027_v15 = vmul.f32 %v5949_v28, %v1707_v4 }
 0x187   : > { %4258 = vrsqrt.f32 %v1804_v37  ;;  %v2029_v51 = vmul.f32 %v5949_v28, %v1709_v13  ;;  %v1454_v35 = vmul.f32 %v5951_v63, %v5951_v63  ;;  %v4377_v37 = vld [vmem:[%s4805_s11 + $0x618] sm:$0xff] }
 0x188   : > { %v1517_v53 = vmax.f32 %v1485_v42, 0.0  ;;  %v2188_v47 = vpack.c.bf16 %v2028_v19, %v2020_v56  ;;  %v2190_v43 = vpack.c.bf16 %v2030_v11, %v2022_v57  ;;  %v2187_v26 = vpack.c.bf16 %v2027_v15, %v2019_v40  ;;  %v4378_v40 = vld [vmem:[%s4805_s11 + $0x600] sm:$0xff]  ;;  %v4379_v19 = vld [vmem:[%s4805_s11 + $0x648] sm:$0xff]  ;;  %v4380_v15 = vld [vmem:[%s4805_s11 + $0x658] sm:$0xff] }
 0x189   : > { %v1358_v45 = vpop.xlane.xlu1 %1357  ;;  %v2189_v50 = vpack.c.bf16 %v2029_v51, %v2021_v27  ;;  %v791_v60 = vpop.xlane.xlu0 %790  ;;  %v1718_v57 = vsub.f32 %v4377_v37, %v5890_v49  ;;  %v1724_v11 = vsub.f32 %v4379_v19, %v5908_v2  ;;  %v1726_v27 = vsub.f32 %v4380_v15, %v5908_v2  ;;  %v4381_v51 = vld [vmem:[%s4805_s11 + $0x610] sm:$0xff] }
 0x18a   : > { %v1805_v5 = vadd.f32 1e-06, %v1517_v53  ;;  %v1422_v24 = vmul.f32 0.0009765625, %v1358_v45  ;;  %2866 = vmatprep.mubr.bf16.mxu0 %v2188_v47  ;;  %3027 = vmatprep.mubr.bf16.mxu1 %v2190_v43  ;;  %v5962_v61 = vmul.f32 0.0009765625, %v791_v60  ;;  %v4376_v53 = vld [vmem:[%s4805_s11 + $0x608] sm:$0xff]  ;;  %v1717_v47 = vsub.f32 %v4381_v51, %v5890_v49  ;;  %v4383_v60 = vld [vmem:[%s4805_s11 + $0x650] sm:$0xff] }
 0x18b   : > { %2867 = vmatmul.mubr.bf16.gmra.mrb[44].mxu0 %v2187_v26  ;;  %3028 = vmatmul.mubr.bf16.gmra.mrb[44].mxu1 %v2189_v50  ;;  %v1716_v56 = vsub.f32 %v4376_v53, %v5890_v49  ;;  %v1715_v26 = vsub.f32 %v4378_v40, %v5890_v49 }
 0x18c   : > { %v1486_v42 = vsub.f32 %v1422_v24, %v1454_v35  ;;  %v5964_v7 = vpop.eup %4256  ;;  %4260 = vrsqrt.f32 %v1805_v5  ;;  %v1455_v50 = vmul.f32 %v5962_v61, %v5962_v61  ;;  %v4382_v35 = vld [vmem:[%s4805_s11 + $0x640] sm:$0xff] }
 0x18d   : > { %6889 = vst [vmem:[#allocation29_spill] sm:$0xff] %v5964_v7  ;;  %v800_v13 = vpop.xlane.xlu1 %799  ;;  %v2036_v5 = vmul.f32 %v5964_v7, %v1716_v56  ;;  %v1723_v24 = vsub.f32 %v4382_v35, %v5908_v2  ;;  %v2038_v19 = vmul.f32 %v5964_v7, %v1718_v57  ;;  %v2035_v15 = vmul.f32 %v5964_v7, %v1715_v26 }
 0x18e   : > { %v1518_v4 = vmax.f32 %v1486_v42, 0.0  ;;  %v1725_v42 = vsub.f32 %v4383_v60, %v5908_v2  ;;  %v5987_v37 = vmul.f32 0.0009765625, %v800_v13  ;;  %v2037_v49 = vmul.f32 %v5964_v7, %v1717_v47 }
 0x190   : > { %v1806_v43 = vadd.f32 1e-06, %v1518_v4  ;;  %v1367_v45 = vpop.xlane.xlu0 %1366  ;;  %v1456_v26 = vmul.f32 %v5987_v37, %v5987_v37 }
 0x191   : > { %v5985_v53 = vpop.eup %4258  ;;  %v1423_v40 = vmul.f32 0.0009765625, %v1367_v45 }
 0x192   : > { %6890 = vst [vmem:[#allocation30_spill] sm:$0xff] %v5985_v53  ;;  %4262 = vrsqrt.f32 %v1806_v43  ;;  %v2044_v4 = vmul.f32 %v5985_v53, %v1724_v11  ;;  %v2046_v56 = vmul.f32 %v5985_v53, %v1726_v27  ;;  %v2043_v51 = vmul.f32 %v5985_v53, %v1723_v24 }
 0x193   : > { %v1487_v35 = vsub.f32 %v1423_v40, %v1455_v50  ;;  %v2045_v60 = vmul.f32 %v5985_v53, %v1725_v42  ;;  %v4384_v42 = vld [vmem:[%s4805_s11 + $0x688] sm:$0xff] }
 0x194   : > { %v1376_v2 = vpop.xlane.xlu1 %1375  ;;  %v2196_v13 = vpack.c.bf16 %v2044_v4, %v2036_v5  ;;  %v2198_v45 = vpack.c.bf16 %v2046_v56, %v2038_v19  ;;  %v2195_v6 = vpack.c.bf16 %v2043_v51, %v2035_v15  ;;  %v809_v43 = vpop.xlane.xlu0 %808  ;;  %v1732_v40 = vsub.f32 %v4384_v42, %v5926_v58  ;;  %v4386_v4 = vld [vmem:[%s4805_s11 + $0x680] sm:$0xff]  ;;  %v4387_v51 = vld [vmem:[%s4805_s11 + $0x690] sm:$0xff] }
 0x195   : > { %v1519_v57 = vmax.f32 %v1487_v35, 0.0  ;;  %v1424_v11 = vmul.f32 0.0009765625, %v1376_v2  ;;  %v2197_v27 = vpack.c.bf16 %v2045_v60, %v2037_v49  ;;  %v5998_v24 = vmul.f32 0.0009765625, %v809_v43  ;;  %v4385_v49 = vld [vmem:[%s4805_s11 + $0x698] sm:$0xff]  ;;  %v4388_v60 = vld [vmem:[%s4805_s11 + $0x6c8] sm:$0xff]  ;;  %v4391_v42 = vld [vmem:[%s4805_s11 + $0x6d0] sm:$0xff] }
 0x196   : > { %2874 = vmatprep.mubr.bf16.mxu0 %v2196_v13  ;;  %3035 = vmatprep.mubr.bf16.mxu1 %v2198_v45  ;;  %v6000_v5 = vpop.eup %4260  ;;  %v1734_v15 = vsub.f32 %v4385_v49, %v5926_v58  ;;  %v1731_v56 = vsub.f32 %v4386_v4, %v5926_v58  ;;  %v1740_v13 = vsub.f32 %v4388_v60, %v5951_v63  ;;  %v4389_v45 = vld [vmem:[%s4805_s11 + $0x6d8] sm:$0xff] }
 0x197   : > { %v1807_v50 = vadd.f32 1e-06, %v1519_v57  ;;  %v1488_v47 = vsub.f32 %v1424_v11, %v1456_v26  ;;  %2875 = vmatmul.mubr.bf16.gmra.mrb[48].mxu0 %v2195_v6  ;;  %3036 = vmatmul.mubr.bf16.gmra.mrb[48].mxu1 %v2197_v27  ;;  %v1733_v6 = vsub.f32 %v4387_v51, %v5926_v58  ;;  %v1457_v35 = vmul.f32 %v5998_v24, %v5998_v24  ;;  %v4390_v27 = vld [vmem:[%s4805_s11 + $0x6c0] sm:$0xff] }
 0x198   : > { %v818_v19 = vpop.xlane.xlu1 %817  ;;  %v1742_v57 = vsub.f32 %v4389_v45, %v5951_v63  ;;  %v2052_v43 = vmul.f32 %v6000_v5, %v1732_v40  ;;  %v1741_v49 = vsub.f32 %v4391_v42, %v5951_v63  ;;  %v2054_v60 = vmul.f32 %v6000_v5, %v1734_v15 }
 0x199   : > { %v1520_v2 = vmax.f32 %v1488_v47, 0.0  ;;  %4264 = vrsqrt.f32 %v1807_v50  ;;  %v1739_v47 = vsub.f32 %v4390_v27, %v5951_v63  ;;  %v6023_v4 = vmul.f32 0.0009765625, %v818_v19 }
 0x19a   : > { %v2051_v58 = vmul.f32 %v6000_v5, %v1731_v56  ;;  %v2053_v7 = vmul.f32 %v6000_v5, %v1733_v6 }
 0x19b   : > { %v1808_v26 = vadd.f32 1e-06, %v1520_v2  ;;  %v1385_v11 = vpop.xlane.xlu0 %1384  ;;  %v1458_v56 = vmul.f32 %v6023_v4, %v6023_v4 }
 0x19c   : > { %v6021_v50 = vpop.eup %4262  ;;  %v1425_v51 = vmul.f32 0.0009765625, %v1385_v11 }
 0x19d   : > { %4266 = vrsqrt.f32 %v1808_v26  ;;  %v2060_v2 = vmul.f32 %v6021_v50, %v1740_v13  ;;  %v2062_v40 = vmul.f32 %v6021_v50, %v1742_v57  ;;  %v2059_v45 = vmul.f32 %v6021_v50, %v1739_v47 }
 0x19e   : > { %v1489_v27 = vsub.f32 %v1425_v51, %v1457_v35  ;;  %v2061_v42 = vmul.f32 %v6021_v50, %v1741_v49  ;;  %v4393_v49 = vld [vmem:[%s4805_s11 + $0x718] sm:$0xff] }
 0x19f   : > { %v1394_v63 = vpop.xlane.xlu1 %1393  ;;  %v2204_v19 = vpack.c.bf16 %v2060_v2, %v2052_v43  ;;  %v2206_v11 = vpack.c.bf16 %v2062_v40, %v2054_v60  ;;  %v2203_v53 = vpack.c.bf16 %v2059_v45, %v2051_v58  ;;  %v4392_v43 = vld [vmem:[%s4805_s11 + $0x708] sm:$0xff]  ;;  %v4395_v60 = vld [vmem:[%s4805_s11 + $0x710] sm:$0xff] }
 0x1a0   : > { %v1521_v15 = vmax.f32 %v1489_v27, 0.0  ;;  %v1426_v13 = vmul.f32 0.0009765625, %v1394_v63  ;;  %v2205_v57 = vpack.c.bf16 %v2061_v42, %v2053_v7  ;;  %v1748_v47 = vsub.f32 %v4392_v43, %v5962_v61  ;;  %v4394_v7 = vld [vmem:[%s4805_s11 + $0x700] sm:$0xff]  ;;  %v4396_v40 = vld [vmem:[%s4805_s11 + $0x748] sm:$0xff]  ;;  %v4397_v27 = vld [vmem:[%s4805_s11 + $0x758] sm:$0xff] }
 0x1a1   : > { %2882 = vmatprep.mubr.bf16.mxu0 %v2204_v19  ;;  %3043 = vmatprep.mubr.bf16.mxu1 %v2206_v11  ;;  %v1750_v63 = vsub.f32 %v4393_v49, %v5962_v61  ;;  %v1747_v51 = vsub.f32 %v4394_v7, %v5962_v61  ;;  %v1756_v45 = vsub.f32 %v4396_v40, %v5987_v37  ;;  %v4398_v19 = vld [vmem:[%s4805_s11 + $0x740] sm:$0xff] }
 0x1a2   : > { %v1809_v35 = vadd.f32 1e-06, %v1521_v15  ;;  %v1490_v6 = vsub.f32 %v1426_v13, %v1458_v56  ;;  %2883 = vmatmul.mubr.bf16.gmra.mrb[52].mxu0 %v2203_v53  ;;  %3044 = vmatmul.mubr.bf16.gmra.mrb[52].mxu1 %v2205_v57  ;;  %v1749_v53 = vsub.f32 %v4395_v60, %v5962_v61  ;;  %v1758_v42 = vsub.f32 %v4397_v27, %v5987_v37  ;;  %v4401_v27 = vld [vmem:[%s4805_s11 + $0x798] sm:$0xff] }
 0x1a3   : > { %v6034_v26 = vpop.eup %4264  ;;  %v1755_v11 = vsub.f32 %v4398_v19, %v5987_v37  ;;  %v4402_v19 = vld [vmem:[%s4805_s11 + $0x780] sm:$0xff] }
 0x1a4   : > { %v1522_v58 = vmax.f32 %v1490_v6, 0.0  ;;  %4268 = vrsqrt.f32 %v1809_v35  ;;  %v2068_v56 = vmul.f32 %v6034_v26, %v1748_v47  ;;  %v2070_v13 = vmul.f32 %v6034_v26, %v1750_v63  ;;  %v4399_v35 = vld [vmem:[%s4805_s11 + $0x750] sm:$0xff] }
 0x1a5   : > { %v2067_v57 = vmul.f32 %v6034_v26, %v1747_v51  ;;  %v1757_v6 = vsub.f32 %v4399_v35, %v5987_v37  ;;  %v2069_v7 = vmul.f32 %v6034_v26, %v1749_v53 }
 0x1a6   : > { %v1810_v2 = vadd.f32 1e-06, %v1522_v58 }
 0x1a7   : > { %v6050_v15 = vpop.eup %4266 }
 0x1a8   : > { %4270 = vrsqrt.f32 %v1810_v2  ;;  %v2076_v58 = vmul.f32 %v6050_v15, %v1756_v45  ;;  %v2078_v43 = vmul.f32 %v6050_v15, %v1758_v42  ;;  %v2075_v49 = vmul.f32 %v6050_v15, %v1755_v11  ;;  %v4400_v45 = vld [vmem:[%s4805_s11 + $0x788] sm:$0xff] }
 0x1a9   : > { %v2077_v47 = vmul.f32 %v6050_v15, %v1757_v6  ;;  %v1764_v53 = vsub.f32 %v4400_v45, %v5998_v24  ;;  %v1766_v42 = vsub.f32 %v4401_v27, %v5998_v24  ;;  %v1763_v11 = vsub.f32 %v4402_v19, %v5998_v24  ;;  %v4405_v6 = vld [vmem:[%s4805_s11 + $0x7d8] sm:$0xff] }
 0x1aa   : > { %v2212_v63 = vpack.c.bf16 %v2076_v58, %v2068_v56  ;;  %v2214_v51 = vpack.c.bf16 %v2078_v43, %v2070_v13  ;;  %v2211_v60 = vpack.c.bf16 %v2075_v49, %v2067_v57  ;;  %v4403_v56 = vld [vmem:[%s4805_s11 + $0x790] sm:$0xff]  ;;  %v4404_v57 = vld [vmem:[%s4805_s11 + $0x7c8] sm:$0xff]  ;;  %v1774_v58 = vsub.f32 %v4405_v6, %v6023_v4  ;;  %v4406_v43 = vld [vmem:[%s4805_s11 + $0x7c0] sm:$0xff] }
 0x1ab   : > { %v2213_v40 = vpack.c.bf16 %v2077_v47, %v2069_v7  ;;  %v1765_v13 = vsub.f32 %v4403_v56, %v5998_v24  ;;  %v1772_v35 = vsub.f32 %v4404_v57, %v6023_v4  ;;  %v1771_v49 = vsub.f32 %v4406_v43, %v6023_v4  ;;  %v4407_v7 = vld [vmem:[%s4805_s11 + $0x7d0] sm:$0xff] }
 0x1ac   : > { %2890 = vmatprep.mubr.bf16.mxu0 %v2212_v63  ;;  %3051 = vmatprep.mubr.bf16.mxu1 %v2214_v51  ;;  %v1773_v47 = vsub.f32 %v4407_v7, %v6023_v4 }
 0x1ad   : > { %2891 = vmatmul.mubr.bf16.gmra.mrb[56].mxu0 %v2211_v60  ;;  %3052 = vmatmul.mubr.bf16.gmra.mrb[56].mxu1 %v2213_v40 }
 0x1ae   : > { %v6062_v2 = vpop.eup %4268 }
 0x1af   : > { %v2084_v51 = vmul.f32 %v6062_v2, %v1764_v53  ;;  %v2086_v60 = vmul.f32 %v6062_v2, %v1766_v42  ;;  %v2083_v40 = vmul.f32 %v6062_v2, %v1763_v11  ;;  %v2085_v45 = vmul.f32 %v6062_v2, %v1765_v13 }
 0x1b0   : > { %v6891_v11 = vpack.c.bf16 %v5706_v8, %v5699_v1  ;;  %v6892_v13 = vpack.c.bf16 %v5716_v22, %v5711_v21  ;;  %v4411_v1 = vld [vmem:[%s4805_s11 + $0xb8] sm:$0xff] }
 0x1b1   : > { %v1546_v8 = vsub.f32 %v4411_v1, %v5422_v34 }
 0x1b2   : > { %v6080_v63 = vpop.eup %4270 }
 0x1b3   : > { %v2092_v27 = vmul.f32 %v6080_v63, %v1772_v35  ;;  %v2094_v19 = vmul.f32 %v6080_v63, %v1774_v58  ;;  %v2091_v56 = vmul.f32 %v6080_v63, %v1771_v49  ;;  %v2093_v57 = vmul.f32 %v6080_v63, %v1773_v47  ;;  %v4408_v35 = vld [vmem:[%s4805_s11 + $0xe8] sm:$0xff]  ;;  %v4409_v49 = vld [vmem:[%s4805_s11 + $0xf8] sm:$0xff] }
 0x1b4   : > { %v1552_v58 = vsub.f32 %v4408_v35, %v5424_v46  ;;  %v1554_v7 = vsub.f32 %v4409_v49, %v5424_v46  ;;  %v4410_v47 = vld [vmem:[%s4805_s11 + $0xa8] sm:$0xff] }
 0x1b5   : > { %v2220_v6 = vpack.c.bf16 %v2092_v27, %v2084_v51  ;;  %v2222_v43 = vpack.c.bf16 %v2094_v19, %v2086_v60  ;;  %v2219_v53 = vpack.c.bf16 %v2091_v56, %v2083_v40  ;;  %v2221_v42 = vpack.c.bf16 %v2093_v57, %v2085_v45  ;;  %v4412_v19 = vld [vmem:[%s4805_s11 + $0xe0] sm:$0xff]  ;;  %v4418_v49 = vld [vmem:[%s4805_s11 + $0x128] sm:$0xff] }
 0x1b6   : > { %v1544_v51 = vsub.f32 %v4410_v47, %v5422_v34  ;;  %v1872_v60 = vmul.f32 %v5510_v36, %v1552_v58  ;;  %v1874_v21 = vmul.f32 %v5510_v36, %v1554_v7  ;;  %v1866_v40 = vmul.f32 %v5503_v30, %v1546_v8 }
 0x1b7   : > { %2898 = vmatprep.mubr.bf16.mxu0 %v2220_v6  ;;  %3059 = vmatprep.mubr.bf16.mxu1 %v2222_v43  ;;  %v1551_v56 = vsub.f32 %v4412_v19, %v5424_v46  ;;  %v6893_v57 = vpack.c.bf16 %v5760_v55, %v5768_v44  ;;  %v6894_v6 = vpack.c.bf16 %v5776_v14, %v5773_v38  ;;  %v4413_v43 = vld [vmem:[%s4805_s11 + $0xf0] sm:$0xff]  ;;  %v4416_v44 = vld [vmem:[%s4805_s11 + $0x178] sm:$0xff] }
 0x1b8   : > { %2899 = vmatmul.mubr.bf16.gmra.mrb[60].mxu0 %v2219_v53  ;;  %3060 = vmatmul.mubr.bf16.gmra.mrb[60].mxu1 %v2221_v42  ;;  %v1864_v22 = vmul.f32 %v5503_v30, %v1544_v51  ;;  %v2114_v27 = vpack.c.bf16 %v1874_v21, %v1866_v40  ;;  %v1553_v53 = vsub.f32 %v4413_v43, %v5424_v46  ;;  %v4414_v42 = vld [vmem:[%s4805_s11 + $0x168] sm:$0xff]  ;;  %v4417_v38 = vld [vmem:[%s4805_s11 + $0xb0] sm:$0xff]  ;;  %v4419_v51 = vld [vmem:[%s4805_s11 + $0x138] sm:$0xff] }
 0x1b9   : > { %3100 = vmatprep.mubr.bf16.mxu0 %v6891_v11  ;;  %3261 = vmatprep.mubr.bf16.mxu1 %v6892_v13  ;;  %v1568_v11 = vsub.f32 %v4414_v42, %v5432_v3  ;;  %v4415_v13 = vld [vmem:[%s4805_s11 + $0xa0] sm:$0xff]  ;;  %v1871_v55 = vmul.f32 %v5510_v36, %v1551_v56  ;;  %v1570_v58 = vsub.f32 %v4416_v44, %v5432_v3  ;;  %v4422_v43 = vld [vmem:[%s4805_s11 + $0x130] sm:$0xff] }
 0x1ba   : > { %v2112_v45 = vpack.c.bf16 %v1872_v60, %v1864_v22  ;;  %v1543_v35 = vsub.f32 %v4415_v13, %v5422_v34  ;;  %v1545_v14 = vsub.f32 %v4417_v38, %v5422_v34  ;;  %v1873_v46 = vmul.f32 %v5510_v36, %v1553_v53  ;;  %v4423_v53 = vld [vmem:[%s4805_s11 + $0x170] sm:$0xff]  ;;  %v4424_v13 = vld [vmem:[%s4805_s11 + $0x1e8] sm:$0xff] }
 0x1bb   : > { %v1560_v7 = vsub.f32 %v4418_v49, %v5430_v0  ;;  %v1888_v47 = vmul.f32 %v5529_v20, %v1568_v11  ;;  %v1562_v60 = vsub.f32 %v4419_v51, %v5430_v0  ;;  %v1890_v1 = vmul.f32 %v5529_v20, %v1570_v58  ;;  %v4426_v58 = vld [vmem:[%s4805_s11 + $0x1e0] sm:$0xff]  ;;  %v4427_v38 = vld [vmem:[%s4805_s11 + $0x1f0] sm:$0xff] }
 0x1bc   : > { %v1863_v8 = vmul.f32 %v5503_v30, %v1543_v35  ;;  %v1865_v21 = vmul.f32 %v5503_v30, %v1545_v14  ;;  %v1561_v30 = vsub.f32 %v4422_v43, %v5430_v0  ;;  %v1569_v42 = vsub.f32 %v4423_v53, %v5432_v3  ;;  %v4432_v43 = vld [vmem:[%s4805_s11 + $0x268] sm:$0xff] }
 0x1bd   : > { %v1880_v34 = vmul.f32 %v5524_v18, %v1560_v7  ;;  %v1882_v36 = vmul.f32 %v5524_v18, %v1562_v60  ;;  %v1584_v35 = vsub.f32 %v4424_v13, %v5445_v32  ;;  %v1585_v14 = vsub.f32 %v4427_v38, %v5445_v32  ;;  %v4433_v53 = vld [vmem:[%s4805_s11 + $0x228] sm:$0xff] }
 0x1be   : > { %v2111_v22 = vpack.c.bf16 %v1871_v55, %v1863_v8  ;;  %v2113_v40 = vpack.c.bf16 %v1873_v46, %v1865_v21  ;;  %v4425_v55 = vld [vmem:[%s4805_s11 + $0x1f8] sm:$0xff]  ;;  %v4428_v46 = vld [vmem:[%s4805_s11 + $0x1a8] sm:$0xff]  ;;  %v4431_v21 = vld [vmem:[%s4805_s11 + $0x1b0] sm:$0xff] }
 0x1bf   : > { %v2122_v56 = vpack.c.bf16 %v1890_v1, %v1882_v36  ;;  %v1586_v44 = vsub.f32 %v4425_v55, %v5445_v32  ;;  %v1576_v49 = vsub.f32 %v4428_v46, %v5439_v10  ;;  %v1904_v7 = vmul.f32 %v5587_v12, %v1584_v35  ;;  %v4430_v1 = vld [vmem:[%s4805_s11 + $0x1a0] sm:$0xff]  ;;  %v4435_v35 = vld [vmem:[%s4805_s11 + $0x278] sm:$0xff]  ;;  %v4438_v38 = vld [vmem:[%s4805_s11 + $0x2e8] sm:$0xff] }
 0x1c0   : > { %3101 = vmatmul.mubr.bf16.vlgmr.msra.gmra.mrb[64].mxu0 %v6893_v57  ;;  %3262 = vmatmul.mubr.bf16.vlgmr.msra.gmra.mrb[64].mxu1 %v6894_v6  ;;  %v4421_v57 = vld [vmem:[%s4805_s11 + $0x120] sm:$0xff]  ;;  %v1602_v55 = vsub.f32 %v4435_v35, %v5531_v33  ;;  %v4446_v35 = vld [vmem:[%s4805_s11 + $0x2f0] sm:$0xff] }
 0x1c1   : > { %3108 = vmatprep.mubr.bf16.mxu0 %v2112_v45  ;;  %3269 = vmatprep.mubr.bf16.mxu1 %v2114_v27  ;;  %v2120_v45 = vpack.c.bf16 %v1888_v47, %v1880_v34  ;;  %v4420_v27 = vld [vmem:[%s4805_s11 + $0x160] sm:$0xff]  ;;  %v1559_v6 = vsub.f32 %v4421_v57, %v5430_v0  ;;  %v1889_v0 = vmul.f32 %v5529_v20, %v1569_v42  ;;  %v4429_v47 = vld [vmem:[%s4805_s11 + $0x1b8] sm:$0xff] }
 0x1c2   : > { %v1567_v19 = vsub.f32 %v4420_v27, %v5432_v3  ;;  %v1583_v3 = vsub.f32 %v4426_v58, %v5445_v32  ;;  %v1578_v51 = vsub.f32 %v4429_v47, %v5439_v10  ;;  %v1906_v60 = vmul.f32 %v5587_v12, %v1586_v44  ;;  %v4436_v44 = vld [vmem:[%s4805_s11 + $0x260] sm:$0xff]  ;;  %v4437_v58 = vld [vmem:[%s4805_s11 + $0x270] sm:$0xff] }
 0x1c3   : > { %v1577_v32 = vsub.f32 %v4431_v21, %v5439_v10  ;;  %v6170_v34 = vmul.f32 %v5587_v12, %v1585_v14  ;;  %v1879_v36 = vmul.f32 %v5524_v18, %v1559_v6  ;;  %v1592_v42 = vsub.f32 %v4433_v53, %v5506_v16  ;;  %v4440_v47 = vld [vmem:[%s4805_s11 + $0x230] sm:$0xff] }
 0x1c4   : > { %v1887_v11 = vmul.f32 %v5529_v20, %v1567_v19  ;;  %v1575_v20 = vsub.f32 %v4430_v1, %v5439_v10  ;;  %v6165_v8 = vmul.f32 %v5587_v12, %v1583_v3  ;;  %v1600_v12 = vsub.f32 %v4432_v43, %v5531_v33 }
 0x1c5   : > { %v1897_v19 = vmul.f32 %v5565_v41, %v1577_v32  ;;  %v1601_v3 = vsub.f32 %v4437_v58, %v5531_v33  ;;  %v1616_v14 = vsub.f32 %v4438_v38, %v5589_v17  ;;  %v1922_v46 = vmul.f32 %v5643_v48, %v1602_v55  ;;  %v4449_v58 = vld [vmem:[%s4805_s11 + $0x368] sm:$0xff]  ;;  %v6268_v38 = vld [vmem:[%s4805_s11 + $0x338] sm:$0xff] }
 0x1c6   : > { %v1895_v27 = vmul.f32 %v5565_v41, %v1575_v20  ;;  %v1617_v55 = vsub.f32 %v4446_v35, %v5589_v17 }
 0x1c7   : > { %v6211_v32 = vmul.f32 %v5694_v59, %v1616_v14  ;;  %v1626_v14 = vsub.f32 %v6268_v38, %v5613_v9 }
 0x1c8   : > { %3109 = vmatmul.mubr.bf16.gmra.mrb[68].mxu0 %v2111_v22  ;;  %3270 = vmatmul.mubr.bf16.gmra.mrb[68].mxu1 %v2113_v40  ;;  %v1881_v22 = vmul.f32 %v5524_v18, %v1561_v30  ;;  %v1896_v40 = vmul.f32 %v5565_v41, %v1576_v49  ;;  %v2127_v18 = vpack.c.bf16 %v6165_v8, %v1895_v27  ;;  %v4439_v49 = vld [vmem:[%s4805_s11 + $0x220] sm:$0xff]  ;;  %v4442_v8 = vld [vmem:[%s4805_s11 + $0x2a8] sm:$0xff] }
 0x1c9   : > { %3116 = vmatprep.mubr.bf16.mxu0 %v2120_v45  ;;  %3277 = vmatprep.mubr.bf16.mxu1 %v2122_v56  ;;  %v1898_v45 = vmul.f32 %v5565_v41, %v1578_v51  ;;  %v2119_v56 = vpack.c.bf16 %v1887_v11, %v1879_v36  ;;  %v2129_v30 = vpack.c.bf16 %v6170_v34, %v1897_v19  ;;  %v4434_v11 = vld [vmem:[%s4805_s11 + $0x238] sm:$0xff]  ;;  %v4444_v19 = vld [vmem:[%s4805_s11 + $0x2a0] sm:$0xff] }
 0x1ca   : > { %v2121_v10 = vpack.c.bf16 %v1889_v0, %v1881_v22  ;;  %v2128_v57 = vpack.c.bf16 %v1904_v7, %v1896_v40  ;;  %v1920_v41 = vmul.f32 %v5643_v48, %v1600_v12  ;;  %v1594_v13 = vsub.f32 %v4434_v11, %v5506_v16  ;;  %v4443_v36 = vld [vmem:[%s4805_s11 + $0x2b8] sm:$0xff]  ;;  %v4445_v12 = vld [vmem:[%s4805_s11 + $0x2e0] sm:$0xff] }
 0x1cb   : > { %v2130_v6 = vpack.c.bf16 %v1906_v60, %v1898_v45  ;;  %v1599_v0 = vsub.f32 %v4436_v44, %v5531_v33  ;;  %v1591_v7 = vsub.f32 %v4439_v49, %v5506_v16  ;;  %v1593_v51 = vsub.f32 %v4440_v47, %v5506_v16  ;;  %v4441_v60 = vld [vmem:[%s4805_s11 + $0x2f8] sm:$0xff]  ;;  %v6253_v44 = vld [vmem:[%s4805_s11 + $0x2b0] sm:$0xff] }
 0x1cc   : > { %v1618_v1 = vsub.f32 %v4441_v60, %v5589_v17  ;;  %v6206_v33 = vmul.f32 %v5643_v48, %v1601_v3  ;;  %v1608_v21 = vsub.f32 %v4442_v8, %v5561_v39  ;;  %v1912_v34 = vmul.f32 %v5620_v52, %v1592_v42  ;;  %v4453_v60 = vld [vmem:[%s4805_s11 + $0x378] sm:$0xff] }
 0x1cd   : > { %v6203_v20 = vmul.f32 %v5643_v48, %v1599_v0  ;;  %v1914_v16 = vmul.f32 %v5620_v52, %v1594_v13  ;;  %v1610_v22 = vsub.f32 %v4443_v36, %v5561_v39  ;;  %v6221_v48 = vmul.f32 %v5620_v52, %v1591_v7  ;;  %v4452_v7 = vld [vmem:[%s4805_s11 + $0x768] sm:$0xff]  ;;  %v4457_v36 = vld [vmem:[%s4805_s11 + $0x760] sm:$0xff] }
 0x1ce   : > { %v6218_v40 = vmul.f32 %v5694_v59, %v1618_v1  ;;  %v6224_v45 = vmul.f32 %v5620_v52, %v1593_v51  ;;  %v6227_v27 = vmul.f32 %v5668_v54, %v1608_v21  ;;  %v1632_v3 = vsub.f32 %v4449_v58, %v5636_v25  ;;  %v4454_v1 = vld [vmem:[%s4805_s11 + $0x738] sm:$0xff]  ;;  %v4461_v58 = vld [vmem:[%s4805_s11 + $0x7e8] sm:$0xff] }
 0x1cf   : > { %v6232_v43 = vmul.f32 %v5668_v54, %v1610_v22  ;;  %v2135_v52 = vpack.c.bf16 %v6203_v20, %v6221_v48  ;;  %v1760_v47 = vsub.f32 %v4452_v7, %v5987_v37  ;;  %v1754_v20 = vsub.f32 %v4454_v1, %v5962_v61 }
 0x1d0   : > { %3117 = vmatmul.mubr.bf16.gmra.mrb[72].mxu0 %v2119_v56  ;;  %3278 = vmatmul.mubr.bf16.gmra.mrb[72].mxu1 %v2121_v10  ;;  %v1607_v56 = vsub.f32 %v4444_v19, %v5561_v39  ;;  %v2136_v10 = vpack.c.bf16 %v1920_v41, %v1912_v34  ;;  %v2137_v53 = vpack.c.bf16 %v6206_v33, %v6224_v45  ;;  %v4455_v33 = vld [vmem:[%s4805_s11 + $0x778] sm:$0xff]  ;;  %v4456_v34 = vld [vmem:[%s4805_s11 + $0x720] sm:$0xff] }
 0x1d1   : > { %3124 = vmatprep.mubr.bf16.mxu0 %v2128_v57  ;;  %3285 = vmatprep.mubr.bf16.mxu1 %v2130_v6  ;;  %v2138_v57 = vpack.c.bf16 %v1922_v46, %v1914_v16  ;;  %v1615_v6 = vsub.f32 %v4445_v12, %v5589_v17  ;;  %v2144_v42 = vpack.c.bf16 %v6211_v32, %v6227_v27  ;;  %v4451_v46 = vld [vmem:[%s4805_s11 + $0x728] sm:$0xff]  ;;  %v4458_v27 = vld [vmem:[%s4805_s11 + $0x730] sm:$0xff] }
 0x1d2   : > { %v6243_v41 = vmul.f32 %v5668_v54, %v1607_v56  ;;  %v2146_v11 = vpack.c.bf16 %v6218_v40, %v6232_v43  ;;  %v6265_v17 = vmul.f32 %v5694_v59, %v1617_v55  ;;  %v1752_v49 = vsub.f32 %v4451_v46, %v5962_v61  ;;  %v4459_v43 = vld [vmem:[%s4805_s11 + $0x770] sm:$0xff]  ;;  %v4462_v46 = vld [vmem:[%s4805_s11 + $0x7b8] sm:$0xff] }
 0x1d3   : > { %v6248_v13 = vmul.f32 %v5694_v59, %v1615_v6  ;;  %v6277_v51 = vmul.f32 %v5754_v62, %v1632_v3  ;;  %v1634_v59 = vsub.f32 %v4453_v60, %v5636_v25  ;;  %v1762_v8 = vsub.f32 %v4455_v33, %v5987_v37  ;;  %v4464_v60 = vld [vmem:[%s4805_s11 + $0x7a0] sm:$0xff]  ;;  %v4466_v33 = vld [vmem:[%s4805_s11 + $0x7b0] sm:$0xff] }
 0x1d4   : > { %v6286_v21 = vmul.f32 %v6034_v26, %v1752_v49  ;;  %v6289_v32 = vmul.f32 %v6050_v15, %v1760_v47  ;;  %v1751_v16 = vsub.f32 %v4456_v34, %v5962_v61  ;;  %v1759_v22 = vsub.f32 %v4457_v36, %v5987_v37  ;;  %v4467_v34 = vld [vmem:[%s4805_s11 + $0x7f0] sm:$0xff] }
 0x1d5   : > { %v1954_v40 = vmul.f32 %v5754_v62, %v1634_v59  ;;  %v6297_v48 = vmul.f32 %v6034_v26, %v1754_v20  ;;  %v6300_v45 = vmul.f32 %v6050_v15, %v1762_v8  ;;  %v1753_v19 = vsub.f32 %v4458_v27, %v5962_v61  ;;  %v4460_v61 = vld [vmem:[%s4805_s11 + $0x7a8] sm:$0xff]  ;;  %v4465_v59 = vld [vmem:[%s4805_s11 + $0x7e0] sm:$0xff] }
 0x1d6   : > { %v2216_v56 = vpack.c.bf16 %v6289_v32, %v6286_v21  ;;  %v1761_v12 = vsub.f32 %v4459_v43, %v5987_v37  ;;  %v1768_v55 = vsub.f32 %v4460_v61, %v5998_v24  ;;  %v1776_v3 = vsub.f32 %v4461_v58, %v6023_v4  ;;  %v4470_v43 = vld [vmem:[%s4805_s11 + $0x3e8] sm:$0xff]  ;;  %v4472_v61 = vld [vmem:[%s4805_s11 + $0x320] sm:$0xff] }
 0x1d7   : > { %v2218_v6 = vpack.c.bf16 %v6300_v45, %v6297_v48  ;;  %v6317_v35 = vmul.f32 %v6034_v26, %v1753_v19  ;;  %v1769_v8 = vsub.f32 %v4466_v33, %v5998_v24 }
 0x1d8   : > { %3125 = vmatmul.mubr.bf16.gmra.mrb[76].mxu0 %v2127_v18  ;;  %3286 = vmatmul.mubr.bf16.gmra.mrb[76].mxu1 %v2129_v30  ;;  %v1609_v18 = vsub.f32 %v6253_v44, %v5561_v39  ;;  %v6258_v30 = vld [vmem:[%s4805_s11 + $0x328] sm:$0xff]  ;;  %v6326_v38 = vmul.f32 %v6050_v15, %v1761_v12  ;;  %v6331_v49 = vmul.f32 %v6062_v2, %v1768_v55 }
 0x1d9   : > { %3132 = vmatprep.mubr.bf16.mxu0 %v2136_v10  ;;  %3293 = vmatprep.mubr.bf16.mxu1 %v2138_v57  ;;  %v1624_v0 = vsub.f32 %v6258_v30, %v5613_v9  ;;  %v6307_v10 = vmul.f32 %v6034_v26, %v1751_v16  ;;  %v6310_v57 = vmul.f32 %v6050_v15, %v1759_v22 }
 0x1da   : > { %v1770_v26 = vsub.f32 %v4462_v46, %v5998_v24  ;;  %v2217_v15 = vpack.c.bf16 %v6326_v38, %v6317_v35  ;;  %v1777_v16 = vsub.f32 %v4467_v34, %v6023_v4  ;;  %v1929_v36 = vmul.f32 %v5668_v54, %v1609_v18 }
 0x1db   : > { %v2215_v37 = vpack.c.bf16 %v6310_v57, %v6307_v10  ;;  %v1944_v22 = vmul.f32 %v5730_v23, %v1624_v0  ;;  %v6374_v54 = vmul.f32 %v6062_v2, %v1769_v8  ;;  %v2143_v18 = vpack.c.bf16 %v6248_v13, %v6243_v41  ;;  %v4469_v13 = vld [vmem:[%s4805_s11 + $0x370] sm:$0xff] }
 0x1dc   : > { %v6341_v47 = vmul.f32 %v6062_v2, %v1770_v26  ;;  %v6377_v44 = vmul.f32 %v6080_v63, %v1777_v16  ;;  %v2145_v30 = vpack.c.bf16 %v6265_v17, %v1929_v36  ;;  %v1633_v17 = vsub.f32 %v4469_v13, %v5636_v25  ;;  %v4474_v26 = vld [vmem:[%s4805_s11 + $0x3a8] sm:$0xff] }
 0x1dd   : > { %v1623_v55 = vsub.f32 %v4472_v61, %v5613_v9  ;;  %v4479_v13 = vld [vmem:[%s4805_s11 + $0x468] sm:$0xff]  ;;  %v4481_v61 = vld [vmem:[%s4805_s11 + $0x3b0] sm:$0xff] }
 0x1df   : > { %v1943_v33 = vmul.f32 %v5730_v23, %v1623_v55  ;;  %v1641_v55 = vsub.f32 %v4481_v61, %v5661_v29 }
 0x1e0   : > { %3133 = vmatmul.mubr.bf16.gmra.mrb[80].mxu0 %v2135_v52  ;;  %3294 = vmatmul.mubr.bf16.gmra.mrb[80].mxu1 %v2137_v53  ;;  %v6334_v52 = vmul.f32 %v6080_v63, %v1776_v3  ;;  %v4463_v53 = vld [vmem:[%s4805_s11 + $0x7f8] sm:$0xff]  ;;  %v4473_v3 = vld [vmem:[%s4805_s11 + $0x330] sm:$0xff] }
 0x1e1   : > { %3140 = vmatprep.mubr.bf16.mxu0 %v2144_v42  ;;  %3301 = vmatprep.mubr.bf16.mxu1 %v2146_v11  ;;  %v1778_v7 = vsub.f32 %v4463_v53, %v6023_v4  ;;  %v1767_v42 = vsub.f32 %v4464_v60, %v5998_v24  ;;  %v1775_v11 = vsub.f32 %v4465_v59, %v6023_v4 }
 0x1e2   : > { %v2224_v1 = vpack.c.bf16 %v6334_v52, %v6331_v49  ;;  %v1946_v4 = vmul.f32 %v5730_v23, %v1626_v14  ;;  %v2152_v14 = vpack.c.bf16 %v6277_v51, %v1944_v22  ;;  %v1648_v51 = vsub.f32 %v4470_v43, %v5690_v31 }
 0x1e3   : > { %v6350_v20 = vmul.f32 %v6080_v63, %v1778_v7  ;;  %v6365_v27 = vmul.f32 %v6062_v2, %v1767_v42  ;;  %v6368_v24 = vmul.f32 %v6080_v63, %v1775_v11  ;;  %v4468_v63 = vld [vmem:[%s4805_s11 + $0x360] sm:$0xff]  ;;  %v1625_v46 = vsub.f32 %v4473_v3, %v5613_v9  ;;  %v4475_v42 = vld [vmem:[%s4805_s11 + $0x3b8] sm:$0xff] }
 0x1e4   : > { %v2154_v19 = vpack.c.bf16 %v1954_v40, %v1946_v4  ;;  %v1631_v41 = vsub.f32 %v4468_v63, %v5636_v25  ;;  %v4471_v40 = vld [vmem:[%s4805_s11 + $0x3f8] sm:$0xff]  ;;  %v1953_v25 = vmul.f32 %v5754_v62, %v1633_v17  ;;  %v1640_v53 = vsub.f32 %v4474_v26, %v5661_v29  ;;  %v6895_v7 = vld [vmem:[#allocation12_spill] sm:$0xff]  ;;  %v6897_v17 = vld [vmem:[#allocation9_spill] sm:$0xff] }
 0x1e5   : > { %v2226_v39 = vpack.c.bf16 %v6350_v20, %v6341_v47  ;;  %v2223_v0 = vpack.c.bf16 %v6368_v24, %v6365_v27  ;;  %v1650_v12 = vsub.f32 %v4471_v40, %v5690_v31  ;;  %v1968_v60 = vmul.f32 %v6895_v7, %v1648_v51  ;;  %v6896_v9 = vld [vmem:[#allocation11_spill] sm:$0xff] }
 0x1e6   : > { %v1951_v58 = vmul.f32 %v5754_v62, %v1631_v41  ;;  %v1642_v59 = vsub.f32 %v4475_v42, %v5661_v29  ;;  %v1945_v8 = vmul.f32 %v5730_v23, %v1625_v46  ;;  %v1960_v34 = vmul.f32 %v6896_v9, %v1640_v53  ;;  %v4478_v23 = vld [vmem:[%s4805_s11 + $0x3f0] sm:$0xff]  ;;  %v4480_v51 = vld [vmem:[%s4805_s11 + $0x478] sm:$0xff]  ;;  %v4482_v46 = vld [vmem:[%s4805_s11 + $0x428] sm:$0xff] }
 0x1e7   : > { %v1970_v11 = vmul.f32 %v6895_v7, %v1650_v12  ;;  %v1649_v63 = vsub.f32 %v4478_v23, %v5690_v31  ;;  %v1664_v43 = vsub.f32 %v4479_v13, %v6897_v17  ;;  %v1666_v40 = vsub.f32 %v4480_v51, %v6897_v17  ;;  %v6899_v53 = vld [vmem:[#allocation16_spill] sm:$0xff]  ;;  %v4483_v42 = vld [vmem:[%s4805_s11 + $0x438] sm:$0xff] }
 0x1e8   : > { %3141 = vmatmul.mubr.bf16.gmra.mrb[84].mxu0 %v2143_v18  ;;  %3302 = vmatmul.mubr.bf16.gmra.mrb[84].mxu1 %v2145_v30  ;;  %v1962_v62 = vmul.f32 %v6896_v9, %v1642_v59  ;;  %v2151_v16 = vpack.c.bf16 %v1951_v58, %v1943_v33  ;;  %v2153_v36 = vpack.c.bf16 %v1953_v25, %v1945_v8  ;;  %v4476_v18 = vld [vmem:[%s4805_s11 + $0x3e0] sm:$0xff] }
 0x1e9   : > { %3148 = vmatprep.mubr.bf16.mxu0 %v2152_v14  ;;  %3309 = vmatprep.mubr.bf16.mxu1 %v2154_v19  ;;  %v2160_v22 = vpack.c.bf16 %v1968_v60, %v1960_v34  ;;  %v1647_v30 = vsub.f32 %v4476_v18, %v5690_v31  ;;  %v4477_v14 = vld [vmem:[%s4805_s11 + $0x3a0] sm:$0xff]  ;;  %v1969_v58 = vmul.f32 %v6895_v7, %v1649_v63 }
 0x1ea   : > { %v2162_v4 = vpack.c.bf16 %v1970_v11, %v1962_v62  ;;  %v1639_v19 = vsub.f32 %v4477_v14, %v5661_v29  ;;  %v6898_v25 = vld [vmem:[#allocation8_spill] sm:$0xff]  ;;  %v1984_v60 = vmul.f32 %v6899_v53, %v1664_v43  ;;  %v1986_v11 = vmul.f32 %v6899_v53, %v1666_v40  ;;  %v6434_v33 = vld [vmem:[%s222_s29] ss:$0 sm:$0xff] }
 0x1eb   : > { %v1967_v41 = vmul.f32 %v6895_v7, %v1647_v30  ;;  %v1656_v26 = vsub.f32 %v4482_v46, %v6898_v25  ;;  %v1658_v59 = vsub.f32 %v4483_v42, %v6898_v25  ;;  %v1961_v29 = vmul.f32 %v6896_v9, %v1641_v55  ;;  %v4484_v40 = vld [vmem:[%s4805_s11 + $0x420] sm:$0xff]  ;;  %v4486_v55 = vld [vmem:[%s4805_s11 + $0x470] sm:$0xff] }
 0x1ec   : > { %v1959_v12 = vmul.f32 %v6896_v9, %v1639_v19  ;;  %v1655_v61 = vsub.f32 %v4484_v40, %v6898_v25  ;;  %v6918_v49 = vpack.c.bf16 %v6377_v44, %v6374_v54 }
 0x1ed   : > { %v2161_v23 = vpack.c.bf16 %v1969_v58, %v1961_v29  ;;  %v1665_v58 = vsub.f32 %v4486_v55, %v6897_v17 }
 0x1ef   : > { %v1985_v29 = vmul.f32 %v6899_v53, %v1665_v58 }
 0x1f0   : > { %3149 = vmatmul.mubr.bf16.gmra.mrb[88].mxu0 %v2151_v16  ;;  %3310 = vmatmul.mubr.bf16.gmra.mrb[88].mxu1 %v2153_v36 }
 0x1f1   : > { %3156 = vmatprep.mubr.bf16.mxu0 %v2160_v22  ;;  %3317 = vmatprep.mubr.bf16.mxu1 %v2162_v4  ;;  %v2159_v22 = vpack.c.bf16 %v1967_v41, %v1959_v12  ;;  %v6900_v4 = vld [vmem:[#allocation15_spill] sm:$0xff] }
 0x1f2   : > { %v3650_v31 = vpop.f32.mrb[0].mxu0  ;;  %v3762_v3 = vpop.f32.mrb[0].mxu1  ;;  %v1976_v18 = vmul.f32 %v6900_v4, %v1656_v26  ;;  %v1978_v30 = vmul.f32 %v6900_v4, %v1658_v59  ;;  %v4485_v41 = vld [vmem:[%s4805_s11 + $0x460] sm:$0xff]  ;;  %v4487_v26 = vld [vmem:[%s4805_s11 + $0x4e8] sm:$0xff]  ;;  %v4488_v59 = vld [vmem:[%s4805_s11 + $0x4f8] sm:$0xff] }
 0x1f3   : > { %v3651_v8 = vpop.f32.mrb[1].mxu0  ;;  %v3763_v34 = vpop.f32.mrb[1].mxu1  ;;  %v1663_v12 = vsub.f32 %v4485_v41, %v6897_v17  ;;  %v6904_v41 = vld [vmem:[#allocation19_spill] sm:$0xff] }
 0x1f4   : > { %v3652_v7 = vadd.f32 %v3651_v8, %v3650_v31  ;;  %v3764_v62 = vadd.f32 %v3763_v34, %v3762_v3  ;;  %v3653_v16 = vpop.f32.mrb[2].mxu0  ;;  %v3765_v36 = vpop.f32.mrb[2].mxu1  ;;  %v2168_v9 = vpack.c.bf16 %v1984_v60, %v1976_v18  ;;  %v2170_v51 = vpack.c.bf16 %v1986_v11, %v1978_v30  ;;  %v6901_v60 = vld [vmem:[#allocation13_spill] sm:$0xff] }
 0x1f5   : > { %v3654_v14 = vpop.f32.mrb[3].mxu0  ;;  %v3766_v19 = vpop.f32.mrb[3].mxu1  ;;  %v1983_v46 = vmul.f32 %v6899_v53, %v1663_v12  ;;  %v1680_v42 = vsub.f32 %v4487_v26, %v6901_v60  ;;  %v1682_v11 = vsub.f32 %v4488_v59, %v6901_v60  ;;  %v1975_v8 = vmul.f32 %v6900_v4, %v1655_v61  ;;  %v4489_v34 = vld [vmem:[%s4805_s11 + $0x430] sm:$0xff] }
 0x1f6   : > { %v2781_v63 = vadd.f32 %v3652_v7, %v6434_v33  ;;  %v3655_v13 = vadd.f32 %v3654_v14, %v3653_v16  ;;  %v3767_v43 = vadd.f32 %v3766_v19, %v3765_v36  ;;  %v1657_v17 = vsub.f32 %v4489_v34, %v6898_v25  ;;  %v4490_v36 = vld [vmem:[%s4805_s11 + $0x4a8] sm:$0xff]  ;;  %v4491_v19 = vld [vmem:[%s4805_s11 + $0x4b8] sm:$0xff] }
 0x1f7   : > { %v6903_v30 = vld [vmem:[#allocation21_spill] sm:$0xff]  ;;  %v2167_v61 = vpack.c.bf16 %v1983_v46, %v1975_v8  ;;  %v4493_v46 = vld [vmem:[%s4805_s11 + $0x4e0] sm:$0xff] }
 0x1f8   : > { %3157 = vmatmul.mubr.bf16.gmra.mrb[92].mxu0 %v2159_v22  ;;  %3318 = vmatmul.mubr.bf16.gmra.mrb[92].mxu1 %v2161_v23  ;;  %v6446_v31 = vadd.f32 %v3764_v62, %v2781_v63  ;;  %v2784_v3 = vadd.f32 %v3655_v13, %v6434_v33  ;;  %v6902_v22 = vld [vmem:[#allocation10_spill] sm:$0xff]  ;;  %v2000_v14 = vmul.f32 %v6903_v30, %v1680_v42 }
 0x1f9   : > { %3164 = vmatprep.mubr.bf16.mxu0 %v2168_v9  ;;  %3325 = vmatprep.mubr.bf16.mxu1 %v2170_v51  ;;  %v1672_v18 = vsub.f32 %v4490_v36, %v6902_v22  ;;  %v1674_v23 = vsub.f32 %v4491_v19, %v6902_v22  ;;  %v2002_v63 = vmul.f32 %v6903_v30, %v1682_v11  ;;  %v4495_v19 = vld [vmem:[%s4805_s11 + $0x568] sm:$0xff] }
 0x1fa   : > { %v6458_v7 = vadd.f32 %v3767_v43, %v2784_v3  ;;  %v3656_v62 = vpop.f32.mrb[4].mxu0  ;;  %v3768_v16 = vpop.f32.mrb[4].mxu1  ;;  %v1977_v25 = vmul.f32 %v6900_v4, %v1657_v17  ;;  %v4492_v17 = vld [vmem:[%s4805_s11 + $0x4a0] sm:$0xff]  ;;  %v1679_v8 = vsub.f32 %v4493_v46, %v6901_v60 }
 0x1fb   : > { %v3657_v13 = vpop.f32.mrb[5].mxu0  ;;  %v3769_v9 = vpop.f32.mrb[5].mxu1  ;;  %v1992_v12 = vmul.f32 %v6904_v41, %v1672_v18  ;;  %v1994_v55 = vmul.f32 %v6904_v41, %v1674_v23  ;;  %v6905_v23 = vld [vmem:[#allocation17_spill] sm:$0xff] }
 0x1fc   : > { %v3658_v53 = vadd.f32 %v3657_v13, %v3656_v62  ;;  %v3770_v43 = vadd.f32 %v3769_v9, %v3768_v16  ;;  %v3659_v51 = vpop.f32.mrb[6].mxu0  ;;  %v3771_v40 = vpop.f32.mrb[6].mxu1  ;;  %v2169_v26 = vpack.c.bf16 %v1985_v29, %v1977_v25  ;;  %v1671_v62 = vsub.f32 %v4492_v17, %v6902_v22  ;;  %v4494_v16 = vld [vmem:[%s4805_s11 + $0x4f0] sm:$0xff]  ;;  %v4496_v13 = vld [vmem:[%s4805_s11 + $0x578] sm:$0xff] }
 0x1fd   : > { %v3660_v58 = vpop.f32.mrb[7].mxu0  ;;  %v3772_v3 = vpop.f32.mrb[7].mxu1  ;;  %v2176_v4 = vpack.c.bf16 %v2000_v14, %v1992_v12  ;;  %v2178_v34 = vpack.c.bf16 %v2002_v63, %v1994_v55  ;;  %v1681_v29 = vsub.f32 %v4494_v16, %v6901_v60  ;;  %v1999_v14 = vmul.f32 %v6903_v30, %v1679_v8  ;;  %v4498_v12 = vld [vmem:[%s4805_s11 + $0x528] sm:$0xff]  ;;  %v6906_v55 = vld [vmem:[#allocation14_spill] sm:$0xff]  ;;  %v6908_v16 = vld [vmem:[#allocation23_spill] sm:$0xff] }
 0x1fe   : > { %v2789_v42 = vadd.f32 %v3658_v53, %v6434_v33  ;;  %v3661_v59 = vadd.f32 %v3660_v58, %v3659_v51  ;;  %v3773_v11 = vadd.f32 %v3772_v3, %v3771_v40  ;;  %v1696_v63 = vsub.f32 %v4495_v19, %v6905_v23  ;;  %v4497_v53 = vld [vmem:[%s4805_s11 + $0x4b0] sm:$0xff]  ;;  %v4500_v19 = vld [vmem:[%s4805_s11 + $0x560] sm:$0xff] }
 0x1ff   : > { %v1698_v9 = vsub.f32 %v4496_v13, %v6905_v23  ;;  %v1991_v25 = vmul.f32 %v6904_v41, %v1671_v62  ;;  %v1673_v60 = vsub.f32 %v4497_v53, %v6902_v22  ;;  %v1688_v58 = vsub.f32 %v4498_v12, %v6906_v55  ;;  %v6907_v3 = vld [vmem:[#allocation25_spill] sm:$0xff] }
 0x200   : > { %3165 = vmatmul.mubr.bf16.gmra.mrb[96].mxu0 %v2167_v61  ;;  %3326 = vmatmul.mubr.bf16.gmra.mrb[96].mxu1 %v2169_v26  ;;  %v6476_v36 = vadd.f32 %v3770_v43, %v2789_v42  ;;  %v2792_v18 = vadd.f32 %v3661_v59, %v6434_v33  ;;  %v2001_v43 = vmul.f32 %v6903_v30, %v1681_v29  ;;  %v4499_v42 = vld [vmem:[%s4805_s11 + $0x538] sm:$0xff] }
 0x201   : > { %3172 = vmatprep.mubr.bf16.mxu0 %v2176_v4  ;;  %3333 = vmatprep.mubr.bf16.mxu1 %v2178_v34  ;;  %v2016_v26 = vmul.f32 %v6907_v3, %v1696_v63  ;;  %v1690_v59 = vsub.f32 %v4499_v42, %v6906_v55  ;;  %v2018_v4 = vmul.f32 %v6907_v3, %v1698_v9  ;;  %v4502_v42 = vld [vmem:[%s4805_s11 + $0x570] sm:$0xff] }
 0x202   : > { %v6488_v51 = vadd.f32 %v3773_v11, %v2792_v18  ;;  %v3662_v40 = vpop.f32.mrb[8].mxu0  ;;  %v3774_v61 = vpop.f32.mrb[8].mxu1  ;;  %v1993_v22 = vmul.f32 %v6904_v41, %v1673_v60  ;;  %v2175_v8 = vpack.c.bf16 %v1999_v14, %v1991_v25  ;;  %v2008_v29 = vmul.f32 %v6908_v16, %v1688_v58  ;;  %v4501_v14 = vld [vmem:[%s4805_s11 + $0x520] sm:$0xff] }
 0x203   : > { %v3663_v34 = vpop.f32.mrb[9].mxu0  ;;  %v3775_v17 = vpop.f32.mrb[9].mxu1  ;;  %v2010_v18 = vmul.f32 %v6908_v16, %v1690_v59  ;;  %v1695_v63 = vsub.f32 %v4500_v19, %v6905_v23  ;;  %v1687_v25 = vsub.f32 %v4501_v14, %v6906_v55  ;;  %v1697_v59 = vsub.f32 %v4502_v42, %v6905_v23  ;;  %v4506_v19 = vld [vmem:[%s4805_s11 + $0x5a8] sm:$0xff] }
 0x204   : > { %v3664_v30 = vadd.f32 %v3663_v34, %v3662_v40  ;;  %v3776_v11 = vadd.f32 %v3775_v17, %v3774_v61  ;;  %v3665_v62 = vpop.f32.mrb[10].mxu0  ;;  %v3777_v46 = vpop.f32.mrb[10].mxu1  ;;  %v2177_v53 = vpack.c.bf16 %v2001_v43, %v1993_v22  ;;  %v2184_v40 = vpack.c.bf16 %v2016_v26, %v2008_v29  ;;  %v4503_v26 = vld [vmem:[%s4805_s11 + $0x5e8] sm:$0xff]  ;;  %v4504_v22 = vld [vmem:[%s4805_s11 + $0x5f8] sm:$0xff] }
 0x205   : > { %v3666_v13 = vpop.f32.mrb[11].mxu0  ;;  %v3778_v9 = vpop.f32.mrb[11].mxu1  ;;  %v2186_v61 = vpack.c.bf16 %v2018_v4, %v2010_v18  ;;  %v2015_v58 = vmul.f32 %v6907_v3, %v1695_v63  ;;  %v6909_v4 = vld [vmem:[#allocation20_spill] sm:$0xff]  ;;  %v2017_v23 = vmul.f32 %v6907_v3, %v1697_v59  ;;  %v6910_v63 = vld [vmem:[#allocation18_spill] sm:$0xff]  ;;  %v6911_v59 = vld [vmem:[#allocation27_spill] sm:$0xff] }
 0x206   : > { %v2797_v12 = vadd.f32 %v3664_v30, %v6434_v33  ;;  %v3667_v41 = vadd.f32 %v3666_v13, %v3665_v62  ;;  %v3779_v60 = vadd.f32 %v3778_v9, %v3777_v46  ;;  %v1712_v17 = vsub.f32 %v4503_v26, %v6909_v4  ;;  %v4505_v46 = vld [vmem:[%s4805_s11 + $0x530] sm:$0xff] }
 0x207   : > { %v1714_v30 = vsub.f32 %v4504_v22, %v6909_v4  ;;  %v2007_v62 = vmul.f32 %v6908_v16, %v1687_v25  ;;  %v1704_v13 = vsub.f32 %v4506_v19, %v6910_v63 }
 0x208   : > { %3173 = vmatmul.mubr.bf16.gmra.mrb[100].mxu0 %v2175_v8  ;;  %3334 = vmatmul.mubr.bf16.gmra.mrb[100].mxu1 %v2177_v53  ;;  %v6507_v43 = vadd.f32 %v3776_v11, %v2797_v12  ;;  %v2800_v34 = vadd.f32 %v3667_v41, %v6434_v33  ;;  %v1689_v8 = vsub.f32 %v4505_v46, %v6906_v55  ;;  %v4507_v53 = vld [vmem:[%s4805_s11 + $0x5b8] sm:$0xff]  ;;  %v4509_v46 = vld [vmem:[%s4805_s11 + $0x5e0] sm:$0xff] }
 0x209   : > { %3180 = vmatprep.mubr.bf16.mxu0 %v2184_v40  ;;  %3341 = vmatprep.mubr.bf16.mxu1 %v2186_v61  ;;  %v2032_v9 = vmul.f32 %v5949_v28, %v1712_v17  ;;  %v1706_v12 = vsub.f32 %v4507_v53, %v6910_v63  ;;  %v2034_v41 = vmul.f32 %v5949_v28, %v1714_v30  ;;  %v4508_v17 = vld [vmem:[%s4805_s11 + $0x5a0] sm:$0xff]  ;;  %v4510_v53 = vld [vmem:[%s4805_s11 + $0x5b0] sm:$0xff] }
 0x20a   : > { %v6518_v11 = vadd.f32 %v3779_v60, %v2800_v34  ;;  %v3668_v29 = vpop.f32.mrb[12].mxu0  ;;  %v3780_v18 = vpop.f32.mrb[12].mxu1  ;;  %v2183_v61 = vpack.c.bf16 %v2015_v58, %v2007_v62  ;;  %v2009_v3 = vmul.f32 %v6908_v16, %v1689_v8  ;;  %v2024_v34 = vmul.f32 %v6911_v59, %v1704_v13 }
 0x20b   : > { %v3669_v40 = vpop.f32.mrb[13].mxu0  ;;  %v3781_v55 = vpop.f32.mrb[13].mxu1  ;;  %v2026_v26 = vmul.f32 %v6911_v59, %v1706_v12  ;;  %v1703_v22 = vsub.f32 %v4508_v17, %v6910_v63  ;;  %v1711_v30 = vsub.f32 %v4509_v46, %v6909_v4  ;;  %v1705_v12 = vsub.f32 %v4510_v53, %v6910_v63  ;;  %v4514_v46 = vld [vmem:[%s4805_s11 + $0x628] sm:$0xff] }
 0x20c   : > { %v3670_v60 = vadd.f32 %v3669_v40, %v3668_v29  ;;  %v3782_v14 = vadd.f32 %v3781_v55, %v3780_v18  ;;  %v3671_v25 = vpop.f32.mrb[14].mxu0  ;;  %v3783_v42 = vpop.f32.mrb[14].mxu1  ;;  %v2185_v62 = vpack.c.bf16 %v2017_v23, %v2009_v3  ;;  %v2192_v18 = vpack.c.bf16 %v2032_v9, %v2024_v34  ;;  %v4511_v40 = vld [vmem:[%s4805_s11 + $0x5f0] sm:$0xff] }
 0x20d   : > { %v3672_v19 = vpop.f32.mrb[15].mxu0  ;;  %v3784_v58 = vpop.f32.mrb[15].mxu1  ;;  %v2194_v13 = vpack.c.bf16 %v2034_v41, %v2026_v26  ;;  %v1713_v55 = vsub.f32 %v4511_v40, %v6909_v4  ;;  %v2031_v17 = vmul.f32 %v5949_v28, %v1711_v30  ;;  %v4512_v41 = vld [vmem:[%s4805_s11 + $0x668] sm:$0xff]  ;;  %v6913_v30 = vld [vmem:[#allocation22_spill] sm:$0xff] }
 0x20e   : > { %v2805_v16 = vadd.f32 %v3670_v60, %v6434_v33  ;;  %v3673_v8 = vadd.f32 %v3672_v19, %v3671_v25  ;;  %v3785_v29 = vadd.f32 %v3784_v58, %v3783_v42  ;;  %v6912_v60 = vld [vmem:[#allocation24_spill] sm:$0xff]  ;;  %v4513_v25 = vld [vmem:[%s4805_s11 + $0x678] sm:$0xff]  ;;  %v2025_v42 = vmul.f32 %v6911_v59, %v1705_v12 }
 0x20f   : > { %v2033_v9 = vmul.f32 %v5949_v28, %v1713_v55  ;;  %v1728_v63 = vsub.f32 %v4512_v41, %v6912_v60  ;;  %v1730_v4 = vsub.f32 %v4513_v25, %v6912_v60  ;;  %v1720_v19 = vsub.f32 %v4514_v46, %v6913_v30  ;;  %v6914_v58 = vld [vmem:[#allocation30_spill] sm:$0xff]  ;;  %v6915_v55 = vld [vmem:[#allocation29_spill] sm:$0xff]  ;;  %v4516_v46 = vld [vmem:[%s4805_s11 + $0x620] sm:$0xff] }
 0x210   : > { %3181 = vmatmul.mubr.bf16.gmra.mrb[104].mxu0 %v2183_v61  ;;  %3342 = vmatmul.mubr.bf16.gmra.mrb[104].mxu1 %v2185_v62  ;;  %v6539_v23 = vadd.f32 %v3782_v14, %v2805_v16  ;;  %v2808_v3 = vadd.f32 %v3673_v8, %v6434_v33  ;;  %v2023_v61 = vmul.f32 %v6911_v59, %v1703_v22  ;;  %v4515_v28 = vld [vmem:[%s4805_s11 + $0x638] sm:$0xff] }
 0x211   : > { %3188 = vmatprep.mubr.bf16.mxu0 %v2192_v18  ;;  %3349 = vmatprep.mubr.bf16.mxu1 %v2194_v13  ;;  %v2048_v62 = vmul.f32 %v6914_v58, %v1728_v63  ;;  %v1722_v16 = vsub.f32 %v4515_v28, %v6913_v30  ;;  %v2050_v8 = vmul.f32 %v6914_v58, %v1730_v4 }
 0x212   : > { %v6549_v34 = vadd.f32 %v3785_v29, %v2808_v3  ;;  %v3674_v14 = vpop.f32.mrb[16].mxu0  ;;  %v3786_v26 = vpop.f32.mrb[16].mxu1  ;;  %v2191_v12 = vpack.c.bf16 %v2031_v17, %v2023_v61  ;;  %v2193_v40 = vpack.c.bf16 %v2033_v9, %v2025_v42  ;;  %v2040_v3 = vmul.f32 %v6915_v55, %v1720_v19  ;;  %v4517_v17 = vld [vmem:[%s4805_s11 + $0x660] sm:$0xff]  ;;  %v4518_v61 = vld [vmem:[%s4805_s11 + $0x670] sm:$0xff]  ;;  %v4519_v19 = vld [vmem:[%s4805_s11 + $0x6e8] sm:$0xff] }
 0x213   : > { %v3675_v18 = vpop.f32.mrb[17].mxu0  ;;  %v3787_v13 = vpop.f32.mrb[17].mxu1  ;;  %v2042_v41 = vmul.f32 %v6915_v55, %v1722_v16  ;;  %v1719_v4 = vsub.f32 %v4516_v46, %v6913_v30  ;;  %v1727_v9 = vsub.f32 %v4517_v17, %v6912_v60  ;;  %v1729_v42 = vsub.f32 %v4518_v61, %v6912_v60  ;;  %v6916_v16 = vld [vmem:[#allocation28_spill] sm:$0xff] }
 0x214   : > { %v3676_v22 = vadd.f32 %v3675_v18, %v3674_v14  ;;  %v3788_v53 = vadd.f32 %v3787_v13, %v3786_v26  ;;  %v3677_v59 = vpop.f32.mrb[18].mxu0  ;;  %v3789_v29 = vpop.f32.mrb[18].mxu1  ;;  %v2200_v18 = vpack.c.bf16 %v2048_v62, %v2040_v3  ;;  %v1744_v46 = vsub.f32 %v4519_v19, %v6916_v16  ;;  %v4521_v3 = vld [vmem:[%s4805_s11 + $0x6f8] sm:$0xff] }
 0x215   : > { %v3678_v63 = vpop.f32.mrb[19].mxu0  ;;  %v3790_v25 = vpop.f32.mrb[19].mxu1  ;;  %v2202_v13 = vpack.c.bf16 %v2050_v8, %v2042_v41  ;;  %v2047_v62 = vmul.f32 %v6914_v58, %v1727_v9  ;;  %v4520_v8 = vld [vmem:[%s4805_s11 + $0x630] sm:$0xff]  ;;  %v1746_v60 = vsub.f32 %v4521_v3, %v6916_v16 }
 0x216   : > { %v2813_v28 = vadd.f32 %v3676_v22, %v6434_v33  ;;  %v3679_v14 = vadd.f32 %v3678_v63, %v3677_v59  ;;  %v3791_v26 = vadd.f32 %v3790_v25, %v3789_v29  ;;  %v1721_v29 = vsub.f32 %v4520_v8, %v6913_v30  ;;  %v6917_v41 = vld [vmem:[#allocation26_spill] sm:$0xff] }
 0x217   : > { %v2039_v30 = vmul.f32 %v6915_v55, %v1719_v4 }
 0x218   : > { %3189 = vmatmul.mubr.bf16.gmra.mrb[108].mxu0 %v2191_v12  ;;  %3350 = vmatmul.mubr.bf16.gmra.mrb[108].mxu1 %v2193_v40  ;;  %v6568_v22 = vadd.f32 %v3788_v53, %v2813_v28  ;;  %v2816_v59 = vadd.f32 %v3679_v14, %v6434_v33  ;;  %v2049_v12 = vmul.f32 %v6914_v58, %v1729_v42  ;;  %v4522_v40 = vld [vmem:[%s4805_s11 + $0x6a8] sm:$0xff]  ;;  %v4523_v28 = vld [vmem:[%s4805_s11 + $0x6b8] sm:$0xff] }
 0x219   : > { %3196 = vmatprep.mubr.bf16.mxu0 %v2200_v18  ;;  %3357 = vmatprep.mubr.bf16.mxu1 %v2202_v13  ;;  %v1736_v63 = vsub.f32 %v4522_v40, %v6917_v41  ;;  %v2064_v53 = vmul.f32 %v6021_v50, %v1744_v46  ;;  %v1738_v14 = vsub.f32 %v4523_v28, %v6917_v41 }
 0x21a   : > { %v6580_v25 = vadd.f32 %v3791_v26, %v2816_v59  ;;  %v2066_v18 = vmul.f32 %v6021_v50, %v1746_v60  ;;  %v2041_v9 = vmul.f32 %v6915_v55, %v1721_v29  ;;  %v2199_v3 = vpack.c.bf16 %v2047_v62, %v2039_v30 }
 0x21b   : > { %v3680_v13 = vpop.f32.mrb[20].mxu0  ;;  %v3792_v17 = vpop.f32.mrb[20].mxu1  ;;  %v2056_v58 = vmul.f32 %v6000_v5, %v1736_v63  ;;  %v2058_v19 = vmul.f32 %v6000_v5, %v1738_v14  ;;  %v4524_v14 = vld [vmem:[%s4805_s11 + $0x6e0] sm:$0xff] }
 0x21c   : > { %v3681_v61 = vpop.f32.mrb[21].mxu0  ;;  %v3793_v42 = vpop.f32.mrb[21].mxu1  ;;  %v2201_v60 = vpack.c.bf16 %v2049_v12, %v2041_v9  ;;  %v4527_v9 = vld [vmem:[%s4805_s11 + $0x6b0] sm:$0xff] }
 0x21d   : > { %v3682_v26 = vadd.f32 %v3681_v61, %v3680_v13  ;;  %v3794_v46 = vadd.f32 %v3793_v42, %v3792_v17  ;;  %v3683_v59 = vpop.f32.mrb[22].mxu0  ;;  %v3795_v8 = vpop.f32.mrb[22].mxu1  ;;  %v2208_v40 = vpack.c.bf16 %v2064_v53, %v2056_v58  ;;  %v2210_v2 = vpack.c.bf16 %v2066_v18, %v2058_v19  ;;  %v4525_v17 = vld [vmem:[%s4805_s11 + $0x6f0] sm:$0xff]  ;;  %v4526_v53 = vld [vmem:[%s4805_s11 + $0x6a0] sm:$0xff] }
 0x21e   : > { %v3684_v28 = vpop.f32.mrb[23].mxu0  ;;  %v3796_v4 = vpop.f32.mrb[23].mxu1  ;;  %v1743_v13 = vsub.f32 %v4524_v14, %v6916_v16  ;;  %v1745_v61 = vsub.f32 %v4525_v17, %v6916_v16  ;;  %v1735_v18 = vsub.f32 %v4526_v53, %v6917_v41  ;;  %v1737_v58 = vsub.f32 %v4527_v9, %v6917_v41 }
 0x21f   : > { %v2821_v55 = vadd.f32 %v3682_v26, %v6434_v33  ;;  %v3685_v29 = vadd.f32 %v3684_v28, %v3683_v59  ;;  %v3797_v63 = vadd.f32 %v3796_v4, %v3795_v8 }
 0x220   : > { %3197 = vmatmul.mubr.bf16.gmra.mrb[112].mxu0 %v2199_v3  ;;  %3358 = vmatmul.mubr.bf16.gmra.mrb[112].mxu1 %v2201_v60  ;;  %v2063_v30 = vmul.f32 %v6021_v50, %v1743_v13  ;;  %v2065_v42 = vmul.f32 %v6021_v50, %v1745_v61  ;;  %v2055_v16 = vmul.f32 %v6000_v5, %v1735_v18 }
 0x221   : > { %3204 = vmatprep.mubr.bf16.mxu0 %v2208_v40  ;;  %3365 = vmatprep.mubr.bf16.mxu1 %v2210_v2  ;;  %v6594_v62 = vadd.f32 %v3794_v46, %v2821_v55  ;;  %v2824_v12 = vadd.f32 %v3685_v29, %v6434_v33  ;;  %v2057_v2 = vmul.f32 %v6000_v5, %v1737_v58 }
 0x222   : > { %v2207_v26 = vpack.c.bf16 %v2063_v30, %v2055_v16 }
 0x223   : > { %v6603_v19 = vadd.f32 %v3797_v63, %v2824_v12  ;;  %v2209_v46 = vpack.c.bf16 %v2065_v42, %v2057_v2 }
 0x226   : > { %v3686_v59 = vpop.f32.mrb[24].mxu0  ;;  %v3798_v8 = vpop.f32.mrb[24].mxu1 }
 0x227   : > { %v3687_v3 = vpop.f32.mrb[25].mxu0  ;;  %v3799_v60 = vpop.f32.mrb[25].mxu1 }
 0x228   : > { %3205 = vmatmul.mubr.bf16.gmra.mrb[116].mxu0 %v2207_v26  ;;  %3366 = vmatmul.mubr.bf16.gmra.mrb[116].mxu1 %v2209_v46  ;;  %v3688_v40 = vadd.f32 %v3687_v3, %v3686_v59  ;;  %v3800_v28 = vadd.f32 %v3799_v60, %v3798_v8  ;;  %v3689_v4 = vpop.f32.mrb[26].mxu0  ;;  %v3801_v41 = vpop.f32.mrb[26].mxu1 }
 0x229   : > { %3212 = vmatprep.mubr.bf16.mxu0 %v2216_v56  ;;  %3373 = vmatprep.mubr.bf16.mxu1 %v2218_v6  ;;  %v3690_v5 = vpop.f32.mrb[27].mxu0  ;;  %v3802_v50 = vpop.f32.mrb[27].mxu1 }
 0x22a   : > { %v2829_v55 = vadd.f32 %v3688_v40, %v6434_v33  ;;  %v3691_v29 = vadd.f32 %v3690_v5, %v3689_v4  ;;  %v3803_v63 = vadd.f32 %v3802_v50, %v3801_v41 }
 0x22c   : > { %v6614_v14 = vadd.f32 %v3800_v28, %v2829_v55  ;;  %v2832_v13 = vadd.f32 %v3691_v29, %v6434_v33 }
 0x22e   : > { %v6617_v17 = vadd.f32 %v3803_v63, %v2832_v13 }
 0x230   : > { %3213 = vmatmul.mubr.bf16.gmra.mrb[120].mxu0 %v2215_v37  ;;  %3374 = vmatmul.mubr.bf16.gmra.mrb[120].mxu1 %v2217_v15 }
 0x231   : > { %3220 = vmatprep.mubr.bf16.mxu0 %v2224_v1  ;;  %3381 = vmatprep.mubr.bf16.mxu1 %v2226_v39 }
 0x232   : > { %v3692_v21 = vpop.f32.mrb[28].mxu0  ;;  %v3804_v32 = vpop.f32.mrb[28].mxu1 }
 0x233   : > { %v3693_v48 = vpop.f32.mrb[29].mxu0  ;;  %v3805_v45 = vpop.f32.mrb[29].mxu1 }
 0x234   : > { %v3694_v56 = vadd.f32 %v3693_v48, %v3692_v21  ;;  %v3806_v6 = vadd.f32 %v3805_v45, %v3804_v32  ;;  %v3695_v10 = vpop.f32.mrb[30].mxu0  ;;  %v3807_v57 = vpop.f32.mrb[30].mxu1 }
 0x235   : > { %v3696_v37 = vpop.f32.mrb[31].mxu0  ;;  %v3808_v61 = vpop.f32.mrb[31].mxu1 }
 0x236   : > { %v2837_v35 = vadd.f32 %v3694_v56, %v6434_v33  ;;  %v3697_v38 = vadd.f32 %v3696_v37, %v3695_v10  ;;  %v3809_v15 = vadd.f32 %v3808_v61, %v3807_v57 }
 0x238   : > { %3221 = vmatmul.mubr.bf16.gmra.mrb[124].mxu0 %v2223_v0  ;;  %3382 = vmatmul.mubr.bf16.gmra.mrb[124].mxu1 %v6918_v49  ;;  %v6638_v52 = vadd.f32 %v3806_v6, %v2837_v35  ;;  %v2840_v47 = vadd.f32 %v3697_v38, %v6434_v33 }
 0x23a   : > { %v6641_v1 = vadd.f32 %v3809_v15, %v2840_v47 }
 0x23d   : > { %v3698_v20 = vpop.f32.mrb[32].mxu0  ;;  %v3810_v39 = vpop.f32.mrb[32].mxu1 }
 0x23e   : > { %v3699_v12 = vpop.f32.mrb[33].mxu0  ;;  %v3811_v53 = vpop.f32.mrb[33].mxu1 }
 0x23f   : > { %v3700_v18 = vadd.f32 %v3699_v12, %v3698_v20  ;;  %v3812_v30 = vadd.f32 %v3811_v53, %v3810_v39  ;;  %v3701_v9 = vpop.f32.mrb[34].mxu0  ;;  %v3813_v58 = vpop.f32.mrb[34].mxu1 }
 0x240   : > { %v3702_v27 = vpop.f32.mrb[35].mxu0  ;;  %v3814_v24 = vpop.f32.mrb[35].mxu1 }
 0x241   : > { %v2845_v0 = vadd.f32 %v3700_v18, %v6434_v33  ;;  %v3703_v54 = vadd.f32 %v3702_v27, %v3701_v9  ;;  %v3815_v44 = vadd.f32 %v3814_v24, %v3813_v58 }
 0x243   : > { %v6644_v42 = vadd.f32 %v3812_v30, %v2845_v0  ;;  %v2848_v16 = vadd.f32 %v3703_v54, %v6434_v33 }
 0x245   : > { %v6647_v2 = vadd.f32 %v3815_v44, %v2848_v16 }
 0x248   : > { %v3704_v26 = vpop.f32.mrb[36].mxu0  ;;  %v3816_v46 = vpop.f32.mrb[36].mxu1 }
 0x249   : > { %v3705_v59 = vpop.f32.mrb[37].mxu0  ;;  %v3817_v8 = vpop.f32.mrb[37].mxu1 }
 0x24a   : > { %v3706_v3 = vadd.f32 %v3705_v59, %v3704_v26  ;;  %v3818_v60 = vadd.f32 %v3817_v8, %v3816_v46  ;;  %v3707_v40 = vpop.f32.mrb[38].mxu0  ;;  %v3819_v28 = vpop.f32.mrb[38].mxu1 }
 0x24b   : > { %v3708_v4 = vpop.f32.mrb[39].mxu0  ;;  %v3820_v41 = vpop.f32.mrb[39].mxu1 }
 0x24c   : > { %v2853_v5 = vadd.f32 %v3706_v3, %v6434_v33  ;;  %v3709_v50 = vadd.f32 %v3708_v4, %v3707_v40  ;;  %v3821_v55 = vadd.f32 %v3820_v41, %v3819_v28 }
 0x24e   : > { %v6650_v29 = vadd.f32 %v3818_v60, %v2853_v5  ;;  %v2856_v63 = vadd.f32 %v3709_v50, %v6434_v33 }
 0x250   : > { %v6653_v13 = vadd.f32 %v3821_v55, %v2856_v63 }
 0x253   : > { %v3710_v21 = vpop.f32.mrb[40].mxu0  ;;  %v3822_v32 = vpop.f32.mrb[40].mxu1 }
 0x254   : > { %v3711_v48 = vpop.f32.mrb[41].mxu0  ;;  %v3823_v45 = vpop.f32.mrb[41].mxu1 }
 0x255   : > { %v3712_v56 = vadd.f32 %v3711_v48, %v3710_v21  ;;  %v3824_v6 = vadd.f32 %v3823_v45, %v3822_v32  ;;  %v3713_v10 = vpop.f32.mrb[42].mxu0  ;;  %v3825_v57 = vpop.f32.mrb[42].mxu1 }
 0x256   : > { %v3714_v37 = vpop.f32.mrb[43].mxu0  ;;  %v3826_v61 = vpop.f32.mrb[43].mxu1 }
 0x257   : > { %v2861_v35 = vadd.f32 %v3712_v56, %v6434_v33  ;;  %v3715_v38 = vadd.f32 %v3714_v37, %v3713_v10  ;;  %v3827_v15 = vadd.f32 %v3826_v61, %v3825_v57 }
 0x259   : > { %v6656_v49 = vadd.f32 %v3824_v6, %v2861_v35  ;;  %v2864_v47 = vadd.f32 %v3715_v38, %v6434_v33 }
 0x25b   : > { %v6659_v20 = vadd.f32 %v3827_v15, %v2864_v47 }
 0x25e   : > { %v3716_v39 = vpop.f32.mrb[44].mxu0  ;;  %v3828_v12 = vpop.f32.mrb[44].mxu1 }
 0x25f   : > { %v3717_v53 = vpop.f32.mrb[45].mxu0  ;;  %v3829_v18 = vpop.f32.mrb[45].mxu1 }
 0x260   : > { %v3718_v30 = vadd.f32 %v3717_v53, %v3716_v39  ;;  %v3830_v9 = vadd.f32 %v3829_v18, %v3828_v12  ;;  %v3719_v58 = vpop.f32.mrb[46].mxu0  ;;  %v3831_v27 = vpop.f32.mrb[46].mxu1 }
 0x261   : > { %v3720_v24 = vpop.f32.mrb[47].mxu0  ;;  %v3832_v0 = vpop.f32.mrb[47].mxu1 }
 0x262   : > { %v2869_v54 = vadd.f32 %v3718_v30, %v6434_v33  ;;  %v3721_v44 = vadd.f32 %v3720_v24, %v3719_v58  ;;  %v3833_v16 = vadd.f32 %v3832_v0, %v3831_v27 }
 0x264   : > { %v6662_v26 = vadd.f32 %v3830_v9, %v2869_v54  ;;  %v2872_v46 = vadd.f32 %v3721_v44, %v6434_v33 }
 0x266   : > { %v6665_v59 = vadd.f32 %v3833_v16, %v2872_v46 }
 0x26a   : > { %v3722_v8 = vpop.f32.mrb[48].mxu0  ;;  %v3834_v3 = vpop.f32.mrb[48].mxu1 }
 0x26b   : > { %v3723_v60 = vpop.f32.mrb[49].mxu0  ;;  %v3835_v40 = vpop.f32.mrb[49].mxu1 }
 0x26c   : > { %v3724_v28 = vadd.f32 %v3723_v60, %v3722_v8  ;;  %v3836_v4 = vadd.f32 %v3835_v40, %v3834_v3  ;;  %v3725_v41 = vpop.f32.mrb[50].mxu0  ;;  %v3837_v5 = vpop.f32.mrb[50].mxu1 }
 0x26d   : > { %v3726_v50 = vpop.f32.mrb[51].mxu0  ;;  %v3838_v55 = vpop.f32.mrb[51].mxu1 }
 0x26e   : > { %v2877_v63 = vadd.f32 %v3724_v28, %v6434_v33  ;;  %v3727_v21 = vadd.f32 %v3726_v50, %v3725_v41  ;;  %v3839_v32 = vadd.f32 %v3838_v55, %v3837_v5 }
 0x270   : > { %v6668_v48 = vadd.f32 %v3836_v4, %v2877_v63  ;;  %v2880_v45 = vadd.f32 %v3727_v21, %v6434_v33 }
 0x272   : > { %v6671_v56 = vadd.f32 %v3839_v32, %v2880_v45 }
 0x275   : > { %v3728_v6 = vpop.f32.mrb[52].mxu0  ;;  %v3840_v10 = vpop.f32.mrb[52].mxu1 }
 0x276   : > { %v3729_v57 = vpop.f32.mrb[53].mxu0  ;;  %v3841_v37 = vpop.f32.mrb[53].mxu1 }
 0x277   : > { %v3730_v61 = vadd.f32 %v3729_v57, %v3728_v6  ;;  %v3842_v35 = vadd.f32 %v3841_v37, %v3840_v10  ;;  %v3731_v38 = vpop.f32.mrb[54].mxu0  ;;  %v3843_v15 = vpop.f32.mrb[54].mxu1 }
 0x278   : > { %v3732_v47 = vpop.f32.mrb[55].mxu0  ;;  %v3844_v39 = vpop.f32.mrb[55].mxu1 }
 0x279   : > { %v2885_v12 = vadd.f32 %v3730_v61, %v6434_v33  ;;  %v3733_v53 = vadd.f32 %v3732_v47, %v3731_v38  ;;  %v3845_v18 = vadd.f32 %v3844_v39, %v3843_v15 }
 0x27b   : > { %v6674_v30 = vadd.f32 %v3842_v35, %v2885_v12  ;;  %v2888_v9 = vadd.f32 %v3733_v53, %v6434_v33 }
 0x27d   : > { %v6677_v58 = vadd.f32 %v3845_v18, %v2888_v9 }
 0x280   : > { %v3734_v27 = vpop.f32.mrb[56].mxu0  ;;  %v3846_v24 = vpop.f32.mrb[56].mxu1 }
 0x281   : > { %v3735_v0 = vpop.f32.mrb[57].mxu0  ;;  %v3847_v54 = vpop.f32.mrb[57].mxu1 }
 0x282   : > { %v3736_v44 = vadd.f32 %v3735_v0, %v3734_v27  ;;  %v3848_v16 = vadd.f32 %v3847_v54, %v3846_v24  ;;  %v3737_v46 = vpop.f32.mrb[58].mxu0  ;;  %v3849_v8 = vpop.f32.mrb[58].mxu1 }
 0x283   : > { %v3738_v3 = vpop.f32.mrb[59].mxu0  ;;  %v3850_v60 = vpop.f32.mrb[59].mxu1 }
 0x284   : > { %v2893_v40 = vadd.f32 %v3736_v44, %v6434_v33  ;;  %v3739_v28 = vadd.f32 %v3738_v3, %v3737_v46  ;;  %v3851_v4 = vadd.f32 %v3850_v60, %v3849_v8 }
 0x286   : > { %v6680_v41 = vadd.f32 %v3848_v16, %v2893_v40  ;;  %v2896_v5 = vadd.f32 %v3739_v28, %v6434_v33 }
 0x288   : > { %v6683_v50 = vadd.f32 %v3851_v4, %v2896_v5 }
 0x28b   : > { %v3740_v55 = vpop.f32.mrb[60].mxu0  ;;  %v3852_v63 = vpop.f32.mrb[60].mxu1 }
 0x28c   : > { %v3741_v21 = vpop.f32.mrb[61].mxu0  ;;  %v3853_v32 = vpop.f32.mrb[61].mxu1 }
 0x28d   : > { %v3742_v45 = vadd.f32 %v3741_v21, %v3740_v55  ;;  %v3854_v6 = vadd.f32 %v3853_v32, %v3852_v63  ;;  %v3743_v10 = vpop.f32.mrb[62].mxu0  ;;  %v3855_v57 = vpop.f32.mrb[62].mxu1 }
 0x28e   : > { %v3744_v37 = vpop.f32.mrb[63].mxu0  ;;  %v3856_v61 = vpop.f32.mrb[63].mxu1 }
 0x28f   : > { %v2901_v35 = vadd.f32 %v3742_v45, %v6434_v33  ;;  %v3745_v38 = vadd.f32 %v3744_v37, %v3743_v10  ;;  %v3857_v15 = vadd.f32 %v3856_v61, %v3855_v57 }
 0x291   : > { %v6686_v47 = vadd.f32 %v3854_v6, %v2901_v35  ;;  %v2904_v39 = vadd.f32 %v3745_v38, %v6434_v33 }
 0x293   : > { %v6689_v12 = vadd.f32 %v3857_v15, %v2904_v39  ;;  %v3874_v53 = vpop.f32.mrb[64].mxu0  ;;  %v3986_v18 = vpop.f32.mrb[64].mxu1 }
 0x294   : > { %v3875_v9 = vpop.f32.mrb[65].mxu0  ;;  %v3987_v27 = vpop.f32.mrb[65].mxu1 }
 0x295   : > { %v3876_v24 = vadd.f32 %v3875_v9, %v3874_v53  ;;  %v3988_v0 = vadd.f32 %v3987_v27, %v3986_v18  ;;  %v3877_v54 = vpop.f32.mrb[66].mxu0  ;;  %v3989_v44 = vpop.f32.mrb[66].mxu1 }
 0x296   : > { %v3878_v16 = vpop.f32.mrb[67].mxu0  ;;  %v3990_v46 = vpop.f32.mrb[67].mxu1 }
 0x297   : > { %v3103_v8 = vadd.f32 %v3876_v24, %v6446_v31  ;;  %v3879_v3 = vadd.f32 %v3878_v16, %v3877_v54  ;;  %v3991_v60 = vadd.f32 %v3990_v46, %v3989_v44 }
 0x299   : > { %v3264_v33 = vadd.f32 %v3988_v0, %v3103_v8  ;;  %v3106_v40 = vadd.f32 %v3879_v3, %v6458_v7 }
 0x29b   : > { %3391 = vst.msk [vmem:[%s6696_s20] sm:$0xff] %vm3390_vm0, %v3264_v33  ;;  %v3267_v28 = vadd.f32 %v3991_v60, %v3106_v40  ;;  %v3880_v4 = vpop.f32.mrb[68].mxu0  ;;  %v3992_v5 = vpop.f32.mrb[68].mxu1 }
 0x29c   : > { %v3881_v31 = vpop.f32.mrb[69].mxu0  ;;  %v3993_v55 = vpop.f32.mrb[69].mxu1 }
 0x29d   : > { %3392 = vst.msk [vmem:[%s6696_s20 + $0x8] sm:$0xff] %vm3390_vm0, %v3267_v28  ;;  %v3882_v63 = vadd.f32 %v3881_v31, %v3880_v4  ;;  %v3994_v21 = vadd.f32 %v3993_v55, %v3992_v5  ;;  %v3883_v32 = vpop.f32.mrb[70].mxu0  ;;  %v3995_v45 = vpop.f32.mrb[70].mxu1 }
 0x29e   : > { %v3884_v6 = vpop.f32.mrb[71].mxu0  ;;  %v3996_v10 = vpop.f32.mrb[71].mxu1 }
 0x29f   : > { %v3111_v57 = vadd.f32 %v3882_v63, %v6476_v36  ;;  %v3885_v7 = vadd.f32 %v3884_v6, %v3883_v32  ;;  %v3997_v37 = vadd.f32 %v3996_v10, %v3995_v45 }
 0x2a1   : > { %v3272_v61 = vadd.f32 %v3994_v21, %v3111_v57  ;;  %v3114_v35 = vadd.f32 %v3885_v7, %v6488_v51 }
 0x2a3   : > { %3393 = vst.msk [vmem:[%s6696_s20 + $0x10] sm:$0xff] %vm3390_vm0, %v3272_v61  ;;  %v3275_v38 = vadd.f32 %v3997_v37, %v3114_v35  ;;  %v3886_v15 = vpop.f32.mrb[72].mxu0  ;;  %v3998_v39 = vpop.f32.mrb[72].mxu1 }
 0x2a4   : > { %v3887_v53 = vpop.f32.mrb[73].mxu0  ;;  %v3999_v18 = vpop.f32.mrb[73].mxu1 }
 0x2a5   : > { %3394 = vst.msk [vmem:[%s6696_s20 + $0x18] sm:$0xff] %vm3390_vm0, %v3275_v38  ;;  %v3888_v9 = vadd.f32 %v3887_v53, %v3886_v15  ;;  %v4000_v27 = vadd.f32 %v3999_v18, %v3998_v39  ;;  %v3889_v24 = vpop.f32.mrb[74].mxu0  ;;  %v4001_v36 = vpop.f32.mrb[74].mxu1 }
 0x2a6   : > { %v3890_v0 = vpop.f32.mrb[75].mxu0  ;;  %v4002_v54 = vpop.f32.mrb[75].mxu1 }
 0x2a7   : > { %v3119_v44 = vadd.f32 %v3888_v9, %v6507_v43  ;;  %v3891_v51 = vadd.f32 %v3890_v0, %v3889_v24  ;;  %v4003_v16 = vadd.f32 %v4002_v54, %v4001_v36 }
 0x2a9   : > { %v3280_v46 = vadd.f32 %v4000_v27, %v3119_v44  ;;  %v3122_v8 = vadd.f32 %v3891_v51, %v6518_v11 }
 0x2ab   : > { %3395 = vst.msk [vmem:[%s6696_s20 + $0x20] sm:$0xff] %vm3390_vm0, %v3280_v46  ;;  %v3283_v3 = vadd.f32 %v4003_v16, %v3122_v8  ;;  %v3892_v60 = vpop.f32.mrb[76].mxu0  ;;  %v4004_v33 = vpop.f32.mrb[76].mxu1 }
 0x2ac   : > { %v3893_v40 = vpop.f32.mrb[77].mxu0  ;;  %v4005_v28 = vpop.f32.mrb[77].mxu1 }
 0x2ad   : > { %3396 = vst.msk [vmem:[%s6696_s20 + $0x28] sm:$0xff] %vm3390_vm0, %v3283_v3  ;;  %v3894_v4 = vadd.f32 %v3893_v40, %v3892_v60  ;;  %v4006_v5 = vadd.f32 %v4005_v28, %v4004_v33  ;;  %v3895_v31 = vpop.f32.mrb[78].mxu0  ;;  %v4007_v43 = vpop.f32.mrb[78].mxu1 }
 0x2ae   : > { %v3896_v55 = vpop.f32.mrb[79].mxu0  ;;  %v4008_v63 = vpop.f32.mrb[79].mxu1 }
 0x2af   : > { %v3127_v21 = vadd.f32 %v3894_v4, %v6539_v23  ;;  %v3897_v11 = vadd.f32 %v3896_v55, %v3895_v31  ;;  %v4009_v32 = vadd.f32 %v4008_v63, %v4007_v43 }
 0x2b1   : > { %v3288_v45 = vadd.f32 %v4006_v5, %v3127_v21  ;;  %v3130_v6 = vadd.f32 %v3897_v11, %v6549_v34 }
 0x2b3   : > { %3397 = vst.msk [vmem:[%s6696_s20 + $0x30] sm:$0xff] %vm3390_vm0, %v3288_v45  ;;  %v3291_v10 = vadd.f32 %v4009_v32, %v3130_v6  ;;  %v3898_v57 = vpop.f32.mrb[80].mxu0  ;;  %v4010_v7 = vpop.f32.mrb[80].mxu1 }
 0x2b4   : > { %v3899_v37 = vpop.f32.mrb[81].mxu0  ;;  %v4011_v61 = vpop.f32.mrb[81].mxu1 }
 0x2b5   : > { %3398 = vst.msk [vmem:[%s6696_s20 + $0x38] sm:$0xff] %vm3390_vm0, %v3291_v10  ;;  %v3900_v35 = vadd.f32 %v3899_v37, %v3898_v57  ;;  %v4012_v38 = vadd.f32 %v4011_v61, %v4010_v7  ;;  %v3901_v15 = vpop.f32.mrb[82].mxu0  ;;  %v4013_v23 = vpop.f32.mrb[82].mxu1 }
 0x2b6   : > { %v3902_v39 = vpop.f32.mrb[83].mxu0  ;;  %v4014_v53 = vpop.f32.mrb[83].mxu1 }
 0x2b7   : > { %v3135_v18 = vadd.f32 %v3900_v35, %v6568_v22  ;;  %v3903_v34 = vadd.f32 %v3902_v39, %v3901_v15  ;;  %v4015_v9 = vadd.f32 %v4014_v53, %v4013_v23 }
 0x2b9   : > { %v3296_v27 = vadd.f32 %v4012_v38, %v3135_v18  ;;  %v3138_v24 = vadd.f32 %v3903_v34, %v6580_v25 }
 0x2bb   : > { %3399 = vst.msk [vmem:[%s6696_s20 + $0x40] sm:$0xff] %vm3390_vm0, %v3296_v27  ;;  %v3299_v36 = vadd.f32 %v4015_v9, %v3138_v24  ;;  %v3904_v0 = vpop.f32.mrb[84].mxu0  ;;  %v4016_v54 = vpop.f32.mrb[84].mxu1 }
 0x2bc   : > { %v3905_v44 = vpop.f32.mrb[85].mxu0  ;;  %v4017_v51 = vpop.f32.mrb[85].mxu1 }
 0x2bd   : > { %3400 = vst.msk [vmem:[%s6696_s20 + $0x48] sm:$0xff] %vm3390_vm0, %v3299_v36  ;;  %v3906_v16 = vadd.f32 %v3905_v44, %v3904_v0  ;;  %v4018_v46 = vadd.f32 %v4017_v51, %v4016_v54  ;;  %v3907_v8 = vpop.f32.mrb[86].mxu0  ;;  %v4019_v22 = vpop.f32.mrb[86].mxu1 }
 0x2be   : > { %v3908_v3 = vpop.f32.mrb[87].mxu0  ;;  %v4020_v60 = vpop.f32.mrb[87].mxu1 }
 0x2bf   : > { %v3143_v33 = vadd.f32 %v3906_v16, %v6594_v62  ;;  %v3909_v25 = vadd.f32 %v3908_v3, %v3907_v8  ;;  %v4021_v40 = vadd.f32 %v4020_v60, %v4019_v22 }
 0x2c1   : > { %v3304_v28 = vadd.f32 %v4018_v46, %v3143_v33  ;;  %v3146_v4 = vadd.f32 %v3909_v25, %v6603_v19 }
 0x2c3   : > { %3401 = vst.msk [vmem:[%s6696_s20 + $0x50] sm:$0xff] %vm3390_vm0, %v3304_v28  ;;  %v3307_v5 = vadd.f32 %v4021_v40, %v3146_v4  ;;  %v3910_v31 = vpop.f32.mrb[88].mxu0  ;;  %v4022_v43 = vpop.f32.mrb[88].mxu1 }
 0x2c4   : > { %v3911_v55 = vpop.f32.mrb[89].mxu0  ;;  %v4023_v63 = vpop.f32.mrb[89].mxu1 }
 0x2c5   : > { %3402 = vst.msk [vmem:[%s6696_s20 + $0x58] sm:$0xff] %vm3390_vm0, %v3307_v5  ;;  %v3912_v21 = vadd.f32 %v3911_v55, %v3910_v31  ;;  %v4024_v11 = vadd.f32 %v4023_v63, %v4022_v43  ;;  %v3913_v32 = vpop.f32.mrb[90].mxu0  ;;  %v4025_v62 = vpop.f32.mrb[90].mxu1 }
 0x2c6   : > { %v3914_v45 = vpop.f32.mrb[91].mxu0  ;;  %v4026_v6 = vpop.f32.mrb[91].mxu1 }
 0x2c7   : > { %v3151_v10 = vadd.f32 %v3912_v21, %v6614_v14  ;;  %v3915_v19 = vadd.f32 %v3914_v45, %v3913_v32  ;;  %v4027_v57 = vadd.f32 %v4026_v6, %v4025_v62 }
 0x2c9   : > { %v3312_v7 = vadd.f32 %v4024_v11, %v3151_v10  ;;  %v3154_v37 = vadd.f32 %v3915_v19, %v6617_v17 }
 0x2cb   : > { %3403 = vst.msk [vmem:[%s6696_s20 + $0x60] sm:$0xff] %vm3390_vm0, %v3312_v7  ;;  %v3315_v61 = vadd.f32 %v4027_v57, %v3154_v37  ;;  %v3916_v35 = vpop.f32.mrb[92].mxu0  ;;  %v4028_v38 = vpop.f32.mrb[92].mxu1 }
 0x2cc   : > { %v3917_v15 = vpop.f32.mrb[93].mxu0  ;;  %v4029_v23 = vpop.f32.mrb[93].mxu1 }
 0x2cd   : > { %3404 = vst.msk [vmem:[%s6696_s20 + $0x68] sm:$0xff] %vm3390_vm0, %v3315_v61  ;;  %v3918_v39 = vadd.f32 %v3917_v15, %v3916_v35  ;;  %v4030_v53 = vadd.f32 %v4029_v23, %v4028_v38  ;;  %v3919_v18 = vpop.f32.mrb[94].mxu0  ;;  %v4031_v14 = vpop.f32.mrb[94].mxu1 }
 0x2ce   : > { %v3920_v34 = vpop.f32.mrb[95].mxu0  ;;  %v4032_v9 = vpop.f32.mrb[95].mxu1 }
 0x2cf   : > { %v3159_v27 = vadd.f32 %v3918_v39, %v6638_v52  ;;  %v3921_v17 = vadd.f32 %v3920_v34, %v3919_v18  ;;  %v4033_v24 = vadd.f32 %v4032_v9, %v4031_v14 }
 0x2d1   : > { %v3320_v36 = vadd.f32 %v4030_v53, %v3159_v27  ;;  %v3162_v0 = vadd.f32 %v3921_v17, %v6641_v1 }
 0x2d3   : > { %3405 = vst.msk [vmem:[%s6696_s20 + $0x70] sm:$0xff] %vm3390_vm0, %v3320_v36  ;;  %v3323_v54 = vadd.f32 %v4033_v24, %v3162_v0  ;;  %v3922_v44 = vpop.f32.mrb[96].mxu0  ;;  %v4034_v51 = vpop.f32.mrb[96].mxu1 }
 0x2d4   : > { %v3923_v16 = vpop.f32.mrb[97].mxu0  ;;  %v4035_v46 = vpop.f32.mrb[97].mxu1 }
 0x2d5   : > { %3406 = vst.msk [vmem:[%s6696_s20 + $0x78] sm:$0xff] %vm3390_vm0, %v3323_v54  ;;  %v3924_v8 = vadd.f32 %v3923_v16, %v3922_v44  ;;  %v4036_v22 = vadd.f32 %v4035_v46, %v4034_v51  ;;  %v3925_v3 = vpop.f32.mrb[98].mxu0  ;;  %v4037_v52 = vpop.f32.mrb[98].mxu1 }
 0x2d6   : > { %v3926_v60 = vpop.f32.mrb[99].mxu0  ;;  %v4038_v33 = vpop.f32.mrb[99].mxu1 }
 0x2d7   : > { %v3167_v25 = vadd.f32 %v3924_v8, %v6644_v42  ;;  %v3927_v1 = vadd.f32 %v3926_v60, %v3925_v3  ;;  %v4039_v40 = vadd.f32 %v4038_v33, %v4037_v52 }
 0x2d9   : > { %v3328_v28 = vadd.f32 %v4036_v22, %v3167_v25  ;;  %v3170_v4 = vadd.f32 %v3927_v1, %v6647_v2 }
 0x2db   : > { %3407 = vst.msk [vmem:[%s6696_s20 + $0x80] sm:$0xff] %vm3390_vm0, %v3328_v28  ;;  %v3331_v5 = vadd.f32 %v4039_v40, %v3170_v4  ;;  %v3928_v31 = vpop.f32.mrb[100].mxu0  ;;  %v4040_v43 = vpop.f32.mrb[100].mxu1 }
 0x2dc   : > { %v3929_v55 = vpop.f32.mrb[101].mxu0  ;;  %v4041_v63 = vpop.f32.mrb[101].mxu1 }
 0x2dd   : > { %3408 = vst.msk [vmem:[%s6696_s20 + $0x88] sm:$0xff] %vm3390_vm0, %v3331_v5  ;;  %v3930_v21 = vadd.f32 %v3929_v55, %v3928_v31  ;;  %v4042_v11 = vadd.f32 %v4041_v63, %v4040_v43  ;;  %v3931_v32 = vpop.f32.mrb[102].mxu0  ;;  %v4043_v42 = vpop.f32.mrb[102].mxu1 }
 0x2de   : > { %v3932_v62 = vpop.f32.mrb[103].mxu0  ;;  %v4044_v45 = vpop.f32.mrb[103].mxu1 }
 0x2df   : > { %v3175_v6 = vadd.f32 %v3930_v21, %v6650_v29  ;;  %v3933_v2 = vadd.f32 %v3932_v62, %v3931_v32  ;;  %v4045_v10 = vadd.f32 %v4044_v45, %v4043_v42 }
 0x2e1   : > { %v3336_v19 = vadd.f32 %v4042_v11, %v3175_v6  ;;  %v3178_v57 = vadd.f32 %v3933_v2, %v6653_v13 }
 0x2e3   : > { %3409 = vst.msk [vmem:[%s6696_s20 + $0x90] sm:$0xff] %vm3390_vm0, %v3336_v19  ;;  %v3339_v7 = vadd.f32 %v4045_v10, %v3178_v57  ;;  %v3934_v37 = vpop.f32.mrb[104].mxu0  ;;  %v4046_v61 = vpop.f32.mrb[104].mxu1 }
 0x2e4   : > { %v3935_v35 = vpop.f32.mrb[105].mxu0  ;;  %v4047_v38 = vpop.f32.mrb[105].mxu1 }
 0x2e5   : > { %3410 = vst.msk [vmem:[%s6696_s20 + $0x98] sm:$0xff] %vm3390_vm0, %v3339_v7  ;;  %v3936_v15 = vadd.f32 %v3935_v35, %v3934_v37  ;;  %v4048_v23 = vadd.f32 %v4047_v38, %v4046_v61  ;;  %v3937_v39 = vpop.f32.mrb[106].mxu0  ;;  %v4049_v29 = vpop.f32.mrb[106].mxu1 }
 0x2e6   : > { %v3938_v53 = vpop.f32.mrb[107].mxu0  ;;  %v4050_v18 = vpop.f32.mrb[107].mxu1 }
 0x2e7   : > { %v3183_v14 = vadd.f32 %v3936_v15, %v6656_v49  ;;  %v3939_v13 = vadd.f32 %v3938_v53, %v3937_v39  ;;  %v4051_v34 = vadd.f32 %v4050_v18, %v4049_v29 }
 0x2e9   : > { %v3344_v9 = vadd.f32 %v4048_v23, %v3183_v14  ;;  %v3186_v27 = vadd.f32 %v3939_v13, %v6659_v20 }
 0x2eb   : > { %3411 = vst.msk [vmem:[%s6696_s20 + $0xa0] sm:$0xff] %vm3390_vm0, %v3344_v9  ;;  %v3347_v17 = vadd.f32 %v4051_v34, %v3186_v27  ;;  %v3940_v24 = vpop.f32.mrb[108].mxu0  ;;  %v4052_v36 = vpop.f32.mrb[108].mxu1 }
 0x2ec   : > { %v3941_v0 = vpop.f32.mrb[109].mxu0  ;;  %v4053_v54 = vpop.f32.mrb[109].mxu1 }
 0x2ed   : > { %3412 = vst.msk [vmem:[%s6696_s20 + $0xa8] sm:$0xff] %vm3390_vm0, %v3347_v17  ;;  %v3942_v44 = vadd.f32 %v3941_v0, %v3940_v24  ;;  %v4054_v51 = vadd.f32 %v4053_v54, %v4052_v36  ;;  %v3943_v16 = vpop.f32.mrb[110].mxu0  ;;  %v4055_v49 = vpop.f32.mrb[110].mxu1 }
 0x2ee   : > { %v3944_v46 = vpop.f32.mrb[111].mxu0  ;;  %v4056_v8 = vpop.f32.mrb[111].mxu1 }
 0x2ef   : > { %v3191_v22 = vadd.f32 %v3942_v44, %v6662_v26  ;;  %v3945_v20 = vadd.f32 %v3944_v46, %v3943_v16  ;;  %v4057_v3 = vadd.f32 %v4056_v8, %v4055_v49 }
 0x2f1   : > { %v3352_v52 = vadd.f32 %v4054_v51, %v3191_v22  ;;  %v3194_v60 = vadd.f32 %v3945_v20, %v6665_v59 }
 0x2f3   : > { %3413 = vst.msk [vmem:[%s6696_s20 + $0xb0] sm:$0xff] %vm3390_vm0, %v3352_v52  ;;  %v3355_v33 = vadd.f32 %v4057_v3, %v3194_v60  ;;  %v3946_v25 = vpop.f32.mrb[112].mxu0  ;;  %v4058_v1 = vpop.f32.mrb[112].mxu1 }
 0x2f4   : > { %v3947_v40 = vpop.f32.mrb[113].mxu0  ;;  %v4059_v28 = vpop.f32.mrb[113].mxu1 }
 0x2f5   : > { %3414 = vst.msk [vmem:[%s6696_s20 + $0xb8] sm:$0xff] %vm3390_vm0, %v3355_v33  ;;  %v3948_v4 = vadd.f32 %v3947_v40, %v3946_v25  ;;  %v4060_v5 = vadd.f32 %v4059_v28, %v4058_v1  ;;  %v3949_v31 = vpop.f32.mrb[114].mxu0  ;;  %v4061_v26 = vpop.f32.mrb[114].mxu1 }
 0x2f6   : > { %v3950_v43 = vpop.f32.mrb[115].mxu0  ;;  %v4062_v55 = vpop.f32.mrb[115].mxu1 }
 0x2f7   : > { %v3199_v63 = vadd.f32 %v3948_v4, %v6668_v48  ;;  %v3951_v59 = vadd.f32 %v3950_v43, %v3949_v31  ;;  %v4063_v21 = vadd.f32 %v4062_v55, %v4061_v26 }
 0x2f9   : > { %v3360_v11 = vadd.f32 %v4060_v5, %v3199_v63  ;;  %v3202_v32 = vadd.f32 %v3951_v59, %v6671_v56 }
 0x2fb   : > { %3415 = vst.msk [vmem:[%s6696_s20 + $0xc0] sm:$0xff] %vm3390_vm0, %v3360_v11  ;;  %v3363_v42 = vadd.f32 %v4063_v21, %v3202_v32  ;;  %v3952_v62 = vpop.f32.mrb[116].mxu0  ;;  %v4064_v45 = vpop.f32.mrb[116].mxu1 }
 0x2fc   : > { %v3953_v6 = vpop.f32.mrb[117].mxu0  ;;  %v4065_v2 = vpop.f32.mrb[117].mxu1 }
 0x2fd   : > { %3416 = vst.msk [vmem:[%s6696_s20 + $0xc8] sm:$0xff] %vm3390_vm0, %v3363_v42  ;;  %v3954_v10 = vadd.f32 %v3953_v6, %v3952_v62  ;;  %v4066_v19 = vadd.f32 %v4065_v2, %v4064_v45  ;;  %v3955_v57 = vpop.f32.mrb[118].mxu0  ;;  %v4067_v48 = vpop.f32.mrb[118].mxu1 }
 0x2fe   : > { %v3956_v7 = vpop.f32.mrb[119].mxu0  ;;  %v4068_v37 = vpop.f32.mrb[119].mxu1 }
 0x2ff   : > { %v3207_v61 = vadd.f32 %v3954_v10, %v6674_v30  ;;  %v3957_v56 = vadd.f32 %v3956_v7, %v3955_v57  ;;  %v4069_v35 = vadd.f32 %v4068_v37, %v4067_v48 }
 0x301   : > { %v3368_v38 = vadd.f32 %v4066_v19, %v3207_v61  ;;  %v3210_v15 = vadd.f32 %v3957_v56, %v6677_v58 }
 0x303   : > { %3417 = vst.msk [vmem:[%s6696_s20 + $0xd0] sm:$0xff] %vm3390_vm0, %v3368_v38  ;;  %v3371_v23 = vadd.f32 %v4069_v35, %v3210_v15  ;;  %v3958_v39 = vpop.f32.mrb[120].mxu0  ;;  %v4070_v29 = vpop.f32.mrb[120].mxu1 }
 0x304   : > { %v3959_v53 = vpop.f32.mrb[121].mxu0  ;;  %v4071_v18 = vpop.f32.mrb[121].mxu1 }
 0x305   : > { %3418 = vst.msk [vmem:[%s6696_s20 + $0xd8] sm:$0xff] %vm3390_vm0, %v3371_v23  ;;  %v3960_v14 = vadd.f32 %v3959_v53, %v3958_v39  ;;  %v4072_v13 = vadd.f32 %v4071_v18, %v4070_v29  ;;  %v3961_v34 = vpop.f32.mrb[122].mxu0  ;;  %v4073_v30 = vpop.f32.mrb[122].mxu1 }
 0x306   : > { %v3962_v9 = vpop.f32.mrb[123].mxu0  ;;  %v4074_v27 = vpop.f32.mrb[123].mxu1 }
 0x307   : > { %v3215_v17 = vadd.f32 %v3960_v14, %v6680_v41  ;;  %v3963_v58 = vadd.f32 %v3962_v9, %v3961_v34  ;;  %v4075_v24 = vadd.f32 %v4074_v27, %v4073_v30 }
 0x309   : > { %v3376_v36 = vadd.f32 %v4072_v13, %v3215_v17  ;;  %v3218_v0 = vadd.f32 %v3963_v58, %v6683_v50 }
 0x30b   : > { %3419 = vst.msk [vmem:[%s6696_s20 + $0xe0] sm:$0xff] %vm3390_vm0, %v3376_v36  ;;  %v3379_v54 = vadd.f32 %v4075_v24, %v3218_v0  ;;  %v3964_v44 = vpop.f32.mrb[124].mxu0  ;;  %v4076_v51 = vpop.f32.mrb[124].mxu1 }
 0x30c   : > { %v3965_v16 = vpop.f32.mrb[125].mxu0  ;;  %v4077_v49 = vpop.f32.mrb[125].mxu1 }
 0x30d   : > { %3420 = vst.msk [vmem:[%s6696_s20 + $0xe8] sm:$0xff] %vm3390_vm0, %v3379_v54  ;;  %v3966_v46 = vadd.f32 %v3965_v16, %v3964_v44  ;;  %v4078_v8 = vadd.f32 %v4077_v49, %v4076_v51  ;;  %v3967_v22 = vpop.f32.mrb[126].mxu0  ;;  %v4079_v41 = vpop.f32.mrb[126].mxu1 }
 0x30e   : > { %v3968_v20 = vpop.f32.mrb[127].mxu0  ;;  %v4080_v3 = vpop.f32.mrb[127].mxu1 }
 0x30f   : > { %v3223_v52 = vadd.f32 %v3966_v46, %v6686_v47  ;;  %v3969_v50 = vadd.f32 %v3968_v20, %v3967_v22  ;;  %v4081_v60 = vadd.f32 %v4080_v3, %v4079_v41 }
 0x311   : > { %v3384_v33 = vadd.f32 %v4078_v8, %v3223_v52  ;;  %v3226_v25 = vadd.f32 %v3969_v50, %v6689_v12 }
 0x313   : > { %3421 = vst.msk [vmem:[%s6696_s20 + $0xf0] sm:$0xff] %vm3390_vm0, %v3384_v33  ;;  %v3387_v1 = vadd.f32 %v4081_v60, %v3226_v25 }
 0x315   : > { %3422 = vst.msk [vmem:[%s6696_s20 + $0xf8] sm:$0xff] %vm3390_vm0, %v3387_v1 }
 0x316 PF: > { %s19_s17 = sadd.s32 1, %s4642_s17   ;;  %s6919_s12 = smov %s4626_s13 }
 0x317   : > { %p16_p11 = scmp.ge.s32.totalorder %s19_s17, 4   ;;  %s6920_s13 = smov %s4630_s14 }
 0x318   : > { %s6921_s14 = smov %s4717_s24  ;;  %s6922_s15 = smov %s4638_s16 }
 0x319   : > { %s6923_s16 = smov %s6925_s19  ;;  %18 = sbr.rel (!%p16_p11) target bundleno = 6 (0x6), region = 88 }
 0x320   :  { %3453 = vsyncpa [#allocation3], 1 }
 0x321   :  { %3455 = vsyncpa [#allocation3 + $0x1], 1 }
 0x322   :  { %3456 = vsyncpa [#allocation5], 1 }
 0x323   :  { %3458 = vsyncpa [#allocation5 + $0x1], 1 }

</bundles_post_ra>
